<compile_context>
chip_gen: v6e
topology: v6e:2x2x1
jax: 0.10.0
libtpu: 0.0.40
codegen_flags: <defaults>
</compile_context>

<pallas_src>
import math
import functools

import jax
import jax.numpy as jnp
from jax.experimental import pallas as pl
from jax.experimental.pallas import tpu as pltpu

NHEAD = 8
LN_EPS = 1e-5
IN_DIM = 300            # module input feature size (proj: [300, dim])
IN_PAD = 384            # 300 padded up to a multiple of 128 (lane-dense)
FF_DIM = 2048           # nn.TransformerEncoderLayer default dim_feedforward
NEG = -1e9              # finite "minus infinity" for additive masks
CDT = jnp.bfloat16      # matmul-input dtype (accumulate in f32)


def _layer_norm(x, g, b):
    mu = jnp.mean(x, axis=-1, keepdims=True)
    xc = x - mu
    var = jnp.mean(xc * xc, axis=-1, keepdims=True)
    return xc * jax.lax.rsqrt(var + LN_EPS) * g + b


def trm4cls_kernel(x_ref, kbias_ref, pose_ref, proj_ref,
                   wq_ref, bq_ref, wk_ref, bk_ref, wv_ref, bv_ref,
                   wo_ref, bo_ref, ln1g_ref, ln1b_ref,
                   w1_ref, b1_ref, w2_ref, b2_ref, ln2g_ref, ln2b_ref,
                   proj2_ref, hid_ref, h_scr,
                   *, b_tile, seq, dim, nhead):
    """One (batch_tile, layer) grid step: embed at l==0, one post-norm
    encoder layer every step, final proj2 store at l==last."""
    l = pl.program_id(1)
    hd = dim // nhead
    scale = 1.0 / math.sqrt(hd)
    M = b_tile * seq

    # ---- embedding: x @ proj + posEmbed[:S]  (only at the first layer) ----
    @pl.when(l == 0)
    def _():
        x = x_ref[...]                                            # (M, 384) bf16
        h0 = jnp.dot(x, proj_ref[...],
                     preferred_element_type=jnp.float32)          # (M, D) f32
        pose = pose_ref[...]                                      # (S, D) f32
        h_scr[...] = h0 + jnp.concatenate([pose] * b_tile, axis=0)

    h = h_scr[...]                                                # (M, D) f32

    # ---- one encoder layer (post-norm, ReLU FFN, dropout = identity) ------
    wq = wq_ref[0]; wk = wk_ref[0]; wv = wv_ref[0]; wo = wo_ref[0]
    hm = h.astype(CDT)
    q = jnp.dot(hm, wq, preferred_element_type=jnp.float32) + bq_ref[0]
    k = jnp.dot(hm, wk, preferred_element_type=jnp.float32) + bk_ref[0]
    v = jnp.dot(hm, wv, preferred_element_type=jnp.float32) + bv_ref[0]

    # causal mask built in-kernel (no HBM traffic), finite negative bias
    row = jax.lax.broadcasted_iota(jnp.int32, (seq, seq), 0)
    col = jax.lax.broadcasted_iota(jnp.int32, (seq, seq), 1)
    causal = jnp.where(col > row, NEG, 0.0).astype(jnp.float32)   # (S, S)

    def one_head(qh, kh, vh, mask_b):
        s = jax.lax.dot_general(qh, kh, (((1,), (1,)), ((), ())),
                                preferred_element_type=jnp.float32)
        s = s * scale + mask_b
        mmax = jnp.max(s, axis=-1, keepdims=True)
        e = jnp.exp(s - mmax)
        p = e * pl.reciprocal(jnp.sum(e, axis=-1, keepdims=True), approx=True)
        return jnp.dot(p.astype(CDT), vh, preferred_element_type=jnp.float32)

    if hd % 128 != 0:
        # head_dim not lane-aligned: isolate heads with one-hot column masks
        # (generated in-kernel) so every contraction stays full-width.
        cidx = jax.lax.broadcasted_iota(jnp.int32, (1, dim), 1)
        head_cols = [((cidx >= hh * hd) & (cidx < (hh + 1) * hd))
                     .astype(jnp.float32) for hh in range(nhead)]

    o_rows = []
    for b in range(b_tile):                       # attention is per batch elem
        qb = q[b * seq:(b + 1) * seq, :]
        kb = k[b * seq:(b + 1) * seq, :]
        vb = v[b * seq:(b + 1) * seq, :]
        mask_b = causal + kbias_ref[b]            # (S, S) + (1, S)
        if hd % 128 == 0:
            outs = [one_head(qb[:, hh * hd:(hh + 1) * hd].astype(CDT),
                             kb[:, hh * hd:(hh + 1) * hd].astype(CDT),
                             vb[:, hh * hd:(hh + 1) * hd].astype(CDT),
                             mask_b)
                    for hh in range(nhead)]
            o_b = jnp.concatenate(outs, axis=-1)                  # (S, D)
        else:
            kbc = kb.astype(CDT)
            o_b = jnp.zeros((seq, dim), jnp.float32)
            for hh in range(nhead):
                m = head_cols[hh]
                o_b = o_b + one_head((qb * m).astype(CDT), kbc,
                                     (vb * m).astype(CDT), mask_b)
        o_rows.append(o_b)
    o = jnp.concatenate(o_rows, axis=0) if b_tile > 1 else o_rows[0]  # (M, D)

    # single Wo projection for all heads / batch rows (hoisted out of loops)
    attn = jnp.dot(o.astype(CDT), wo,
                   preferred_element_type=jnp.float32) + bo_ref[0]

    h1 = _layer_norm(h + attn, ln1g_ref[0], ln1b_ref[0])

    f = jnp.dot(h1.astype(CDT), w1_ref[0],
                preferred_element_type=jnp.float32) + b1_ref[0]
    f = jnp.maximum(f, 0.0)
    f = jnp.dot(f.astype(CDT), w2_ref[0],
                preferred_element_type=jnp.float32) + b2_ref[0]

    h2 = _layer_norm(h1 + f, ln2g_ref[0], ln2b_ref[0])
    h_scr[...] = h2

    # ---- final projection back to the (padded) 300-dim space --------------
    @pl.when(l == pl.num_programs(1) - 1)
    def _():
        hid_ref[...] = jnp.dot(h2.astype(CDT), proj2_ref[...],
                               preferred_element_type=jnp.float32)  # (M, 384)


def trm4cls_forward(x, pad_mask, params, *, layers, dim, b_tile=None):
    """x: (B, S, 300) float32; pad_mask: (B, S) bool (True = padded)."""
    B, S, in_dim = x.shape
    assert in_dim == IN_DIM

    if b_tile is None:
        b_tile = max(1, min(B, 8))
    n_bt = pl.cdiv(B, b_tile)
    Bp = n_bt * b_tile

    # pad batch (extra rows fully masked) and feature dim 300 -> 384 (zeros)
    x_pad = jnp.zeros((Bp, S, IN_PAD), jnp.float32).at[:B, :, :IN_DIM].set(x)
    x_flat = x_pad.reshape(Bp * S, IN_PAD).astype(CDT)
    pm_p = jnp.ones((Bp, S), bool).at[:B].set(pad_mask)
    key_bias = jnp.where(pm_p, NEG, 0.0).astype(jnp.float32)[:, None, :]  # (Bp,1,S)

    pose = params['posEmbed'][:S].astype(jnp.float32)                      # (S, D)

    def fixed(arr):
        nd = arr.ndim
        return pl.BlockSpec(arr.shape, lambda bi, l, nd=nd: (0,) * nd)

    def per_layer(arr):
        nd = arr.ndim
        return pl.BlockSpec((1,) + arr.shape[1:],
                            lambda bi, l, nd=nd: (l,) + (0,) * (nd - 1))

    kern = functools.partial(trm4cls_kernel, b_tile=b_tile, seq=S,
                             dim=dim, nhead=NHEAD)

    hidden_flat = pl.pallas_call(
        kern,
        out_shape=jax.ShapeDtypeStruct((Bp * S, IN_PAD), jnp.float32),
        grid=(n_bt, layers),
        in_specs=[
            pl.BlockSpec((b_tile * S, IN_PAD), lambda bi, l: (bi, 0)),   # x
            pl.BlockSpec((b_tile, 1, S), lambda bi, l: (bi, 0, 0)),      # key bias
            fixed(pose),
            fixed(params['proj']),
            per_layer(params['wq']), per_layer(params['bq']),
            per_layer(params['wk']), per_layer(params['bk']),
            per_layer(params['wv']), per_layer(params['bv']),
            per_layer(params['wo']), per_layer(params['bo']),
            per_layer(params['ln1g']), per_layer(params['ln1b']),
            per_layer(params['w1']), per_layer(params['b1']),
            per_layer(params['w2']), per_layer(params['b2']),
            per_layer(params['ln2g']), per_layer(params['ln2b']),
            fixed(params['proj2']),
        ],
        out_specs=pl.BlockSpec((b_tile * S, IN_PAD), lambda bi, l: (bi, 0)),
        scratch_shapes=[pltpu.VMEM((b_tile * S, dim), jnp.float32)],
        compiler_params=pltpu.CompilerParams(
            dimension_semantics=("parallel", "arbitrary"),
            vmem_limit_bytes=48 * 1024 * 1024),
    )(x_flat, key_bias, pose, params['proj'],
      params['wq'], params['bq'], params['wk'], params['bk'],
      params['wv'], params['bv'], params['wo'], params['bo'],
      params['ln1g'], params['ln1b'], params['w1'], params['b1'],
      params['w2'], params['b2'], params['ln2g'], params['ln2b'],
      params['proj2'])

    hidden = hidden_flat.reshape(Bp, S, IN_PAD)[:B, :, :IN_DIM]   # (B, S, 300)

    # Tiny classification head (host-side glue): last-valid-token gather,
    # Linear(300, kind), exact GELU (nn.GELU default), softmax.
    pos = (S - jnp.sum(pad_mask.astype(jnp.int32), axis=-1) - 1).astype(jnp.int32)
    rows = hidden[jnp.arange(B), pos]                             # (B, 300)
    y = rows @ params['lin_w'] + params['lin_b']                  # (B, kind)
    y = jax.nn.gelu(y, approximate=False)
    y = jax.nn.softmax(y, axis=-1)
    return y, hidden, pad_mask


def init_params(key, dim, kind, layers, max_length):
    ks = jax.random.split(key, 16)

    def rnd(k, shape, scale=0.05):
        return (scale * jax.random.normal(k, shape)).astype(jnp.float32)

    proj = rnd(ks[0], (IN_DIM, dim))
    proj2 = rnd(ks[1], (dim, IN_DIM))
    # Pad the 300-wide dims to 384 with zeros (inert rows/cols).
    proj_p = jnp.zeros((IN_PAD, dim), jnp.float32).at[:IN_DIM].set(proj)
    proj2_p = jnp.zeros((dim, IN_PAD), jnp.float32).at[:, :IN_DIM].set(proj2)

    return dict(
        proj=proj_p.astype(CDT),
        proj2=proj2_p.astype(CDT),
        posEmbed=rnd(ks[2], (max_length, dim)),
        wq=rnd(ks[3], (layers, dim, dim)).astype(CDT),
        bq=rnd(ks[4], (layers, 1, dim)),
        wk=rnd(ks[5], (layers, dim, dim)).astype(CDT),
        bk=rnd(ks[6], (layers, 1, dim)),
        wv=rnd(ks[7], (layers, dim, dim)).astype(CDT),
        bv=rnd(ks[8], (layers, 1, dim)),
        wo=rnd(ks[9], (layers, dim, dim)).astype(CDT),
        bo=rnd(ks[10], (layers, 1, dim)),
        ln1g=jnp.ones((layers, 1, dim), jnp.float32),
        ln1b=jnp.zeros((layers, 1, dim), jnp.float32),
        w1=rnd(ks[11], (layers, dim, FF_DIM)).astype(CDT),
        b1=rnd(ks[12], (layers, 1, FF_DIM)),
        w2=rnd(ks[13], (layers, FF_DIM, dim)).astype(CDT),
        b2=rnd(ks[14], (layers, 1, dim)),
        ln2g=jnp.ones((layers, 1, dim), jnp.float32),
        ln2b=jnp.zeros((layers, 1, dim), jnp.float32),
        lin_w=rnd(ks[15], (IN_DIM, kind)),
        lin_b=jnp.zeros((kind,), jnp.float32),
    )


if __name__ == "__main__":
    B, S = 2, 8
    dim, kind, layers, max_length = 32, 5, 3, 800

    key = jax.random.PRNGKey(0)
    kx, kp = jax.random.split(key)
    x = jax.random.normal(kx, (B, S, IN_DIM), jnp.float32)

    # padMask: True = padded; valid lengths 8 and 5 (padding at the end).
    lengths = jnp.array([8, 5], jnp.int32)
    pad_mask = jnp.arange(S)[None, :] >= lengths[:, None]         # (B, S) bool

    params = init_params(kp, dim, kind, layers, max_length)

    y, hidden, pm = trm4cls_forward(x, pad_mask, params, layers=layers, dim=dim)
    jax.block_until_ready((y, hidden, pm))
    assert y.shape == (B, kind) and hidden.shape == (B, S, IN_DIM)
    assert bool(jnp.all(jnp.isfinite(y))) and bool(jnp.all(jnp.isfinite(hidden)))
    print("KERNEL_OK")
</pallas_src>

<mosaic_0001>
module attributes {stable_mosaic.version = 11 : i64} {
  func.func @trm4cls_kernel(%arg0: i32, %arg1: i32, %arg2: memref<16x384xbf16, #tpu.memory_space<vmem>>, %arg3: memref<2x1x8xf32, #tpu.memory_space<vmem>>, %arg4: memref<8x32xf32, #tpu.memory_space<vmem>>, %arg5: memref<384x32xbf16, #tpu.memory_space<vmem>>, %arg6: memref<1x32x32xbf16, #tpu.memory_space<vmem>>, %arg7: memref<1x1x32xf32, #tpu.memory_space<vmem>>, %arg8: memref<1x32x32xbf16, #tpu.memory_space<vmem>>, %arg9: memref<1x1x32xf32, #tpu.memory_space<vmem>>, %arg10: memref<1x32x32xbf16, #tpu.memory_space<vmem>>, %arg11: memref<1x1x32xf32, #tpu.memory_space<vmem>>, %arg12: memref<1x32x32xbf16, #tpu.memory_space<vmem>>, %arg13: memref<1x1x32xf32, #tpu.memory_space<vmem>>, %arg14: memref<1x1x32xf32, #tpu.memory_space<vmem>>, %arg15: memref<1x1x32xf32, #tpu.memory_space<vmem>>, %arg16: memref<1x32x2048xbf16, #tpu.memory_space<vmem>>, %arg17: memref<1x1x2048xf32, #tpu.memory_space<vmem>>, %arg18: memref<1x2048x32xbf16, #tpu.memory_space<vmem>>, %arg19: memref<1x1x32xf32, #tpu.memory_space<vmem>>, %arg20: memref<1x1x32xf32, #tpu.memory_space<vmem>>, %arg21: memref<1x1x32xf32, #tpu.memory_space<vmem>>, %arg22: memref<32x384xbf16, #tpu.memory_space<vmem>>, %arg23: memref<16x384xf32, #tpu.memory_space<vmem>>, %arg24: memref<16x32xf32, #tpu.memory_space<vmem>>) attributes {dimension_semantics = [#tpu.dimension_semantics<parallel>, #tpu.dimension_semantics<arbitrary>], iteration_bounds = array<i64: 1, 3>, scalar_prefetch = 0 : i64, scratch_operands = 1 : i64, tpu.core_type = #tpu.core_type<tc>, window_params = [{transform_indices = @transform_0, window_bounds = array<i64: 16, 384>}, {transform_indices = @transform_1, window_bounds = array<i64: 2, 1, 8>}, {pipeline_mode = #tpu.pipeline_mode<synchronous>, transform_indices = @transform_2, window_bounds = array<i64: 8, 32>}, {pipeline_mode = #tpu.pipeline_mode<synchronous>, transform_indices = @transform_3, window_bounds = array<i64: 384, 32>}, {transform_indices = @transform_4, window_bounds = array<i64: 1, 32, 32>}, {transform_indices = @transform_5, window_bounds = array<i64: 1, 1, 32>}, {transform_indices = @transform_6, window_bounds = array<i64: 1, 32, 32>}, {transform_indices = @transform_7, window_bounds = array<i64: 1, 1, 32>}, {transform_indices = @transform_8, window_bounds = array<i64: 1, 32, 32>}, {transform_indices = @transform_9, window_bounds = array<i64: 1, 1, 32>}, {transform_indices = @transform_10, window_bounds = array<i64: 1, 32, 32>}, {transform_indices = @transform_11, window_bounds = array<i64: 1, 1, 32>}, {transform_indices = @transform_12, window_bounds = array<i64: 1, 1, 32>}, {transform_indices = @transform_13, window_bounds = array<i64: 1, 1, 32>}, {transform_indices = @transform_14, window_bounds = array<i64: 1, 32, 2048>}, {transform_indices = @transform_15, window_bounds = array<i64: 1, 1, 2048>}, {transform_indices = @transform_16, window_bounds = array<i64: 1, 2048, 32>}, {transform_indices = @transform_17, window_bounds = array<i64: 1, 1, 32>}, {transform_indices = @transform_18, window_bounds = array<i64: 1, 1, 32>}, {transform_indices = @transform_19, window_bounds = array<i64: 1, 1, 32>}, {pipeline_mode = #tpu.pipeline_mode<synchronous>, transform_indices = @transform_20, window_bounds = array<i64: 32, 384>}, {transform_indices = @transform_21, window_bounds = array<i64: 16, 384>}]} {
    %c0_i32 = arith.constant 0 : i32
    %0 = arith.cmpi eq, %arg1, %c0_i32 : i32
    %1 = arith.extui %0 : i1 to i32
    %c0_i32_0 = arith.constant 0 : i32
    %2 = arith.cmpi ne, %1, %c0_i32_0 : i32
    scf.if %2 {
      %c0_166 = arith.constant 0 : index
      %c0_167 = arith.constant 0 : index
      %556 = vector.load %arg2[%c0_166, %c0_167] : memref<16x384xbf16, #tpu.memory_space<vmem>>, vector<16x384xbf16>
      %c0_168 = arith.constant 0 : index
      %c0_169 = arith.constant 0 : index
      %557 = vector.load %arg5[%c0_168, %c0_169] : memref<384x32xbf16, #tpu.memory_space<vmem>>, vector<384x32xbf16>
      %cst_170 = arith.constant dense<0.000000e+00> : vector<16x32xf32>
      %558 = tpu.matmul %556, %557, %cst_170 {dimension_numbers = #tpu.dot_dimension_numbers<[1], [0], [0], [1], [0, 0, 1, 1], [], []>} : vector<16x384xbf16>, vector<384x32xbf16>, vector<16x32xf32> -> vector<16x32xf32>
      %c0_171 = arith.constant 0 : index
      %c0_172 = arith.constant 0 : index
      %559 = vector.load %arg4[%c0_171, %c0_172] : memref<8x32xf32, #tpu.memory_space<vmem>>, vector<8x32xf32>
      %560 = tpu.concatenate %559, %559 in 0 : vector<8x32xf32>, vector<8x32xf32> -> vector<16x32xf32>
      %561 = arith.addf %558, %560 : vector<16x32xf32>
      %c0_173 = arith.constant 0 : index
      %c0_174 = arith.constant 0 : index
      %562 = vector.load %arg24[%c0_173, %c0_174] : memref<16x32xf32, #tpu.memory_space<vmem>>, vector<16x32xf32>
      tpu.vector_store %arg24[%c0_173, %c0_174], %561 {strides = array<i32>} : memref<16x32xf32, #tpu.memory_space<vmem>>, vector<16x32xf32>,
    } else {
    }
    %c0 = arith.constant 0 : index
    %c0_1 = arith.constant 0 : index
    %3 = vector.load %arg24[%c0, %c0_1] : memref<16x32xf32, #tpu.memory_space<vmem>>, vector<16x32xf32>
    %c0_2 = arith.constant 0 : index
    %c0_3 = arith.constant 0 : index
    %c0_4 = arith.constant 0 : index
    %4 = vector.load %arg6[%c0_2, %c0_3, %c0_4] : memref<1x32x32xbf16, #tpu.memory_space<vmem>>, vector<1x32x32xbf16>
    %5 = vector.shape_cast %4 : vector<1x32x32xbf16> to vector<32x32xbf16>
    %c0_5 = arith.constant 0 : index
    %c0_6 = arith.constant 0 : index
    %c0_7 = arith.constant 0 : index
    %6 = vector.load %arg8[%c0_5, %c0_6, %c0_7] : memref<1x32x32xbf16, #tpu.memory_space<vmem>>, vector<1x32x32xbf16>
    %7 = vector.shape_cast %6 : vector<1x32x32xbf16> to vector<32x32xbf16>
    %c0_8 = arith.constant 0 : index
    %c0_9 = arith.constant 0 : index
    %c0_10 = arith.constant 0 : index
    %8 = vector.load %arg10[%c0_8, %c0_9, %c0_10] : memref<1x32x32xbf16, #tpu.memory_space<vmem>>, vector<1x32x32xbf16>
    %9 = vector.shape_cast %8 : vector<1x32x32xbf16> to vector<32x32xbf16>
    %c0_11 = arith.constant 0 : index
    %c0_12 = arith.constant 0 : index
    %c0_13 = arith.constant 0 : index
    %10 = vector.load %arg12[%c0_11, %c0_12, %c0_13] : memref<1x32x32xbf16, #tpu.memory_space<vmem>>, vector<1x32x32xbf16>
    %11 = vector.shape_cast %10 : vector<1x32x32xbf16> to vector<32x32xbf16>
    %12 = arith.truncf %3 : vector<16x32xf32> to vector<16x32xbf16>
    %cst = arith.constant dense<0.000000e+00> : vector<16x32xf32>
    %13 = tpu.matmul %12, %5, %cst {dimension_numbers = #tpu.dot_dimension_numbers<[1], [0], [0], [1], [0, 0, 1, 1], [], []>} : vector<16x32xbf16>, vector<32x32xbf16>, vector<16x32xf32> -> vector<16x32xf32>
    %c0_14 = arith.constant 0 : index
    %c0_15 = arith.constant 0 : index
    %c0_16 = arith.constant 0 : index
    %14 = vector.load %arg7[%c0_14, %c0_15, %c0_16] : memref<1x1x32xf32, #tpu.memory_space<vmem>>, vector<1x1x32xf32>
    %15 = vector.shape_cast %14 : vector<1x1x32xf32> to vector<1x32xf32>
    %16 = vector.broadcast %15 : vector<1x32xf32> to vector<16x32xf32>
    %17 = arith.addf %13, %16 : vector<16x32xf32>
    %cst_17 = arith.constant dense<0.000000e+00> : vector<16x32xf32>
    %18 = tpu.matmul %12, %7, %cst_17 {dimension_numbers = #tpu.dot_dimension_numbers<[1], [0], [0], [1], [0, 0, 1, 1], [], []>} : vector<16x32xbf16>, vector<32x32xbf16>, vector<16x32xf32> -> vector<16x32xf32>
    %c0_18 = arith.constant 0 : index
    %c0_19 = arith.constant 0 : index
    %c0_20 = arith.constant 0 : index
    %19 = vector.load %arg9[%c0_18, %c0_19, %c0_20] : memref<1x1x32xf32, #tpu.memory_space<vmem>>, vector<1x1x32xf32>
    %20 = vector.shape_cast %19 : vector<1x1x32xf32> to vector<1x32xf32>
    %21 = vector.broadcast %20 : vector<1x32xf32> to vector<16x32xf32>
    %22 = arith.addf %18, %21 : vector<16x32xf32>
    %cst_21 = arith.constant dense<0.000000e+00> : vector<16x32xf32>
    %23 = tpu.matmul %12, %9, %cst_21 {dimension_numbers = #tpu.dot_dimension_numbers<[1], [0], [0], [1], [0, 0, 1, 1], [], []>} : vector<16x32xbf16>, vector<32x32xbf16>, vector<16x32xf32> -> vector<16x32xf32>
    %c0_22 = arith.constant 0 : index
    %c0_23 = arith.constant 0 : index
    %c0_24 = arith.constant 0 : index
    %24 = vector.load %arg11[%c0_22, %c0_23, %c0_24] : memref<1x1x32xf32, #tpu.memory_space<vmem>>, vector<1x1x32xf32>
    %25 = vector.shape_cast %24 : vector<1x1x32xf32> to vector<1x32xf32>
    %26 = vector.broadcast %25 : vector<1x32xf32> to vector<16x32xf32>
    %27 = arith.addf %23, %26 : vector<16x32xf32>
    %28 = tpu.iota {dimensions = array<i32: 0>} : vector<8x8xi32>
    %29 = tpu.iota {dimensions = array<i32: 1>} : vector<8x8xi32>
    %30 = arith.cmpi sgt, %29, %28 : vector<8x8xi32>
    %cst_25 = arith.constant -1.000000e+09 : f32
    %cst_26 = arith.constant 0.000000e+00 : f32
    %31 = vector.broadcast %cst_25 : f32 to vector<8x8xf32>
    %32 = vector.broadcast %cst_26 : f32 to vector<8x8xf32>
    %33 = arith.select %30, %31, %32 : vector<8x8xi1>, vector<8x8xf32>
    %34 = tpu.iota {dimensions = array<i32: 1>} : vector<1x32xi32>
    %c0_i32_27 = arith.constant 0 : i32
    %35 = vector.broadcast %c0_i32_27 : i32 to vector<1x32xi32>
    %36 = arith.cmpi sge, %34, %35 : vector<1x32xi32>
    %c4_i32 = arith.constant 4 : i32
    %37 = vector.broadcast %c4_i32 : i32 to vector<1x32xi32>
    %38 = arith.cmpi slt, %34, %37 : vector<1x32xi32>
    %39 = arith.andi %36, %38 : vector<1x32xi1>
    %40 = arith.extui %39 : vector<1x32xi1> to vector<1x32xi32>
    %41 = arith.sitofp %40 : vector<1x32xi32> to vector<1x32xf32>
    %c4_i32_28 = arith.constant 4 : i32
    %42 = vector.broadcast %c4_i32_28 : i32 to vector<1x32xi32>
    %43 = arith.cmpi sge, %34, %42 : vector<1x32xi32>
    %c8_i32 = arith.constant 8 : i32
    %44 = vector.broadcast %c8_i32 : i32 to vector<1x32xi32>
    %45 = arith.cmpi slt, %34, %44 : vector<1x32xi32>
    %46 = arith.andi %43, %45 : vector<1x32xi1>
    %47 = arith.extui %46 : vector<1x32xi1> to vector<1x32xi32>
    %48 = arith.sitofp %47 : vector<1x32xi32> to vector<1x32xf32>
    %c8_i32_29 = arith.constant 8 : i32
    %49 = vector.broadcast %c8_i32_29 : i32 to vector<1x32xi32>
    %50 = arith.cmpi sge, %34, %49 : vector<1x32xi32>
    %c12_i32 = arith.constant 12 : i32
    %51 = vector.broadcast %c12_i32 : i32 to vector<1x32xi32>
    %52 = arith.cmpi slt, %34, %51 : vector<1x32xi32>
    %53 = arith.andi %50, %52 : vector<1x32xi1>
    %54 = arith.extui %53 : vector<1x32xi1> to vector<1x32xi32>
    %55 = arith.sitofp %54 : vector<1x32xi32> to vector<1x32xf32>
    %c12_i32_30 = arith.constant 12 : i32
    %56 = vector.broadcast %c12_i32_30 : i32 to vector<1x32xi32>
    %57 = arith.cmpi sge, %34, %56 : vector<1x32xi32>
    %c16_i32 = arith.constant 16 : i32
    %58 = vector.broadcast %c16_i32 : i32 to vector<1x32xi32>
    %59 = arith.cmpi slt, %34, %58 : vector<1x32xi32>
    %60 = arith.andi %57, %59 : vector<1x32xi1>
    %61 = arith.extui %60 : vector<1x32xi1> to vector<1x32xi32>
    %62 = arith.sitofp %61 : vector<1x32xi32> to vector<1x32xf32>
    %c16_i32_31 = arith.constant 16 : i32
    %63 = vector.broadcast %c16_i32_31 : i32 to vector<1x32xi32>
    %64 = arith.cmpi sge, %34, %63 : vector<1x32xi32>
    %c20_i32 = arith.constant 20 : i32
    %65 = vector.broadcast %c20_i32 : i32 to vector<1x32xi32>
    %66 = arith.cmpi slt, %34, %65 : vector<1x32xi32>
    %67 = arith.andi %64, %66 : vector<1x32xi1>
    %68 = arith.extui %67 : vector<1x32xi1> to vector<1x32xi32>
    %69 = arith.sitofp %68 : vector<1x32xi32> to vector<1x32xf32>
    %c20_i32_32 = arith.constant 20 : i32
    %70 = vector.broadcast %c20_i32_32 : i32 to vector<1x32xi32>
    %71 = arith.cmpi sge, %34, %70 : vector<1x32xi32>
    %c24_i32 = arith.constant 24 : i32
    %72 = vector.broadcast %c24_i32 : i32 to vector<1x32xi32>
    %73 = arith.cmpi slt, %34, %72 : vector<1x32xi32>
    %74 = arith.andi %71, %73 : vector<1x32xi1>
    %75 = arith.extui %74 : vector<1x32xi1> to vector<1x32xi32>
    %76 = arith.sitofp %75 : vector<1x32xi32> to vector<1x32xf32>
    %c24_i32_33 = arith.constant 24 : i32
    %77 = vector.broadcast %c24_i32_33 : i32 to vector<1x32xi32>
    %78 = arith.cmpi sge, %34, %77 : vector<1x32xi32>
    %c28_i32 = arith.constant 28 : i32
    %79 = vector.broadcast %c28_i32 : i32 to vector<1x32xi32>
    %80 = arith.cmpi slt, %34, %79 : vector<1x32xi32>
    %81 = arith.andi %78, %80 : vector<1x32xi1>
    %82 = arith.extui %81 : vector<1x32xi1> to vector<1x32xi32>
    %83 = arith.sitofp %82 : vector<1x32xi32> to vector<1x32xf32>
    %c28_i32_34 = arith.constant 28 : i32
    %84 = vector.broadcast %c28_i32_34 : i32 to vector<1x32xi32>
    %85 = arith.cmpi sge, %34, %84 : vector<1x32xi32>
    %c32_i32 = arith.constant 32 : i32
    %86 = vector.broadcast %c32_i32 : i32 to vector<1x32xi32>
    %87 = arith.cmpi slt, %34, %86 : vector<1x32xi32>
    %88 = arith.andi %85, %87 : vector<1x32xi1>
    %89 = arith.extui %88 : vector<1x32xi1> to vector<1x32xi32>
    %90 = arith.sitofp %89 : vector<1x32xi32> to vector<1x32xf32>
    %91 = vector.extract_strided_slice %17 {offsets = [0, 0], sizes = [8, 32], strides = [1, 1]} : vector<16x32xf32> to vector<8x32xf32>
    %92 = vector.extract_strided_slice %22 {offsets = [0, 0], sizes = [8, 32], strides = [1, 1]} : vector<16x32xf32> to vector<8x32xf32>
    %93 = vector.extract_strided_slice %27 {offsets = [0, 0], sizes = [8, 32], strides = [1, 1]} : vector<16x32xf32> to vector<8x32xf32>
    %c0_35 = arith.constant 0 : index
    %c0_36 = arith.constant 0 : index
    %c0_37 = arith.constant 0 : index
    %94 = vector.load %arg3[%c0_35, %c0_36, %c0_37] : memref<2x1x8xf32, #tpu.memory_space<vmem>>, vector<1x1x8xf32>
    %95 = vector.shape_cast %94 : vector<1x1x8xf32> to vector<1x8xf32>
    %96 = vector.broadcast %95 : vector<1x8xf32> to vector<8x8xf32>
    %97 = arith.addf %33, %96 : vector<8x8xf32>
    %98 = arith.truncf %92 : vector<8x32xf32> to vector<8x32xbf16>
    %cst_38 = arith.constant 0.000000e+00 : f32
    %99 = vector.broadcast %cst_38 : f32 to vector<8x32xf32>
    %100 = vector.broadcast %41 : vector<1x32xf32> to vector<8x32xf32>
    %101 = arith.mulf %91, %100 : vector<8x32xf32>
    %102 = arith.truncf %101 : vector<8x32xf32> to vector<8x32xbf16>
    %103 = vector.broadcast %41 : vector<1x32xf32> to vector<8x32xf32>
    %104 = arith.mulf %93, %103 : vector<8x32xf32>
    %105 = arith.truncf %104 : vector<8x32xf32> to vector<8x32xbf16>
    %cst_39 = arith.constant dense<0.000000e+00> : vector<8x8xf32>
    %106 = tpu.matmul %102, %98, %cst_39 {dimension_numbers = #tpu.dot_dimension_numbers<[1], [1], [0], [0], [0, 0, 1, 0], [], []>} : vector<8x32xbf16>, vector<8x32xbf16>, vector<8x8xf32> -> vector<8x8xf32>
    %cst_40 = arith.constant 5.000000e-01 : f32
    %107 = vector.broadcast %cst_40 : f32 to vector<8x8xf32>
    %108 = arith.mulf %106, %107 : vector<8x8xf32>
    %109 = arith.addf %108, %97 : vector<8x8xf32>
    %cst_41 = arith.constant dense<0xFF800000> : vector<8xf32>
    %110 = vector.multi_reduction <maximumf>, %109, %cst_41 [1] : vector<8x8xf32> to vector<8xf32>
    %111 = vector.shape_cast %110 : vector<8xf32> to vector<8x1xf32>
    %112 = vector.broadcast %111 : vector<8x1xf32> to vector<8x8xf32>
    %113 = arith.subf %109, %112 : vector<8x8xf32>
    %114 = math.exp %113 : vector<8x8xf32>
    %cst_42 = arith.constant dense<0.000000e+00> : vector<8xf32>
    %115 = vector.multi_reduction <add>, %114, %cst_42 [1] : vector<8x8xf32> to vector<8xf32>
    %116 = vector.shape_cast %115 : vector<8xf32> to vector<8x1xf32>
    %117 = tpu.reciprocal %116 {approx = true} : vector<8x1xf32> -> vector<8x1xf32>
    %118 = vector.broadcast %117 : vector<8x1xf32> to vector<8x8xf32>
    %119 = arith.mulf %114, %118 : vector<8x8xf32>
    %120 = arith.truncf %119 : vector<8x8xf32> to vector<8x8xbf16>
    %cst_43 = arith.constant dense<0.000000e+00> : vector<8x32xf32>
    %121 = tpu.matmul %120, %105, %cst_43 {dimension_numbers = #tpu.dot_dimension_numbers<[1], [0], [0], [1], [0, 0, 1, 1], [], []>} : vector<8x8xbf16>, vector<8x32xbf16>, vector<8x32xf32> -> vector<8x32xf32>
    %122 = arith.addf %99, %121 : vector<8x32xf32>
    %123 = vector.broadcast %48 : vector<1x32xf32> to vector<8x32xf32>
    %124 = arith.mulf %91, %123 : vector<8x32xf32>
    %125 = arith.truncf %124 : vector<8x32xf32> to vector<8x32xbf16>
    %126 = vector.broadcast %48 : vector<1x32xf32> to vector<8x32xf32>
    %127 = arith.mulf %93, %126 : vector<8x32xf32>
    %128 = arith.truncf %127 : vector<8x32xf32> to vector<8x32xbf16>
    %cst_44 = arith.constant dense<0.000000e+00> : vector<8x8xf32>
    %129 = tpu.matmul %125, %98, %cst_44 {dimension_numbers = #tpu.dot_dimension_numbers<[1], [1], [0], [0], [0, 0, 1, 0], [], []>} : vector<8x32xbf16>, vector<8x32xbf16>, vector<8x8xf32> -> vector<8x8xf32>
    %cst_45 = arith.constant 5.000000e-01 : f32
    %130 = vector.broadcast %cst_45 : f32 to vector<8x8xf32>
    %131 = arith.mulf %129, %130 : vector<8x8xf32>
    %132 = arith.addf %131, %97 : vector<8x8xf32>
    %cst_46 = arith.constant dense<0xFF800000> : vector<8xf32>
    %133 = vector.multi_reduction <maximumf>, %132, %cst_46 [1] : vector<8x8xf32> to vector<8xf32>
    %134 = vector.shape_cast %133 : vector<8xf32> to vector<8x1xf32>
    %135 = vector.broadcast %134 : vector<8x1xf32> to vector<8x8xf32>
    %136 = arith.subf %132, %135 : vector<8x8xf32>
    %137 = math.exp %136 : vector<8x8xf32>
    %cst_47 = arith.constant dense<0.000000e+00> : vector<8xf32>
    %138 = vector.multi_reduction <add>, %137, %cst_47 [1] : vector<8x8xf32> to vector<8xf32>
    %139 = vector.shape_cast %138 : vector<8xf32> to vector<8x1xf32>
    %140 = tpu.reciprocal %139 {approx = true} : vector<8x1xf32> -> vector<8x1xf32>
    %141 = vector.broadcast %140 : vector<8x1xf32> to vector<8x8xf32>
    %142 = arith.mulf %137, %141 : vector<8x8xf32>
    %143 = arith.truncf %142 : vector<8x8xf32> to vector<8x8xbf16>
    %cst_48 = arith.constant dense<0.000000e+00> : vector<8x32xf32>
    %144 = tpu.matmul %143, %128, %cst_48 {dimension_numbers = #tpu.dot_dimension_numbers<[1], [0], [0], [1], [0, 0, 1, 1], [], []>} : vector<8x8xbf16>, vector<8x32xbf16>, vector<8x32xf32> -> vector<8x32xf32>
    %145 = arith.addf %122, %144 : vector<8x32xf32>
    %146 = vector.broadcast %55 : vector<1x32xf32> to vector<8x32xf32>
    %147 = arith.mulf %91, %146 : vector<8x32xf32>
    %148 = arith.truncf %147 : vector<8x32xf32> to vector<8x32xbf16>
    %149 = vector.broadcast %55 : vector<1x32xf32> to vector<8x32xf32>
    %150 = arith.mulf %93, %149 : vector<8x32xf32>
    %151 = arith.truncf %150 : vector<8x32xf32> to vector<8x32xbf16>
    %cst_49 = arith.constant dense<0.000000e+00> : vector<8x8xf32>
    %152 = tpu.matmul %148, %98, %cst_49 {dimension_numbers = #tpu.dot_dimension_numbers<[1], [1], [0], [0], [0, 0, 1, 0], [], []>} : vector<8x32xbf16>, vector<8x32xbf16>, vector<8x8xf32> -> vector<8x8xf32>
    %cst_50 = arith.constant 5.000000e-01 : f32
    %153 = vector.broadcast %cst_50 : f32 to vector<8x8xf32>
    %154 = arith.mulf %152, %153 : vector<8x8xf32>
    %155 = arith.addf %154, %97 : vector<8x8xf32>
    %cst_51 = arith.constant dense<0xFF800000> : vector<8xf32>
    %156 = vector.multi_reduction <maximumf>, %155, %cst_51 [1] : vector<8x8xf32> to vector<8xf32>
    %157 = vector.shape_cast %156 : vector<8xf32> to vector<8x1xf32>
    %158 = vector.broadcast %157 : vector<8x1xf32> to vector<8x8xf32>
    %159 = arith.subf %155, %158 : vector<8x8xf32>
    %160 = math.exp %159 : vector<8x8xf32>
    %cst_52 = arith.constant dense<0.000000e+00> : vector<8xf32>
    %161 = vector.multi_reduction <add>, %160, %cst_52 [1] : vector<8x8xf32> to vector<8xf32>
    %162 = vector.shape_cast %161 : vector<8xf32> to vector<8x1xf32>
    %163 = tpu.reciprocal %162 {approx = true} : vector<8x1xf32> -> vector<8x1xf32>
    %164 = vector.broadcast %163 : vector<8x1xf32> to vector<8x8xf32>
    %165 = arith.mulf %160, %164 : vector<8x8xf32>
    %166 = arith.truncf %165 : vector<8x8xf32> to vector<8x8xbf16>
    %cst_53 = arith.constant dense<0.000000e+00> : vector<8x32xf32>
    %167 = tpu.matmul %166, %151, %cst_53 {dimension_numbers = #tpu.dot_dimension_numbers<[1], [0], [0], [1], [0, 0, 1, 1], [], []>} : vector<8x8xbf16>, vector<8x32xbf16>, vector<8x32xf32> -> vector<8x32xf32>
    %168 = arith.addf %145, %167 : vector<8x32xf32>
    %169 = vector.broadcast %62 : vector<1x32xf32> to vector<8x32xf32>
    %170 = arith.mulf %91, %169 : vector<8x32xf32>
    %171 = arith.truncf %170 : vector<8x32xf32> to vector<8x32xbf16>
    %172 = vector.broadcast %62 : vector<1x32xf32> to vector<8x32xf32>
    %173 = arith.mulf %93, %172 : vector<8x32xf32>
    %174 = arith.truncf %173 : vector<8x32xf32> to vector<8x32xbf16>
    %cst_54 = arith.constant dense<0.000000e+00> : vector<8x8xf32>
    %175 = tpu.matmul %171, %98, %cst_54 {dimension_numbers = #tpu.dot_dimension_numbers<[1], [1], [0], [0], [0, 0, 1, 0], [], []>} : vector<8x32xbf16>, vector<8x32xbf16>, vector<8x8xf32> -> vector<8x8xf32>
    %cst_55 = arith.constant 5.000000e-01 : f32
    %176 = vector.broadcast %cst_55 : f32 to vector<8x8xf32>
    %177 = arith.mulf %175, %176 : vector<8x8xf32>
    %178 = arith.addf %177, %97 : vector<8x8xf32>
    %cst_56 = arith.constant dense<0xFF800000> : vector<8xf32>
    %179 = vector.multi_reduction <maximumf>, %178, %cst_56 [1] : vector<8x8xf32> to vector<8xf32>
    %180 = vector.shape_cast %179 : vector<8xf32> to vector<8x1xf32>
    %181 = vector.broadcast %180 : vector<8x1xf32> to vector<8x8xf32>
    %182 = arith.subf %178, %181 : vector<8x8xf32>
    %183 = math.exp %182 : vector<8x8xf32>
    %cst_57 = arith.constant dense<0.000000e+00> : vector<8xf32>
    %184 = vector.multi_reduction <add>, %183, %cst_57 [1] : vector<8x8xf32> to vector<8xf32>
    %185 = vector.shape_cast %184 : vector<8xf32> to vector<8x1xf32>
    %186 = tpu.reciprocal %185 {approx = true} : vector<8x1xf32> -> vector<8x1xf32>
    %187 = vector.broadcast %186 : vector<8x1xf32> to vector<8x8xf32>
    %188 = arith.mulf %183, %187 : vector<8x8xf32>
    %189 = arith.truncf %188 : vector<8x8xf32> to vector<8x8xbf16>
    %cst_58 = arith.constant dense<0.000000e+00> : vector<8x32xf32>
    %190 = tpu.matmul %189, %174, %cst_58 {dimension_numbers = #tpu.dot_dimension_numbers<[1], [0], [0], [1], [0, 0, 1, 1], [], []>} : vector<8x8xbf16>, vector<8x32xbf16>, vector<8x32xf32> -> vector<8x32xf32>
    %191 = arith.addf %168, %190 : vector<8x32xf32>
    %192 = vector.broadcast %69 : vector<1x32xf32> to vector<8x32xf32>
    %193 = arith.mulf %91, %192 : vector<8x32xf32>
    %194 = arith.truncf %193 : vector<8x32xf32> to vector<8x32xbf16>
    %195 = vector.broadcast %69 : vector<1x32xf32> to vector<8x32xf32>
    %196 = arith.mulf %93, %195 : vector<8x32xf32>
    %197 = arith.truncf %196 : vector<8x32xf32> to vector<8x32xbf16>
    %cst_59 = arith.constant dense<0.000000e+00> : vector<8x8xf32>
    %198 = tpu.matmul %194, %98, %cst_59 {dimension_numbers = #tpu.dot_dimension_numbers<[1], [1], [0], [0], [0, 0, 1, 0], [], []>} : vector<8x32xbf16>, vector<8x32xbf16>, vector<8x8xf32> -> vector<8x8xf32>
    %cst_60 = arith.constant 5.000000e-01 : f32
    %199 = vector.broadcast %cst_60 : f32 to vector<8x8xf32>
    %200 = arith.mulf %198, %199 : vector<8x8xf32>
    %201 = arith.addf %200, %97 : vector<8x8xf32>
    %cst_61 = arith.constant dense<0xFF800000> : vector<8xf32>
    %202 = vector.multi_reduction <maximumf>, %201, %cst_61 [1] : vector<8x8xf32> to vector<8xf32>
    %203 = vector.shape_cast %202 : vector<8xf32> to vector<8x1xf32>
    %204 = vector.broadcast %203 : vector<8x1xf32> to vector<8x8xf32>
    %205 = arith.subf %201, %204 : vector<8x8xf32>
    %206 = math.exp %205 : vector<8x8xf32>
    %cst_62 = arith.constant dense<0.000000e+00> : vector<8xf32>
    %207 = vector.multi_reduction <add>, %206, %cst_62 [1] : vector<8x8xf32> to vector<8xf32>
    %208 = vector.shape_cast %207 : vector<8xf32> to vector<8x1xf32>
    %209 = tpu.reciprocal %208 {approx = true} : vector<8x1xf32> -> vector<8x1xf32>
    %210 = vector.broadcast %209 : vector<8x1xf32> to vector<8x8xf32>
    %211 = arith.mulf %206, %210 : vector<8x8xf32>
    %212 = arith.truncf %211 : vector<8x8xf32> to vector<8x8xbf16>
    %cst_63 = arith.constant dense<0.000000e+00> : vector<8x32xf32>
    %213 = tpu.matmul %212, %197, %cst_63 {dimension_numbers = #tpu.dot_dimension_numbers<[1], [0], [0], [1], [0, 0, 1, 1], [], []>} : vector<8x8xbf16>, vector<8x32xbf16>, vector<8x32xf32> -> vector<8x32xf32>
    %214 = arith.addf %191, %213 : vector<8x32xf32>
    %215 = vector.broadcast %76 : vector<1x32xf32> to vector<8x32xf32>
    %216 = arith.mulf %91, %215 : vector<8x32xf32>
    %217 = arith.truncf %216 : vector<8x32xf32> to vector<8x32xbf16>
    %218 = vector.broadcast %76 : vector<1x32xf32> to vector<8x32xf32>
    %219 = arith.mulf %93, %218 : vector<8x32xf32>
    %220 = arith.truncf %219 : vector<8x32xf32> to vector<8x32xbf16>
    %cst_64 = arith.constant dense<0.000000e+00> : vector<8x8xf32>
    %221 = tpu.matmul %217, %98, %cst_64 {dimension_numbers = #tpu.dot_dimension_numbers<[1], [1], [0], [0], [0, 0, 1, 0], [], []>} : vector<8x32xbf16>, vector<8x32xbf16>, vector<8x8xf32> -> vector<8x8xf32>
    %cst_65 = arith.constant 5.000000e-01 : f32
    %222 = vector.broadcast %cst_65 : f32 to vector<8x8xf32>
    %223 = arith.mulf %221, %222 : vector<8x8xf32>
    %224 = arith.addf %223, %97 : vector<8x8xf32>
    %cst_66 = arith.constant dense<0xFF800000> : vector<8xf32>
    %225 = vector.multi_reduction <maximumf>, %224, %cst_66 [1] : vector<8x8xf32> to vector<8xf32>
    %226 = vector.shape_cast %225 : vector<8xf32> to vector<8x1xf32>
    %227 = vector.broadcast %226 : vector<8x1xf32> to vector<8x8xf32>
    %228 = arith.subf %224, %227 : vector<8x8xf32>
    %229 = math.exp %228 : vector<8x8xf32>
    %cst_67 = arith.constant dense<0.000000e+00> : vector<8xf32>
    %230 = vector.multi_reduction <add>, %229, %cst_67 [1] : vector<8x8xf32> to vector<8xf32>
    %231 = vector.shape_cast %230 : vector<8xf32> to vector<8x1xf32>
    %232 = tpu.reciprocal %231 {approx = true} : vector<8x1xf32> -> vector<8x1xf32>
    %233 = vector.broadcast %232 : vector<8x1xf32> to vector<8x8xf32>
    %234 = arith.mulf %229, %233 : vector<8x8xf32>
    %235 = arith.truncf %234 : vector<8x8xf32> to vector<8x8xbf16>
    %cst_68 = arith.constant dense<0.000000e+00> : vector<8x32xf32>
    %236 = tpu.matmul %235, %220, %cst_68 {dimension_numbers = #tpu.dot_dimension_numbers<[1], [0], [0], [1], [0, 0, 1, 1], [], []>} : vector<8x8xbf16>, vector<8x32xbf16>, vector<8x32xf32> -> vector<8x32xf32>
    %237 = arith.addf %214, %236 : vector<8x32xf32>
    %238 = vector.broadcast %83 : vector<1x32xf32> to vector<8x32xf32>
    %239 = arith.mulf %91, %238 : vector<8x32xf32>
    %240 = arith.truncf %239 : vector<8x32xf32> to vector<8x32xbf16>
    %241 = vector.broadcast %83 : vector<1x32xf32> to vector<8x32xf32>
    %242 = arith.mulf %93, %241 : vector<8x32xf32>
    %243 = arith.truncf %242 : vector<8x32xf32> to vector<8x32xbf16>
    %cst_69 = arith.constant dense<0.000000e+00> : vector<8x8xf32>
    %244 = tpu.matmul %240, %98, %cst_69 {dimension_numbers = #tpu.dot_dimension_numbers<[1], [1], [0], [0], [0, 0, 1, 0], [], []>} : vector<8x32xbf16>, vector<8x32xbf16>, vector<8x8xf32> -> vector<8x8xf32>
    %cst_70 = arith.constant 5.000000e-01 : f32
    %245 = vector.broadcast %cst_70 : f32 to vector<8x8xf32>
    %246 = arith.mulf %244, %245 : vector<8x8xf32>
    %247 = arith.addf %246, %97 : vector<8x8xf32>
    %cst_71 = arith.constant dense<0xFF800000> : vector<8xf32>
    %248 = vector.multi_reduction <maximumf>, %247, %cst_71 [1] : vector<8x8xf32> to vector<8xf32>
    %249 = vector.shape_cast %248 : vector<8xf32> to vector<8x1xf32>
    %250 = vector.broadcast %249 : vector<8x1xf32> to vector<8x8xf32>
    %251 = arith.subf %247, %250 : vector<8x8xf32>
    %252 = math.exp %251 : vector<8x8xf32>
    %cst_72 = arith.constant dense<0.000000e+00> : vector<8xf32>
    %253 = vector.multi_reduction <add>, %252, %cst_72 [1] : vector<8x8xf32> to vector<8xf32>
    %254 = vector.shape_cast %253 : vector<8xf32> to vector<8x1xf32>
    %255 = tpu.reciprocal %254 {approx = true} : vector<8x1xf32> -> vector<8x1xf32>
    %256 = vector.broadcast %255 : vector<8x1xf32> to vector<8x8xf32>
    %257 = arith.mulf %252, %256 : vector<8x8xf32>
    %258 = arith.truncf %257 : vector<8x8xf32> to vector<8x8xbf16>
    %cst_73 = arith.constant dense<0.000000e+00> : vector<8x32xf32>
    %259 = tpu.matmul %258, %243, %cst_73 {dimension_numbers = #tpu.dot_dimension_numbers<[1], [0], [0], [1], [0, 0, 1, 1], [], []>} : vector<8x8xbf16>, vector<8x32xbf16>, vector<8x32xf32> -> vector<8x32xf32>
    %260 = arith.addf %237, %259 : vector<8x32xf32>
    %261 = vector.broadcast %90 : vector<1x32xf32> to vector<8x32xf32>
    %262 = arith.mulf %91, %261 : vector<8x32xf32>
    %263 = arith.truncf %262 : vector<8x32xf32> to vector<8x32xbf16>
    %264 = vector.broadcast %90 : vector<1x32xf32> to vector<8x32xf32>
    %265 = arith.mulf %93, %264 : vector<8x32xf32>
    %266 = arith.truncf %265 : vector<8x32xf32> to vector<8x32xbf16>
    %cst_74 = arith.constant dense<0.000000e+00> : vector<8x8xf32>
    %267 = tpu.matmul %263, %98, %cst_74 {dimension_numbers = #tpu.dot_dimension_numbers<[1], [1], [0], [0], [0, 0, 1, 0], [], []>} : vector<8x32xbf16>, vector<8x32xbf16>, vector<8x8xf32> -> vector<8x8xf32>
    %cst_75 = arith.constant 5.000000e-01 : f32
    %268 = vector.broadcast %cst_75 : f32 to vector<8x8xf32>
    %269 = arith.mulf %267, %268 : vector<8x8xf32>
    %270 = arith.addf %269, %97 : vector<8x8xf32>
    %cst_76 = arith.constant dense<0xFF800000> : vector<8xf32>
    %271 = vector.multi_reduction <maximumf>, %270, %cst_76 [1] : vector<8x8xf32> to vector<8xf32>
    %272 = vector.shape_cast %271 : vector<8xf32> to vector<8x1xf32>
    %273 = vector.broadcast %272 : vector<8x1xf32> to vector<8x8xf32>
    %274 = arith.subf %270, %273 : vector<8x8xf32>
    %275 = math.exp %274 : vector<8x8xf32>
    %cst_77 = arith.constant dense<0.000000e+00> : vector<8xf32>
    %276 = vector.multi_reduction <add>, %275, %cst_77 [1] : vector<8x8xf32> to vector<8xf32>
    %277 = vector.shape_cast %276 : vector<8xf32> to vector<8x1xf32>
    %278 = tpu.reciprocal %277 {approx = true} : vector<8x1xf32> -> vector<8x1xf32>
    %279 = vector.broadcast %278 : vector<8x1xf32> to vector<8x8xf32>
    %280 = arith.mulf %275, %279 : vector<8x8xf32>
    %281 = arith.truncf %280 : vector<8x8xf32> to vector<8x8xbf16>
    %cst_78 = arith.constant dense<0.000000e+00> : vector<8x32xf32>
    %282 = tpu.matmul %281, %266, %cst_78 {dimension_numbers = #tpu.dot_dimension_numbers<[1], [0], [0], [1], [0, 0, 1, 1], [], []>} : vector<8x8xbf16>, vector<8x32xbf16>, vector<8x32xf32> -> vector<8x32xf32>
    %283 = arith.addf %260, %282 : vector<8x32xf32>
    %284 = vector.extract_strided_slice %17 {offsets = [8, 0], sizes = [8, 32], strides = [1, 1]} : vector<16x32xf32> to vector<8x32xf32>
    %285 = vector.extract_strided_slice %22 {offsets = [8, 0], sizes = [8, 32], strides = [1, 1]} : vector<16x32xf32> to vector<8x32xf32>
    %286 = vector.extract_strided_slice %27 {offsets = [8, 0], sizes = [8, 32], strides = [1, 1]} : vector<16x32xf32> to vector<8x32xf32>
    %c1 = arith.constant 1 : index
    %c0_79 = arith.constant 0 : index
    %c0_80 = arith.constant 0 : index
    %287 = vector.load %arg3[%c1, %c0_79, %c0_80] : memref<2x1x8xf32, #tpu.memory_space<vmem>>, vector<1x1x8xf32>
    %288 = vector.shape_cast %287 : vector<1x1x8xf32> to vector<1x8xf32>
    %289 = vector.broadcast %288 : vector<1x8xf32> to vector<8x8xf32>
    %290 = arith.addf %33, %289 : vector<8x8xf32>
    %291 = arith.truncf %285 : vector<8x32xf32> to vector<8x32xbf16>
    %cst_81 = arith.constant 0.000000e+00 : f32
    %292 = vector.broadcast %cst_81 : f32 to vector<8x32xf32>
    %293 = vector.broadcast %41 : vector<1x32xf32> to vector<8x32xf32>
    %294 = arith.mulf %284, %293 : vector<8x32xf32>
    %295 = arith.truncf %294 : vector<8x32xf32> to vector<8x32xbf16>
    %296 = vector.broadcast %41 : vector<1x32xf32> to vector<8x32xf32>
    %297 = arith.mulf %286, %296 : vector<8x32xf32>
    %298 = arith.truncf %297 : vector<8x32xf32> to vector<8x32xbf16>
    %cst_82 = arith.constant dense<0.000000e+00> : vector<8x8xf32>
    %299 = tpu.matmul %295, %291, %cst_82 {dimension_numbers = #tpu.dot_dimension_numbers<[1], [1], [0], [0], [0, 0, 1, 0], [], []>} : vector<8x32xbf16>, vector<8x32xbf16>, vector<8x8xf32> -> vector<8x8xf32>
    %cst_83 = arith.constant 5.000000e-01 : f32
    %300 = vector.broadcast %cst_83 : f32 to vector<8x8xf32>
    %301 = arith.mulf %299, %300 : vector<8x8xf32>
    %302 = arith.addf %301, %290 : vector<8x8xf32>
    %cst_84 = arith.constant dense<0xFF800000> : vector<8xf32>
    %303 = vector.multi_reduction <maximumf>, %302, %cst_84 [1] : vector<8x8xf32> to vector<8xf32>
    %304 = vector.shape_cast %303 : vector<8xf32> to vector<8x1xf32>
    %305 = vector.broadcast %304 : vector<8x1xf32> to vector<8x8xf32>
    %306 = arith.subf %302, %305 : vector<8x8xf32>
    %307 = math.exp %306 : vector<8x8xf32>
    %cst_85 = arith.constant dense<0.000000e+00> : vector<8xf32>
    %308 = vector.multi_reduction <add>, %307, %cst_85 [1] : vector<8x8xf32> to vector<8xf32>
    %309 = vector.shape_cast %308 : vector<8xf32> to vector<8x1xf32>
    %310 = tpu.reciprocal %309 {approx = true} : vector<8x1xf32> -> vector<8x1xf32>
    %311 = vector.broadcast %310 : vector<8x1xf32> to vector<8x8xf32>
    %312 = arith.mulf %307, %311 : vector<8x8xf32>
    %313 = arith.truncf %312 : vector<8x8xf32> to vector<8x8xbf16>
    %cst_86 = arith.constant dense<0.000000e+00> : vector<8x32xf32>
    %314 = tpu.matmul %313, %298, %cst_86 {dimension_numbers = #tpu.dot_dimension_numbers<[1], [0], [0], [1], [0, 0, 1, 1], [], []>} : vector<8x8xbf16>, vector<8x32xbf16>, vector<8x32xf32> -> vector<8x32xf32>
    %315 = arith.addf %292, %314 : vector<8x32xf32>
    %316 = vector.broadcast %48 : vector<1x32xf32> to vector<8x32xf32>
    %317 = arith.mulf %284, %316 : vector<8x32xf32>
    %318 = arith.truncf %317 : vector<8x32xf32> to vector<8x32xbf16>
    %319 = vector.broadcast %48 : vector<1x32xf32> to vector<8x32xf32>
    %320 = arith.mulf %286, %319 : vector<8x32xf32>
    %321 = arith.truncf %320 : vector<8x32xf32> to vector<8x32xbf16>
    %cst_87 = arith.constant dense<0.000000e+00> : vector<8x8xf32>
    %322 = tpu.matmul %318, %291, %cst_87 {dimension_numbers = #tpu.dot_dimension_numbers<[1], [1], [0], [0], [0, 0, 1, 0], [], []>} : vector<8x32xbf16>, vector<8x32xbf16>, vector<8x8xf32> -> vector<8x8xf32>
    %cst_88 = arith.constant 5.000000e-01 : f32
    %323 = vector.broadcast %cst_88 : f32 to vector<8x8xf32>
    %324 = arith.mulf %322, %323 : vector<8x8xf32>
    %325 = arith.addf %324, %290 : vector<8x8xf32>
    %cst_89 = arith.constant dense<0xFF800000> : vector<8xf32>
    %326 = vector.multi_reduction <maximumf>, %325, %cst_89 [1] : vector<8x8xf32> to vector<8xf32>
    %327 = vector.shape_cast %326 : vector<8xf32> to vector<8x1xf32>
    %328 = vector.broadcast %327 : vector<8x1xf32> to vector<8x8xf32>
    %329 = arith.subf %325, %328 : vector<8x8xf32>
    %330 = math.exp %329 : vector<8x8xf32>
    %cst_90 = arith.constant dense<0.000000e+00> : vector<8xf32>
    %331 = vector.multi_reduction <add>, %330, %cst_90 [1] : vector<8x8xf32> to vector<8xf32>
    %332 = vector.shape_cast %331 : vector<8xf32> to vector<8x1xf32>
    %333 = tpu.reciprocal %332 {approx = true} : vector<8x1xf32> -> vector<8x1xf32>
    %334 = vector.broadcast %333 : vector<8x1xf32> to vector<8x8xf32>
    %335 = arith.mulf %330, %334 : vector<8x8xf32>
    %336 = arith.truncf %335 : vector<8x8xf32> to vector<8x8xbf16>
    %cst_91 = arith.constant dense<0.000000e+00> : vector<8x32xf32>
    %337 = tpu.matmul %336, %321, %cst_91 {dimension_numbers = #tpu.dot_dimension_numbers<[1], [0], [0], [1], [0, 0, 1, 1], [], []>} : vector<8x8xbf16>, vector<8x32xbf16>, vector<8x32xf32> -> vector<8x32xf32>
    %338 = arith.addf %315, %337 : vector<8x32xf32>
    %339 = vector.broadcast %55 : vector<1x32xf32> to vector<8x32xf32>
    %340 = arith.mulf %284, %339 : vector<8x32xf32>
    %341 = arith.truncf %340 : vector<8x32xf32> to vector<8x32xbf16>
    %342 = vector.broadcast %55 : vector<1x32xf32> to vector<8x32xf32>
    %343 = arith.mulf %286, %342 : vector<8x32xf32>
    %344 = arith.truncf %343 : vector<8x32xf32> to vector<8x32xbf16>
    %cst_92 = arith.constant dense<0.000000e+00> : vector<8x8xf32>
    %345 = tpu.matmul %341, %291, %cst_92 {dimension_numbers = #tpu.dot_dimension_numbers<[1], [1], [0], [0], [0, 0, 1, 0], [], []>} : vector<8x32xbf16>, vector<8x32xbf16>, vector<8x8xf32> -> vector<8x8xf32>
    %cst_93 = arith.constant 5.000000e-01 : f32
    %346 = vector.broadcast %cst_93 : f32 to vector<8x8xf32>
    %347 = arith.mulf %345, %346 : vector<8x8xf32>
    %348 = arith.addf %347, %290 : vector<8x8xf32>
    %cst_94 = arith.constant dense<0xFF800000> : vector<8xf32>
    %349 = vector.multi_reduction <maximumf>, %348, %cst_94 [1] : vector<8x8xf32> to vector<8xf32>
    %350 = vector.shape_cast %349 : vector<8xf32> to vector<8x1xf32>
    %351 = vector.broadcast %350 : vector<8x1xf32> to vector<8x8xf32>
    %352 = arith.subf %348, %351 : vector<8x8xf32>
    %353 = math.exp %352 : vector<8x8xf32>
    %cst_95 = arith.constant dense<0.000000e+00> : vector<8xf32>
    %354 = vector.multi_reduction <add>, %353, %cst_95 [1] : vector<8x8xf32> to vector<8xf32>
    %355 = vector.shape_cast %354 : vector<8xf32> to vector<8x1xf32>
    %356 = tpu.reciprocal %355 {approx = true} : vector<8x1xf32> -> vector<8x1xf32>
    %357 = vector.broadcast %356 : vector<8x1xf32> to vector<8x8xf32>
    %358 = arith.mulf %353, %357 : vector<8x8xf32>
    %359 = arith.truncf %358 : vector<8x8xf32> to vector<8x8xbf16>
    %cst_96 = arith.constant dense<0.000000e+00> : vector<8x32xf32>
    %360 = tpu.matmul %359, %344, %cst_96 {dimension_numbers = #tpu.dot_dimension_numbers<[1], [0], [0], [1], [0, 0, 1, 1], [], []>} : vector<8x8xbf16>, vector<8x32xbf16>, vector<8x32xf32> -> vector<8x32xf32>
    %361 = arith.addf %338, %360 : vector<8x32xf32>
    %362 = vector.broadcast %62 : vector<1x32xf32> to vector<8x32xf32>
    %363 = arith.mulf %284, %362 : vector<8x32xf32>
    %364 = arith.truncf %363 : vector<8x32xf32> to vector<8x32xbf16>
    %365 = vector.broadcast %62 : vector<1x32xf32> to vector<8x32xf32>
    %366 = arith.mulf %286, %365 : vector<8x32xf32>
    %367 = arith.truncf %366 : vector<8x32xf32> to vector<8x32xbf16>
    %cst_97 = arith.constant dense<0.000000e+00> : vector<8x8xf32>
    %368 = tpu.matmul %364, %291, %cst_97 {dimension_numbers = #tpu.dot_dimension_numbers<[1], [1], [0], [0], [0, 0, 1, 0], [], []>} : vector<8x32xbf16>, vector<8x32xbf16>, vector<8x8xf32> -> vector<8x8xf32>
    %cst_98 = arith.constant 5.000000e-01 : f32
    %369 = vector.broadcast %cst_98 : f32 to vector<8x8xf32>
    %370 = arith.mulf %368, %369 : vector<8x8xf32>
    %371 = arith.addf %370, %290 : vector<8x8xf32>
    %cst_99 = arith.constant dense<0xFF800000> : vector<8xf32>
    %372 = vector.multi_reduction <maximumf>, %371, %cst_99 [1] : vector<8x8xf32> to vector<8xf32>
    %373 = vector.shape_cast %372 : vector<8xf32> to vector<8x1xf32>
    %374 = vector.broadcast %373 : vector<8x1xf32> to vector<8x8xf32>
    %375 = arith.subf %371, %374 : vector<8x8xf32>
    %376 = math.exp %375 : vector<8x8xf32>
    %cst_100 = arith.constant dense<0.000000e+00> : vector<8xf32>
    %377 = vector.multi_reduction <add>, %376, %cst_100 [1] : vector<8x8xf32> to vector<8xf32>
    %378 = vector.shape_cast %377 : vector<8xf32> to vector<8x1xf32>
    %379 = tpu.reciprocal %378 {approx = true} : vector<8x1xf32> -> vector<8x1xf32>
    %380 = vector.broadcast %379 : vector<8x1xf32> to vector<8x8xf32>
    %381 = arith.mulf %376, %380 : vector<8x8xf32>
    %382 = arith.truncf %381 : vector<8x8xf32> to vector<8x8xbf16>
    %cst_101 = arith.constant dense<0.000000e+00> : vector<8x32xf32>
    %383 = tpu.matmul %382, %367, %cst_101 {dimension_numbers = #tpu.dot_dimension_numbers<[1], [0], [0], [1], [0, 0, 1, 1], [], []>} : vector<8x8xbf16>, vector<8x32xbf16>, vector<8x32xf32> -> vector<8x32xf32>
    %384 = arith.addf %361, %383 : vector<8x32xf32>
    %385 = vector.broadcast %69 : vector<1x32xf32> to vector<8x32xf32>
    %386 = arith.mulf %284, %385 : vector<8x32xf32>
    %387 = arith.truncf %386 : vector<8x32xf32> to vector<8x32xbf16>
    %388 = vector.broadcast %69 : vector<1x32xf32> to vector<8x32xf32>
    %389 = arith.mulf %286, %388 : vector<8x32xf32>
    %390 = arith.truncf %389 : vector<8x32xf32> to vector<8x32xbf16>
    %cst_102 = arith.constant dense<0.000000e+00> : vector<8x8xf32>
    %391 = tpu.matmul %387, %291, %cst_102 {dimension_numbers = #tpu.dot_dimension_numbers<[1], [1], [0], [0], [0, 0, 1, 0], [], []>} : vector<8x32xbf16>, vector<8x32xbf16>, vector<8x8xf32> -> vector<8x8xf32>
    %cst_103 = arith.constant 5.000000e-01 : f32
    %392 = vector.broadcast %cst_103 : f32 to vector<8x8xf32>
    %393 = arith.mulf %391, %392 : vector<8x8xf32>
    %394 = arith.addf %393, %290 : vector<8x8xf32>
    %cst_104 = arith.constant dense<0xFF800000> : vector<8xf32>
    %395 = vector.multi_reduction <maximumf>, %394, %cst_104 [1] : vector<8x8xf32> to vector<8xf32>
    %396 = vector.shape_cast %395 : vector<8xf32> to vector<8x1xf32>
    %397 = vector.broadcast %396 : vector<8x1xf32> to vector<8x8xf32>
    %398 = arith.subf %394, %397 : vector<8x8xf32>
    %399 = math.exp %398 : vector<8x8xf32>
    %cst_105 = arith.constant dense<0.000000e+00> : vector<8xf32>
    %400 = vector.multi_reduction <add>, %399, %cst_105 [1] : vector<8x8xf32> to vector<8xf32>
    %401 = vector.shape_cast %400 : vector<8xf32> to vector<8x1xf32>
    %402 = tpu.reciprocal %401 {approx = true} : vector<8x1xf32> -> vector<8x1xf32>
    %403 = vector.broadcast %402 : vector<8x1xf32> to vector<8x8xf32>
    %404 = arith.mulf %399, %403 : vector<8x8xf32>
    %405 = arith.truncf %404 : vector<8x8xf32> to vector<8x8xbf16>
    %cst_106 = arith.constant dense<0.000000e+00> : vector<8x32xf32>
    %406 = tpu.matmul %405, %390, %cst_106 {dimension_numbers = #tpu.dot_dimension_numbers<[1], [0], [0], [1], [0, 0, 1, 1], [], []>} : vector<8x8xbf16>, vector<8x32xbf16>, vector<8x32xf32> -> vector<8x32xf32>
    %407 = arith.addf %384, %406 : vector<8x32xf32>
    %408 = vector.broadcast %76 : vector<1x32xf32> to vector<8x32xf32>
    %409 = arith.mulf %284, %408 : vector<8x32xf32>
    %410 = arith.truncf %409 : vector<8x32xf32> to vector<8x32xbf16>
    %411 = vector.broadcast %76 : vector<1x32xf32> to vector<8x32xf32>
    %412 = arith.mulf %286, %411 : vector<8x32xf32>
    %413 = arith.truncf %412 : vector<8x32xf32> to vector<8x32xbf16>
    %cst_107 = arith.constant dense<0.000000e+00> : vector<8x8xf32>
    %414 = tpu.matmul %410, %291, %cst_107 {dimension_numbers = #tpu.dot_dimension_numbers<[1], [1], [0], [0], [0, 0, 1, 0], [], []>} : vector<8x32xbf16>, vector<8x32xbf16>, vector<8x8xf32> -> vector<8x8xf32>
    %cst_108 = arith.constant 5.000000e-01 : f32
    %415 = vector.broadcast %cst_108 : f32 to vector<8x8xf32>
    %416 = arith.mulf %414, %415 : vector<8x8xf32>
    %417 = arith.addf %416, %290 : vector<8x8xf32>
    %cst_109 = arith.constant dense<0xFF800000> : vector<8xf32>
    %418 = vector.multi_reduction <maximumf>, %417, %cst_109 [1] : vector<8x8xf32> to vector<8xf32>
    %419 = vector.shape_cast %418 : vector<8xf32> to vector<8x1xf32>
    %420 = vector.broadcast %419 : vector<8x1xf32> to vector<8x8xf32>
    %421 = arith.subf %417, %420 : vector<8x8xf32>
    %422 = math.exp %421 : vector<8x8xf32>
    %cst_110 = arith.constant dense<0.000000e+00> : vector<8xf32>
    %423 = vector.multi_reduction <add>, %422, %cst_110 [1] : vector<8x8xf32> to vector<8xf32>
    %424 = vector.shape_cast %423 : vector<8xf32> to vector<8x1xf32>
    %425 = tpu.reciprocal %424 {approx = true} : vector<8x1xf32> -> vector<8x1xf32>
    %426 = vector.broadcast %425 : vector<8x1xf32> to vector<8x8xf32>
    %427 = arith.mulf %422, %426 : vector<8x8xf32>
    %428 = arith.truncf %427 : vector<8x8xf32> to vector<8x8xbf16>
    %cst_111 = arith.constant dense<0.000000e+00> : vector<8x32xf32>
    %429 = tpu.matmul %428, %413, %cst_111 {dimension_numbers = #tpu.dot_dimension_numbers<[1], [0], [0], [1], [0, 0, 1, 1], [], []>} : vector<8x8xbf16>, vector<8x32xbf16>, vector<8x32xf32> -> vector<8x32xf32>
    %430 = arith.addf %407, %429 : vector<8x32xf32>
    %431 = vector.broadcast %83 : vector<1x32xf32> to vector<8x32xf32>
    %432 = arith.mulf %284, %431 : vector<8x32xf32>
    %433 = arith.truncf %432 : vector<8x32xf32> to vector<8x32xbf16>
    %434 = vector.broadcast %83 : vector<1x32xf32> to vector<8x32xf32>
    %435 = arith.mulf %286, %434 : vector<8x32xf32>
    %436 = arith.truncf %435 : vector<8x32xf32> to vector<8x32xbf16>
    %cst_112 = arith.constant dense<0.000000e+00> : vector<8x8xf32>
    %437 = tpu.matmul %433, %291, %cst_112 {dimension_numbers = #tpu.dot_dimension_numbers<[1], [1], [0], [0], [0, 0, 1, 0], [], []>} : vector<8x32xbf16>, vector<8x32xbf16>, vector<8x8xf32> -> vector<8x8xf32>
    %cst_113 = arith.constant 5.000000e-01 : f32
    %438 = vector.broadcast %cst_113 : f32 to vector<8x8xf32>
    %439 = arith.mulf %437, %438 : vector<8x8xf32>
    %440 = arith.addf %439, %290 : vector<8x8xf32>
    %cst_114 = arith.constant dense<0xFF800000> : vector<8xf32>
    %441 = vector.multi_reduction <maximumf>, %440, %cst_114 [1] : vector<8x8xf32> to vector<8xf32>
    %442 = vector.shape_cast %441 : vector<8xf32> to vector<8x1xf32>
    %443 = vector.broadcast %442 : vector<8x1xf32> to vector<8x8xf32>
    %444 = arith.subf %440, %443 : vector<8x8xf32>
    %445 = math.exp %444 : vector<8x8xf32>
    %cst_115 = arith.constant dense<0.000000e+00> : vector<8xf32>
    %446 = vector.multi_reduction <add>, %445, %cst_115 [1] : vector<8x8xf32> to vector<8xf32>
    %447 = vector.shape_cast %446 : vector<8xf32> to vector<8x1xf32>
    %448 = tpu.reciprocal %447 {approx = true} : vector<8x1xf32> -> vector<8x1xf32>
    %449 = vector.broadcast %448 : vector<8x1xf32> to vector<8x8xf32>
    %450 = arith.mulf %445, %449 : vector<8x8xf32>
    %451 = arith.truncf %450 : vector<8x8xf32> to vector<8x8xbf16>
    %cst_116 = arith.constant dense<0.000000e+00> : vector<8x32xf32>
    %452 = tpu.matmul %451, %436, %cst_116 {dimension_numbers = #tpu.dot_dimension_numbers<[1], [0], [0], [1], [0, 0, 1, 1], [], []>} : vector<8x8xbf16>, vector<8x32xbf16>, vector<8x32xf32> -> vector<8x32xf32>
    %453 = arith.addf %430, %452 : vector<8x32xf32>
    %454 = vector.broadcast %90 : vector<1x32xf32> to vector<8x32xf32>
    %455 = arith.mulf %284, %454 : vector<8x32xf32>
    %456 = arith.truncf %455 : vector<8x32xf32> to vector<8x32xbf16>
    %457 = vector.broadcast %90 : vector<1x32xf32> to vector<8x32xf32>
    %458 = arith.mulf %286, %457 : vector<8x32xf32>
    %459 = arith.truncf %458 : vector<8x32xf32> to vector<8x32xbf16>
    %cst_117 = arith.constant dense<0.000000e+00> : vector<8x8xf32>
    %460 = tpu.matmul %456, %291, %cst_117 {dimension_numbers = #tpu.dot_dimension_numbers<[1], [1], [0], [0], [0, 0, 1, 0], [], []>} : vector<8x32xbf16>, vector<8x32xbf16>, vector<8x8xf32> -> vector<8x8xf32>
    %cst_118 = arith.constant 5.000000e-01 : f32
    %461 = vector.broadcast %cst_118 : f32 to vector<8x8xf32>
    %462 = arith.mulf %460, %461 : vector<8x8xf32>
    %463 = arith.addf %462, %290 : vector<8x8xf32>
    %cst_119 = arith.constant dense<0xFF800000> : vector<8xf32>
    %464 = vector.multi_reduction <maximumf>, %463, %cst_119 [1] : vector<8x8xf32> to vector<8xf32>
    %465 = vector.shape_cast %464 : vector<8xf32> to vector<8x1xf32>
    %466 = vector.broadcast %465 : vector<8x1xf32> to vector<8x8xf32>
    %467 = arith.subf %463, %466 : vector<8x8xf32>
    %468 = math.exp %467 : vector<8x8xf32>
    %cst_120 = arith.constant dense<0.000000e+00> : vector<8xf32>
    %469 = vector.multi_reduction <add>, %468, %cst_120 [1] : vector<8x8xf32> to vector<8xf32>
    %470 = vector.shape_cast %469 : vector<8xf32> to vector<8x1xf32>
    %471 = tpu.reciprocal %470 {approx = true} : vector<8x1xf32> -> vector<8x1xf32>
    %472 = vector.broadcast %471 : vector<8x1xf32> to vector<8x8xf32>
    %473 = arith.mulf %468, %472 : vector<8x8xf32>
    %474 = arith.truncf %473 : vector<8x8xf32> to vector<8x8xbf16>
    %cst_121 = arith.constant dense<0.000000e+00> : vector<8x32xf32>
    %475 = tpu.matmul %474, %459, %cst_121 {dimension_numbers = #tpu.dot_dimension_numbers<[1], [0], [0], [1], [0, 0, 1, 1], [], []>} : vector<8x8xbf16>, vector<8x32xbf16>, vector<8x32xf32> -> vector<8x32xf32>
    %476 = arith.addf %453, %475 : vector<8x32xf32>
    %477 = tpu.concatenate %283, %476 in 0 : vector<8x32xf32>, vector<8x32xf32> -> vector<16x32xf32>
    %478 = arith.truncf %477 : vector<16x32xf32> to vector<16x32xbf16>
    %cst_122 = arith.constant dense<0.000000e+00> : vector<16x32xf32>
    %479 = tpu.matmul %478, %11, %cst_122 {dimension_numbers = #tpu.dot_dimension_numbers<[1], [0], [0], [1], [0, 0, 1, 1], [], []>} : vector<16x32xbf16>, vector<32x32xbf16>, vector<16x32xf32> -> vector<16x32xf32>
    %c0_123 = arith.constant 0 : index
    %c0_124 = arith.constant 0 : index
    %c0_125 = arith.constant 0 : index
    %480 = vector.load %arg13[%c0_123, %c0_124, %c0_125] : memref<1x1x32xf32, #tpu.memory_space<vmem>>, vector<1x1x32xf32>
    %481 = vector.shape_cast %480 : vector<1x1x32xf32> to vector<1x32xf32>
    %482 = vector.broadcast %481 : vector<1x32xf32> to vector<16x32xf32>
    %483 = arith.addf %479, %482 : vector<16x32xf32>
    %484 = arith.addf %3, %483 : vector<16x32xf32>
    %c0_126 = arith.constant 0 : index
    %c0_127 = arith.constant 0 : index
    %c0_128 = arith.constant 0 : index
    %485 = vector.load %arg14[%c0_126, %c0_127, %c0_128] : memref<1x1x32xf32, #tpu.memory_space<vmem>>, vector<1x1x32xf32>
    %486 = vector.shape_cast %485 : vector<1x1x32xf32> to vector<1x32xf32>
    %c0_129 = arith.constant 0 : index
    %c0_130 = arith.constant 0 : index
    %c0_131 = arith.constant 0 : index
    %487 = vector.load %arg15[%c0_129, %c0_130, %c0_131] : memref<1x1x32xf32, #tpu.memory_space<vmem>>, vector<1x1x32xf32>
    %488 = vector.shape_cast %487 : vector<1x1x32xf32> to vector<1x32xf32>
    %cst_132 = arith.constant dense<0.000000e+00> : vector<16xf32>
    %489 = vector.multi_reduction <add>, %484, %cst_132 [1] : vector<16x32xf32> to vector<16xf32>
    %490 = vector.shape_cast %489 : vector<16xf32> to vector<16x1xf32>
    %cst_133 = arith.constant 3.200000e+01 : f32
    %491 = vector.broadcast %cst_133 : f32 to vector<16x1xf32>
    %492 = arith.divf %490, %491 : vector<16x1xf32>
    %493 = vector.broadcast %492 : vector<16x1xf32> to vector<16x32xf32>
    %494 = arith.subf %484, %493 : vector<16x32xf32>
    %495 = arith.mulf %494, %494 : vector<16x32xf32>
    %cst_134 = arith.constant dense<0.000000e+00> : vector<16xf32>
    %496 = vector.multi_reduction <add>, %495, %cst_134 [1] : vector<16x32xf32> to vector<16xf32>
    %497 = vector.shape_cast %496 : vector<16xf32> to vector<16x1xf32>
    %cst_135 = arith.constant 3.200000e+01 : f32
    %498 = vector.broadcast %cst_135 : f32 to vector<16x1xf32>
    %499 = arith.divf %497, %498 : vector<16x1xf32>
    %cst_136 = arith.constant 9.99999974E-6 : f32
    %500 = vector.broadcast %cst_136 : f32 to vector<16x1xf32>
    %501 = arith.addf %499, %500 : vector<16x1xf32>
    %502 = math.rsqrt %501 : vector<16x1xf32>
    %503 = vector.broadcast %502 : vector<16x1xf32> to vector<16x32xf32>
    %504 = arith.mulf %494, %503 : vector<16x32xf32>
    %505 = vector.broadcast %486 : vector<1x32xf32> to vector<16x32xf32>
    %506 = arith.mulf %504, %505 : vector<16x32xf32>
    %507 = vector.broadcast %488 : vector<1x32xf32> to vector<16x32xf32>
    %508 = arith.addf %506, %507 : vector<16x32xf32>
    %509 = arith.truncf %508 : vector<16x32xf32> to vector<16x32xbf16>
    %c0_137 = arith.constant 0 : index
    %c0_138 = arith.constant 0 : index
    %c0_139 = arith.constant 0 : index
    %510 = vector.load %arg16[%c0_137, %c0_138, %c0_139] : memref<1x32x2048xbf16, #tpu.memory_space<vmem>>, vector<1x32x2048xbf16>
    %511 = vector.shape_cast %510 : vector<1x32x2048xbf16> to vector<32x2048xbf16>
    %cst_140 = arith.constant dense<0.000000e+00> : vector<16x2048xf32>
    %512 = tpu.matmul %509, %511, %cst_140 {dimension_numbers = #tpu.dot_dimension_numbers<[1], [0], [0], [1], [0, 0, 1, 1], [], []>} : vector<16x32xbf16>, vector<32x2048xbf16>, vector<16x2048xf32> -> vector<16x2048xf32>
    %c0_141 = arith.constant 0 : index
    %c0_142 = arith.constant 0 : index
    %c0_143 = arith.constant 0 : index
    %513 = vector.load %arg17[%c0_141, %c0_142, %c0_143] : memref<1x1x2048xf32, #tpu.memory_space<vmem>>, vector<1x1x2048xf32>
    %514 = vector.shape_cast %513 : vector<1x1x2048xf32> to vector<1x2048xf32>
    %515 = vector.broadcast %514 : vector<1x2048xf32> to vector<16x2048xf32>
    %516 = arith.addf %512, %515 : vector<16x2048xf32>
    %cst_144 = arith.constant 0.000000e+00 : f32
    %517 = vector.broadcast %cst_144 : f32 to vector<16x2048xf32>
    %518 = arith.maximumf %516, %517 : vector<16x2048xf32>
    %519 = arith.truncf %518 : vector<16x2048xf32> to vector<16x2048xbf16>
    %c0_145 = arith.constant 0 : index
    %c0_146 = arith.constant 0 : index
    %c0_147 = arith.constant 0 : index
    %520 = vector.load %arg18[%c0_145, %c0_146, %c0_147] : memref<1x2048x32xbf16, #tpu.memory_space<vmem>>, vector<1x2048x32xbf16>
    %521 = vector.shape_cast %520 : vector<1x2048x32xbf16> to vector<2048x32xbf16>
    %cst_148 = arith.constant dense<0.000000e+00> : vector<16x32xf32>
    %522 = tpu.matmul %519, %521, %cst_148 {dimension_numbers = #tpu.dot_dimension_numbers<[1], [0], [0], [1], [0, 0, 1, 1], [], []>} : vector<16x2048xbf16>, vector<2048x32xbf16>, vector<16x32xf32> -> vector<16x32xf32>
    %c0_149 = arith.constant 0 : index
    %c0_150 = arith.constant 0 : index
    %c0_151 = arith.constant 0 : index
    %523 = vector.load %arg19[%c0_149, %c0_150, %c0_151] : memref<1x1x32xf32, #tpu.memory_space<vmem>>, vector<1x1x32xf32>
    %524 = vector.shape_cast %523 : vector<1x1x32xf32> to vector<1x32xf32>
    %525 = vector.broadcast %524 : vector<1x32xf32> to vector<16x32xf32>
    %526 = arith.addf %522, %525 : vector<16x32xf32>
    %527 = arith.addf %508, %526 : vector<16x32xf32>
    %c0_152 = arith.constant 0 : index
    %c0_153 = arith.constant 0 : index
    %c0_154 = arith.constant 0 : index
    %528 = vector.load %arg20[%c0_152, %c0_153, %c0_154] : memref<1x1x32xf32, #tpu.memory_space<vmem>>, vector<1x1x32xf32>
    %529 = vector.shape_cast %528 : vector<1x1x32xf32> to vector<1x32xf32>
    %c0_155 = arith.constant 0 : index
    %c0_156 = arith.constant 0 : index
    %c0_157 = arith.constant 0 : index
    %530 = vector.load %arg21[%c0_155, %c0_156, %c0_157] : memref<1x1x32xf32, #tpu.memory_space<vmem>>, vector<1x1x32xf32>
    %531 = vector.shape_cast %530 : vector<1x1x32xf32> to vector<1x32xf32>
    %cst_158 = arith.constant dense<0.000000e+00> : vector<16xf32>
    %532 = vector.multi_reduction <add>, %527, %cst_158 [1] : vector<16x32xf32> to vector<16xf32>
    %533 = vector.shape_cast %532 : vector<16xf32> to vector<16x1xf32>
    %cst_159 = arith.constant 3.200000e+01 : f32
    %534 = vector.broadcast %cst_159 : f32 to vector<16x1xf32>
    %535 = arith.divf %533, %534 : vector<16x1xf32>
    %536 = vector.broadcast %535 : vector<16x1xf32> to vector<16x32xf32>
    %537 = arith.subf %527, %536 : vector<16x32xf32>
    %538 = arith.mulf %537, %537 : vector<16x32xf32>
    %cst_160 = arith.constant dense<0.000000e+00> : vector<16xf32>
    %539 = vector.multi_reduction <add>, %538, %cst_160 [1] : vector<16x32xf32> to vector<16xf32>
    %540 = vector.shape_cast %539 : vector<16xf32> to vector<16x1xf32>
    %cst_161 = arith.constant 3.200000e+01 : f32
    %541 = vector.broadcast %cst_161 : f32 to vector<16x1xf32>
    %542 = arith.divf %540, %541 : vector<16x1xf32>
    %cst_162 = arith.constant 9.99999974E-6 : f32
    %543 = vector.broadcast %cst_162 : f32 to vector<16x1xf32>
    %544 = arith.addf %542, %543 : vector<16x1xf32>
    %545 = math.rsqrt %544 : vector<16x1xf32>
    %546 = vector.broadcast %545 : vector<16x1xf32> to vector<16x32xf32>
    %547 = arith.mulf %537, %546 : vector<16x32xf32>
    %548 = vector.broadcast %529 : vector<1x32xf32> to vector<16x32xf32>
    %549 = arith.mulf %547, %548 : vector<16x32xf32>
    %550 = vector.broadcast %531 : vector<1x32xf32> to vector<16x32xf32>
    %551 = arith.addf %549, %550 : vector<16x32xf32>
    %c0_163 = arith.constant 0 : index
    %c0_164 = arith.constant 0 : index
    %552 = vector.load %arg24[%c0_163, %c0_164] : memref<16x32xf32, #tpu.memory_space<vmem>>, vector<16x32xf32>
    tpu.vector_store %arg24[%c0_163, %c0_164], %551 {strides = array<i32>} : memref<16x32xf32, #tpu.memory_space<vmem>>, vector<16x32xf32>,
    %c2_i32 = arith.constant 2 : i32
    %553 = arith.cmpi eq, %arg1, %c2_i32 : i32
    %554 = arith.extui %553 : i1 to i32
    %c0_i32_165 = arith.constant 0 : i32
    %555 = arith.cmpi ne, %554, %c0_i32_165 : i32
    scf.if %555 {
      %556 = arith.truncf %551 : vector<16x32xf32> to vector<16x32xbf16>
      %c0_166 = arith.constant 0 : index
      %c0_167 = arith.constant 0 : index
      %557 = vector.load %arg22[%c0_166, %c0_167] : memref<32x384xbf16, #tpu.memory_space<vmem>>, vector<32x384xbf16>
      %cst_168 = arith.constant dense<0.000000e+00> : vector<16x384xf32>
      %558 = tpu.matmul %556, %557, %cst_168 {dimension_numbers = #tpu.dot_dimension_numbers<[1], [0], [0], [1], [0, 0, 1, 1], [], []>} : vector<16x32xbf16>, vector<32x384xbf16>, vector<16x384xf32> -> vector<16x384xf32>
      %c0_169 = arith.constant 0 : index
      %c0_170 = arith.constant 0 : index
      %559 = vector.load %arg23[%c0_169, %c0_170] : memref<16x384xf32, #tpu.memory_space<vmem>>, vector<16x384xf32>
      tpu.vector_store %arg23[%c0_169, %c0_170], %558 {strides = array<i32>} : memref<16x384xf32, #tpu.memory_space<vmem>>, vector<16x384xf32>,
    } else {
    }
    return
  }
  func.func @transform_0(%arg0: i32, %arg1: i32) -> (i32, i32) {
    %c0_i32 = arith.constant 0 : i32
    %c0_i32_0 = arith.constant 0 : i32
    return %arg0, %c0_i32 : i32, i32
  }
  func.func @transform_1(%arg0: i32, %arg1: i32) -> (i32, i32, i32) {
    %c0_i32 = arith.constant 0 : i32
    %c0_i32_0 = arith.constant 0 : i32
    %c0_i32_1 = arith.constant 0 : i32
    return %arg0, %c0_i32, %c0_i32_0 : i32, i32, i32
  }
  func.func @transform_2(%arg0: i32, %arg1: i32) -> (i32, i32) {
    %c0_i32 = arith.constant 0 : i32
    %c0_i32_0 = arith.constant 0 : i32
    %c0_i32_1 = arith.constant 0 : i32
    return %c0_i32, %c0_i32_0 : i32, i32
  }
  func.func @transform_3(%arg0: i32, %arg1: i32) -> (i32, i32) {
    %c0_i32 = arith.constant 0 : i32
    %c0_i32_0 = arith.constant 0 : i32
    %c0_i32_1 = arith.constant 0 : i32
    return %c0_i32, %c0_i32_0 : i32, i32
  }
  func.func @transform_4(%arg0: i32, %arg1: i32) -> (i32, i32, i32) {
    %c0_i32 = arith.constant 0 : i32
    %c0_i32_0 = arith.constant 0 : i32
    %c0_i32_1 = arith.constant 0 : i32
    return %arg1, %c0_i32, %c0_i32_0 : i32, i32, i32
  }
  func.func @transform_5(%arg0: i32, %arg1: i32) -> (i32, i32, i32) {
    %c0_i32 = arith.constant 0 : i32
    %c0_i32_0 = arith.constant 0 : i32
    %c0_i32_1 = arith.constant 0 : i32
    return %arg1, %c0_i32, %c0_i32_0 : i32, i32, i32
  }
  func.func @transform_6(%arg0: i32, %arg1: i32) -> (i32, i32, i32) {
    %c0_i32 = arith.constant 0 : i32
    %c0_i32_0 = arith.constant 0 : i32
    %c0_i32_1 = arith.constant 0 : i32
    return %arg1, %c0_i32, %c0_i32_0 : i32, i32, i32
  }
  func.func @transform_7(%arg0: i32, %arg1: i32) -> (i32, i32, i32) {
    %c0_i32 = arith.constant 0 : i32
    %c0_i32_0 = arith.constant 0 : i32
    %c0_i32_1 = arith.constant 0 : i32
    return %arg1, %c0_i32, %c0_i32_0 : i32, i32, i32
  }
  func.func @transform_8(%arg0: i32, %arg1: i32) -> (i32, i32, i32) {
    %c0_i32 = arith.constant 0 : i32
    %c0_i32_0 = arith.constant 0 : i32
    %c0_i32_1 = arith.constant 0 : i32
    return %arg1, %c0_i32, %c0_i32_0 : i32, i32, i32
  }
  func.func @transform_9(%arg0: i32, %arg1: i32) -> (i32, i32, i32) {
    %c0_i32 = arith.constant 0 : i32
    %c0_i32_0 = arith.constant 0 : i32
    %c0_i32_1 = arith.constant 0 : i32
    return %arg1, %c0_i32, %c0_i32_0 : i32, i32, i32
  }
  func.func @transform_10(%arg0: i32, %arg1: i32) -> (i32, i32, i32) {
    %c0_i32 = arith.constant 0 : i32
    %c0_i32_0 = arith.constant 0 : i32
    %c0_i32_1 = arith.constant 0 : i32
    return %arg1, %c0_i32, %c0_i32_0 : i32, i32, i32
  }
  func.func @transform_11(%arg0: i32, %arg1: i32) -> (i32, i32, i32) {
    %c0_i32 = arith.constant 0 : i32
    %c0_i32_0 = arith.constant 0 : i32
    %c0_i32_1 = arith.constant 0 : i32
    return %arg1, %c0_i32, %c0_i32_0 : i32, i32, i32
  }
  func.func @transform_12(%arg0: i32, %arg1: i32) -> (i32, i32, i32) {
    %c0_i32 = arith.constant 0 : i32
    %c0_i32_0 = arith.constant 0 : i32
    %c0_i32_1 = arith.constant 0 : i32
    return %arg1, %c0_i32, %c0_i32_0 : i32, i32, i32
  }
  func.func @transform_13(%arg0: i32, %arg1: i32) -> (i32, i32, i32) {
    %c0_i32 = arith.constant 0 : i32
    %c0_i32_0 = arith.constant 0 : i32
    %c0_i32_1 = arith.constant 0 : i32
    return %arg1, %c0_i32, %c0_i32_0 : i32, i32, i32
  }
  func.func @transform_14(%arg0: i32, %arg1: i32) -> (i32, i32, i32) {
    %c0_i32 = arith.constant 0 : i32
    %c0_i32_0 = arith.constant 0 : i32
    %c0_i32_1 = arith.constant 0 : i32
    return %arg1, %c0_i32, %c0_i32_0 : i32, i32, i32
  }
  func.func @transform_15(%arg0: i32, %arg1: i32) -> (i32, i32, i32) {
    %c0_i32 = arith.constant 0 : i32
    %c0_i32_0 = arith.constant 0 : i32
    %c0_i32_1 = arith.constant 0 : i32
    return %arg1, %c0_i32, %c0_i32_0 : i32, i32, i32
  }
  func.func @transform_16(%arg0: i32, %arg1: i32) -> (i32, i32, i32) {
    %c0_i32 = arith.constant 0 : i32
    %c0_i32_0 = arith.constant 0 : i32
    %c0_i32_1 = arith.constant 0 : i32
    return %arg1, %c0_i32, %c0_i32_0 : i32, i32, i32
  }
  func.func @transform_17(%arg0: i32, %arg1: i32) -> (i32, i32, i32) {
    %c0_i32 = arith.constant 0 : i32
    %c0_i32_0 = arith.constant 0 : i32
    %c0_i32_1 = arith.constant 0 : i32
    return %arg1, %c0_i32, %c0_i32_0 : i32, i32, i32
  }
  func.func @transform_18(%arg0: i32, %arg1: i32) -> (i32, i32, i32) {
    %c0_i32 = arith.constant 0 : i32
    %c0_i32_0 = arith.constant 0 : i32
    %c0_i32_1 = arith.constant 0 : i32
    return %arg1, %c0_i32, %c0_i32_0 : i32, i32, i32
  }
  func.func @transform_19(%arg0: i32, %arg1: i32) -> (i32, i32, i32) {
    %c0_i32 = arith.constant 0 : i32
    %c0_i32_0 = arith.constant 0 : i32
    %c0_i32_1 = arith.constant 0 : i32
    return %arg1, %c0_i32, %c0_i32_0 : i32, i32, i32
  }
  func.func @transform_20(%arg0: i32, %arg1: i32) -> (i32, i32) {
    %c0_i32 = arith.constant 0 : i32
    %c0_i32_0 = arith.constant 0 : i32
    %c0_i32_1 = arith.constant 0 : i32
    return %c0_i32, %c0_i32_0 : i32, i32
  }
  func.func @transform_21(%arg0: i32, %arg1: i32) -> (i32, i32) {
    %c0_i32 = arith.constant 0 : i32
    %c0_i32_0 = arith.constant 0 : i32
    return %arg0, %c0_i32 : i32, i32
  }
}

</mosaic_0001>

<bundles_post_ra>
// kernel: tpu_custom_call.1
= control target key start
LH: loop header
LB: loop body
LE: loop exit
PB: predicated region body
PF: predicated region fallthrough
CT: control target
= control target key end

     0   :  { %s8128_s0 = inlined_call_operand.vmem [shape: bf16[16,384], index: 0, kind: input, shape index: {}]   ;;  %s8129_s1 = inlined_call_operand.vmem [shape: f32[2,1,8], index: 1, kind: input, shape index: {}]   ;;  %s8130_s2 = inlined_call_operand.vmem [shape: f32[8,32], index: 2, kind: input, shape index: {}]   ;;  %s8131_s3 = inlined_call_operand.vmem [shape: bf16[384,32], index: 3, kind: input, shape index: {}]   ;;  %s8132_s4 = inlined_call_operand.vmem [shape: bf16[3,32,32], index: 4, kind: input, shape index: {}]   ;;  %s8133_s5 = inlined_call_operand.vmem [shape: f32[3,1,32], index: 5, kind: input, shape index: {}]   ;;  %s8134_s6 = inlined_call_operand.vmem [shape: bf16[3,32,32], index: 6, kind: input, shape index: {}]   ;;  %s8135_s7 = inlined_call_operand.vmem [shape: f32[3,1,32], index: 7, kind: input, shape index: {}]   ;;  %s8136_s8 = inlined_call_operand.vmem [shape: bf16[3,32,32], index: 8, kind: input, shape index: {}]   ;;  %s8137_s9 = inlined_call_operand.vmem [shape: f32[3,1,32], index: 9, kind: input, shape index: {}]   ;;  %s8138_s10 = inlined_call_operand.vmem [shape: bf16[3,32,32], index: 10, kind: input, shape index: {}]   ;;  %s8139_s11 = inlined_call_operand.vmem [shape: f32[3,1,32], index: 11, kind: input, shape index: {}]   ;;  %s8140_s12 = inlined_call_operand.vmem [shape: f32[3,1,32], index: 12, kind: input, shape index: {}]   ;;  %s8141_s13 = inlined_call_operand.vmem [shape: f32[3,1,32], index: 13, kind: input, shape index: {}]   ;;  %s8142_s14 = inlined_call_operand.vmem [shape: bf16[3,32,2048], index: 14, kind: input, shape index: {}]   ;;  %s8143_s15 = inlined_call_operand.vmem [shape: f32[3,1,2048], index: 15, kind: input, shape index: {}]   ;;  %s8144_s16 = inlined_call_operand.vmem [shape: bf16[3,2048,32], index: 16, kind: input, shape index: {}]   ;;  %s8145_s17 = inlined_call_operand.vmem [shape: f32[3,1,32], index: 17, kind: input, shape index: {}]   ;;  %s8146_s18 = inlined_call_operand.vmem [shape: f32[3,1,32], index: 18, kind: input, shape index: {}]   ;;  %s8147_s19 = inlined_call_operand.vmem [shape: f32[3,1,32], index: 19, kind: input, shape index: {}]   ;;  %s8148_s20 = inlined_call_operand.vmem [shape: bf16[32,384], index: 20, kind: input, shape index: {}]   ;;  %s8149_s21 = inlined_call_operand.hbm [shape: f32[16,384], index: 21, kind: output, shape index: {}]  }
   0x1   :  { %8157 = sst [smem:[#allocation10_spill]] %s8128_s0 }
   0x2   :  { %8158 = sst [smem:[#allocation11_spill]] %s8129_s1 }
   0x3   :  { %8159 = sst [smem:[#allocation12_spill]] %s8130_s2 }
   0x4   :  { %8160 = sst [smem:[#allocation13_spill]] %s8131_s3 }
   0x5   :  { %8161 = sst [smem:[#allocation14_spill]] %s8132_s4 }
   0x6   :  { %8162 = sst [smem:[#allocation15_spill]] %s8133_s5 }
   0x7   :  { %8163 = sst [smem:[#allocation16_spill]] %s8134_s6 }
   0x8   :  { %8164 = sst [smem:[#allocation17_spill]] %s8135_s7 }
   0x9   :  { %8165 = sst [smem:[#allocation18_spill]] %s8136_s8 }
   0xa   :  { %8166 = sst [smem:[#allocation19_spill]] %s8138_s10 }
   0xb   :  { %8167 = sst [smem:[#allocation20_spill]] %s8142_s14 }
   0xc   :  { %8168 = sst [smem:[#allocation21_spill]] %s8143_s15 }
   0xd   :  { %8169 = sst [smem:[#allocation22_spill]] %s8147_s19 }
   0xe   :  { %8170 = sst [smem:[#allocation23_spill]] %s8148_s20 }
   0xf   :  { %8171 = sst [smem:[#allocation24_spill]] %s8149_s21 }
  0x10   :  { %26 = vsyncpa [#allocation4], 0  ;;  %s7118_s2 = smov 0   ;;  %s7120_s25 = smov 0  }
  0x11   :  { %s7122_s26 = smov 0  }
  0x12 LB: > { %8172 = sst [smem:[#allocation6_spill]] %s6987_s2  ;;  %s41_s3 = sadd.s32 1, %s6991_s25  ;;  %s6995_s26 = sphi %s7122_s26, %s32_s26   ;;  %s6991_s25 = sphi %s7120_s25, %s8208_s25   ;;  %s6987_s2 = sphi %s7118_s2, %s8207_s2  }
  0x13   : > { %8173 = sst [smem:[#allocation7_spill]] %s6991_s25  ;;  %p42_p0 = scmp.ge.s32.totalorder %s41_s3, 3 }
  0x14   : > { %8174 = sst [smem:[#allocation8_spill]] %s6995_s26  ;;  %p5827_p1 = scmp.ge.s32.totalorder %s6995_s26, 1 }
  0x15   : > { %p753_p2 = scmp.lt.s32.totalorder %s6995_s26, 4  ;;  %s8210_s3 = smov (%p42_p0, %s41_s3), 0 }
  0x16   : > { %8175 = sst [smem:[#allocation9_spill]] %s8210_s3 }
  0x17   : > { %p754_p3 = pnand %p5827_p1, %p753_p2 }
  0x18   : > { %p886_p4 = scmp.lt.s32.totalorder (!%p754_p3), %s6987_s2, 2  ;;  %s8177_s1 = sld [smem:[#allocation14_spill]] (!%p754_p3) }
  0x19   : > { %757 = sbr.rel (%p754_p3) target bundleno = 4415 (0x113f), region = 104  ;;  %s8178_s6 = sld [smem:[#allocation16_spill]] (!%p754_p3) }
  0x1a   : > { %s8180_s8 = sld [smem:[#allocation18_spill]] (!%p754_p3) }
  0x1b   : > { %s8181_s10 = sld [smem:[#allocation19_spill]] (!%p754_p3) }
  0x1c   : > { %s8182_s14 = sld [smem:[#allocation20_spill]] (!%p754_p3) }
  0x1d   : > { %s8183_s15 = sld [smem:[#allocation21_spill]] (!%p754_p3) }
  0x1e   : > { %s7141_s28 = scalar_select %p886_p4, %s6987_s2, 2 }
  0x20   : > { %s6114_s29 = sshll.u32 %s7141_s28, 4  ;;  %s6118_s7 = sshll.u32 %s7141_s28, 8 }
  0x21   : > { %s7151_s24 = scalar_lea.vmem %s8177_s1, %s6114_s29  ;;  %s7156_s25 = scalar_lea.vmem %s8178_s6, %s6114_s29 }
  0x22   : > { %s7165_s0 = scalar_lea.vmem %s8180_s8, %s6114_s29  ;;  %s7174_s27 = scalar_lea.vmem %s8181_s10, %s6114_s29 }
  0x23   : > { %s7192_s22 = scalar_lea.vmem %s8182_s14, %s6118_s7  ;;  %s7197_s10 = scalar_lea.vmem %s8183_s15, %s6114_s29 }
  0x24   : > { %s6119_s5 = sshll.u32 %s7141_s28, 10  ;;  %s940_s21 = scalar_lea.vmem %s8145_s17, %s7141_s28 }
  0x25   : > { %s7207_s19 = scalar_lea.vmem %s8144_s16, %s6119_s5  ;;  %s943_s7 = scalar_lea.vmem %s8146_s18, %s7141_s28 }
  0x26   : > { %s8184_s14 = sld [smem:[#allocation22_spill]] }
  0x27   : > { %s8185_s29 = sld [smem:[#allocation6_spill]] }
  0x2c   : > { %s946_s23 = scalar_lea.vmem %s8184_s14, %s7141_s28 }
  0x2d   : > { %p5841_p5 = scmp.ne.s32.totalorder %s8185_s29, 0 }
  0x2e   : > { %s8186_s6 = sld [smem:[#allocation13_spill]] (!%p5841_p5) }
  0x2f   : > { %952 = sbr.rel (%p5841_p5) target bundleno = 291 (0x123), region = 108  ;;  %s8187_s4 = sld [smem:[#allocation10_spill]] (!%p5841_p5) }
  0x30   : > { %s8188_s2 = sld [smem:[#allocation12_spill]] (!%p5841_p5) }
  0x34   : > { %v6699_v0 = vld [vmem:[%s8186_s6 + $0x78] sm:$0xff]   ;;  %v6997_v1 = vmov 0.0   ;;  %vm6998_vm0 = vmmov 0   ;;  %v6702_v4 = vld [vmem:[%s8186_s6 + $0x70] sm:$0xff]   ;;  %v6705_v7 = vld [vmem:[%s8186_s6 + $0x68] sm:$0xff]   ;;  %vm1248_vm1 = vcmask 261120  }
  0x35   : > { %6406 = vmatprep.subr.bf16.mxu1 %v6997_v1  ;;  %v6700_v2 = vld [vmem:[%s8186_s6 + $0x38] sm:$0xff]   ;;  %6120 = vmatprep.subr.bf16.mxu0 %v6699_v0  ;;  %v6703_v5 = vld [vmem:[%s8186_s6 + $0x30] sm:$0xff]   ;;  %v6706_v8 = vld [vmem:[%s8186_s6 + $0x28] sm:$0xff]  }
  0x36   : > { %v6701_v3 = vld [vmem:[%s8186_s6 + $0xb8] sm:$0xff]   ;;  %6422 = vmatprep.mubr.msk.bf16.mxu1 %vm6998_vm0, %v6997_v1  ;;  %6121 = vmatpush3.bf16.msra.mxu0 %v6700_v2  ;;  %v6704_v6 = vld [vmem:[%s8186_s6 + $0xb0] sm:$0xff]   ;;  %v6707_v9 = vld [vmem:[%s8186_s6 + $0xa8] sm:$0xff]  }
  0x37   : > { %6407 = vmatpush3.bf16.msra.mxu1 %v6701_v3  ;;  %6122 = vmatprep.subr.bf16.mxu0 %v6702_v4  ;;  %v6708_v10 = vld [vmem:[%s8186_s6 + $0x60] sm:$0xff]   ;;  %v6711_v13 = vld [vmem:[%s8186_s6 + $0x58] sm:$0xff]   ;;  %v6714_v16 = vld [vmem:[%s8186_s6 + $0x50] sm:$0xff]  }
  0x38   : > { %6408 = vmatprep.subr.bf16.mxu1 %v6997_v1  ;;  %v6709_v11 = vld [vmem:[%s8186_s6 + $0x20] sm:$0xff]   ;;  %v6712_v14 = vld [vmem:[%s8186_s6 + $0x18] sm:$0xff]   ;;  %v6715_v17 = vld [vmem:[%s8186_s6 + $0x10] sm:$0xff]  }
  0x39   : > { %v6710_v12 = vld [vmem:[%s8186_s6 + $0xa0] sm:$0xff]   ;;  %v6713_v15 = vld [vmem:[%s8186_s6 + $0x98] sm:$0xff]   ;;  %v6716_v18 = vld [vmem:[%s8186_s6 + $0x90] sm:$0xff]  }
  0x3a   : > { %6123 = vmatpush3.bf16.msra.mxu0 %v6703_v5  ;;  %v6717_v19 = vld [vmem:[%s8186_s6 + $0x48] sm:$0xff]   ;;  %v6720_v22 = vld [vmem:[%s8186_s6 + $0x40] sm:$0xff]  }
  0x3b   : > { %6409 = vmatpush3.bf16.msra.mxu1 %v6704_v6  ;;  %6124 = vmatprep.subr.bf16.mxu0 %v6705_v7  ;;  %v6718_v20 = vld [vmem:[%s8186_s6 + $0x8] sm:$0xff]   ;;  %v6725_v23 = vld [vmem:[%s8187_s4 + $0x4] ss:$12 sps:$4 sm:$0xff]  }
  0x3c   : > { %6410 = vmatprep.subr.bf16.mxu1 %v6997_v1  ;;  %v6719_v21 = vld [vmem:[%s8186_s6 + $0x88] sm:$0xff]   ;;  %v6721_v24 = vld [vmem:[%s8186_s6] sm:$0xff]   ;;  %1198 = vmatprep.mubr.bf16.mxu0 %v6725_v23 }
  0x3d   : > { %v6722_v25 = vld [vmem:[%s8186_s6 + $0x80] sm:$0xff]   ;;  %v6726_v27 = vld [vmem:[%s8187_s4 + $0x8] ss:$12 sps:$4 sm:$0xff]  }
  0x3e   : > { %6125 = vmatpush3.bf16.msra.mxu0 %v6706_v8  ;;  %v6723_v26 = vld [vmem:[%s8187_s4] ss:$12 sps:$4 sm:$0xff]  }
  0x3f   : > { %6411 = vmatpush3.bf16.msra.mxu1 %v6707_v9  ;;  %6126 = vmatprep.subr.bf16.mxu0 %v6708_v10  ;;  %v1005_v30 = vld [vmem:[%s8188_s2] sm:$0xff] }
  0x40   : > { %6412 = vmatprep.subr.bf16.mxu1 %v6997_v1 }
  0x42   : > { %6127 = vmatpush3.bf16.msra.mxu0 %v6709_v11 }
  0x43   : > { %6413 = vmatpush3.bf16.msra.mxu1 %v6710_v12  ;;  %6128 = vmatprep.subr.bf16.mxu0 %v6711_v13 }
  0x44   : > { %6414 = vmatprep.subr.bf16.mxu1 %v6997_v1 }
  0x46   : > { %6129 = vmatpush3.bf16.msra.mxu0 %v6712_v14 }
  0x47   : > { %6415 = vmatpush3.bf16.msra.mxu1 %v6713_v15  ;;  %6130 = vmatprep.subr.bf16.mxu0 %v6714_v16 }
  0x48   : > { %6416 = vmatprep.subr.bf16.mxu1 %v6997_v1 }
  0x4a   : > { %6131 = vmatpush3.bf16.msra.mxu0 %v6715_v17 }
  0x4b   : > { %6417 = vmatpush3.bf16.msra.mxu1 %v6716_v18  ;;  %6132 = vmatprep.subr.bf16.mxu0 %v6717_v19 }
  0x4c   : > { %6418 = vmatprep.subr.bf16.mxu1 %v6997_v1 }
  0x4e   : > { %6133 = vmatpush3.bf16.msra.mxu0 %v6718_v20 }
  0x4f   : > { %6419 = vmatpush3.bf16.msra.mxu1 %v6719_v21  ;;  %6134 = vmatprep.subr.bf16.mxu0 %v6720_v22 }
  0x50   : > { %6420 = vmatprep.subr.bf16.mxu1 %v6997_v1 }
  0x52   : > { %6135 = vmatpush3.bf16.msra.mxu0 %v6721_v24 }
  0x53   : > { %6421 = vmatpush3.bf16.msra.mxu1 %v6722_v25 }
  0x55   : > { %1199 = vmatmul.mubr.bf16.vlgmr.msra.gmra.mxu0 %v6723_v26 }
  0x56   : > { %6423 = vmatmul.mubr.bf16.vlgmr.msra.gmra.mxu1 %v6726_v27 }
 0x115   : > { %v6136_v28 = vpop.f32.mrf.mxu0 }
 0x116   : > { %v1241_v29 = vpop.f32.mrf.mxu1 }
 0x117   : > { %v6137_v31 = vpop.f32.mrf.mxu0 }
 0x118   : > { %v6138_v32 = vadd.f32 %v6137_v31, %v6136_v28  ;;  %v6424_v33 = vpop.f32.mrf.mxu1 }
 0x119   : > { %v6139_v34 = vpop.f32.mrf.mxu0 }
 0x11a   : > { %v1201_v35 = vadd.f32 %v6138_v32, %v1005_v30  ;;  %v1244_v36 = vpop.f32.mrf.mxu1 }
 0x11b   : > { %v6140_v37 = vpop.f32.mrf.mxu0 }
 0x11c   : > { %v1242_v38 = vadd.f32 %v1241_v29, %v1201_v35  ;;  %v6141_v39 = vadd.f32 %v6140_v37, %v6139_v34  ;;  %v6425_v40 = vpop.f32.mrf.mxu1 }
 0x11e   : > { %1249 = vst.msk [vmem:[#allocation2] sm:$0xff] %vm1248_vm1, %v1242_v38  ;;  %v1204_v41 = vadd.f32 %v6141_v39, %v1005_v30 }
 0x120   : > { %v1245_v42 = vadd.f32 %v1244_v36, %v1204_v41 }
 0x122   : > { %1250 = vst.msk [vmem:[#allocation2 + $0x8] sm:$0xff] %vm1248_vm1, %v1245_v42 }
 0x123 PF: > { %v6727_v43 = vld [vmem:[%s7156_s25 + $0x8] sm:$0xff]   ;;  %v6999_v44 = vmov 0.0   ;;  %v6729_v46 = vld [vmem:[%s7156_s25] sm:$0xff]   ;;  %vm7000_vm2 = vmmov 0   ;;  %vm1289_vm3 = vcmask 261120   ;;  %v1454_v53 = vlaneseq  ;;  %s8191_s20 = sld [smem:[#allocation15_spill]]  ;;  %s8193_s14 = scalar_lea.vmem %s8137_s9, %s7141_s28 }
 0x124   : > { %6434 = vmatprep.subr.bf16.mxu1 %v6999_v44  ;;  %6426 = vmatprep.subr.bf16.mxu0 %v6999_v44  ;;  %v6728_v45 = vld [vmem:[%s7151_s24 + $0x8] sm:$0xff]   ;;  %v6730_v47 = vld [vmem:[%s7151_s24] sm:$0xff]   ;;  %s8194_s2 = sld [smem:[#allocation11_spill]]  ;;  %s8196_s29 = scalar_lea.vmem %s8139_s11, %s7141_s28 }
 0x125   : > { %6435 = vmatpush3.bf16.msra.mxu1 %v6727_v43  ;;  %6438 = vmatprep.mubr.msk.bf16.mxu1 %vm7000_vm2, %v6999_v44  ;;  %v1251_v48 = vld [vmem:[#allocation2] sm:$0xff]  ;;  %v6731_v51 = vld [vmem:[%s7165_s0 + $0x8] sm:$0xff]   ;;  %v7330_v54 = vand.u32 127, %v1454_v53  ;;  %s8200_s25 = sld [smem:[#allocation6_spill]] }
 0x126   : > { %6427 = vmatpush3.bf16.msra.mxu0 %v6728_v45  ;;  %6436 = vmatprep.subr.bf16.mxu1 %v6999_v44  ;;  %v6732_v52 = vld [vmem:[%s7165_s0] sm:$0xff]   ;;  %s8189_s0 = sld [smem:[#allocation17_spill]] }
 0x127   : > { %6428 = vmatprep.subr.bf16.mxu0 %v6999_v44  ;;  %6430 = vmatprep.mubr.msk.bf16.mxu0 %vm7000_vm2, %v6999_v44  ;;  %vm1465_vm4 = vcmp.ge.s32.totalorder %v7330_v54, 4  ;;  %vm1466_vm5 = vcmp.lt.s32.totalorder %v7330_v54, 8  ;;  %vm1461_vm6 = vcmp.lt.s32.totalorder %v7330_v54, 4  ;;  %v5877_v14 = vld [vmem:[%s8193_s14] ss:$0 sm:$0xff]  ;;  %vm1470_vm8 = vcmp.ge.s32.totalorder %v7330_v54, 8  ;;  %s8198_s14 = scalar_lea.vmem %s8141_s13, %s7141_s28 }
 0x128   : > { %vm1467_vm7 = vmand %vm1465_vm4, %vm1466_vm5  ;;  %v7348_v62 = vsel %vm1461_vm6, 1.0, %v6999_v44  ;;  %vm1471_vm9 = vcmp.lt.s32.totalorder %v7330_v54, 12  ;;  %vm1475_vm10 = vcmp.ge.s32.totalorder %v7330_v54, 12  ;;  %vm1476_vm11 = vcmp.lt.s32.totalorder %v7330_v54, 16 }
 0x129   : > { %v1252_v49 = vld [vmem:[#allocation2 + $0x8] sm:$0xff]  ;;  %6437 = vmatpush3.bf16.msra.mxu1 %v6729_v46  ;;  %s8192_s5 = scalar_lea.vmem %s8191_s20, %s7141_s28  ;;  %v7351_v63 = vsel %vm1467_vm7, 1.0, %v6999_v44  ;;  %vm1472_vm12 = vmand %vm1470_vm8, %vm1471_vm9  ;;  %vm1480_vm13 = vcmp.ge.s32.totalorder %v7330_v54, 16  ;;  %vm1481_vm14 = vcmp.lt.s32.totalorder %v7330_v54, 20  ;;  %vm1485_vm0 = vcmp.ge.s32.totalorder %v7330_v54, 20 }
 0x12a   : > { %v1269_v50 = vpack.c.bf16 %v1252_v49, %v1251_v48  ;;  %6429 = vmatpush3.bf16.msra.mxu0 %v6730_v47  ;;  %6450 = vmatprep.subr.bf16.mxu1 %v6999_v44  ;;  %v5869_v56 = vld [vmem:[%s8192_s5] ss:$0 sm:$0xff]  ;;  %vm1477_vm15 = vmand %vm1475_vm10, %vm1476_vm11  ;;  %vm1486_vm1 = vcmp.lt.s32.totalorder %v7330_v54, 24  ;;  %v7390_v20 = vsel %vm1472_vm12, 1.0, %v6999_v44  ;;  %vm1490_vm5 = vcmp.ge.s32.totalorder %v7330_v54, 24  ;;  %s8195_s24 = smov %s8194_s2  ;;  %s8197_s5 = scalar_lea.vmem %s8140_s12, %s7141_s28 }
 0x12b   : > { %6442 = vmatprep.subr.bf16.mxu0 %v6999_v44  ;;  %vm1482_vm4 = vmand %vm1480_vm13, %vm1481_vm14  ;;  %vm1491_vm6 = vcmp.lt.s32.totalorder %v7330_v54, 28  ;;  %vm1495_vm7 = vcmp.ge.s32.totalorder %v7330_v54, 28  ;;  %vm1496_vm8 = vcmp.lt.s32.totalorder %v7330_v54, 32  ;;  %v7399_v23 = vsel %vm1477_vm15, 1.0, %v6999_v44  ;;  %p6101_p6 = scmp.ne.s32.totalorder %s8200_s25, 2 }
 0x12c   : > { %6439 = vmatmul.mubr.msk.bf16.vlgmr.msra.gmra.mxu1 %vm1289_vm3, %v1269_v50  ;;  %s8190_s30 = scalar_lea.vmem %s8189_s0, %s7141_s28  ;;  %vm1487_vm9 = vmand %vm1485_vm0, %vm1486_vm1  ;;  %v7405_v28 = vsel %vm1482_vm4, 1.0, %v6999_v44  ;;  %vm1638_vm11 = vcmask 1043456   ;;  %vm1561_vm14 = vcmask 64512  }
 0x12d   : > { %6431 = vmatmul.mubr.msk.bf16.vlgmr.msra.gmra.mxu0 %vm1289_vm3, %v1269_v50  ;;  %6452 = vmatprep.mubr.msk.bf16.mxu1 %vm7000_vm2, %v6999_v44  ;;  %v5873_v55 = vld [vmem:[%s8190_s30] ss:$0 sm:$0xff]  ;;  %vm1492_vm10 = vmand %vm1490_vm5, %vm1491_vm6  ;;  %v7412_v35 = vsel %vm1487_vm9, 1.0, %v6999_v44 }
 0x12e   : > { %6443 = vmatpush3.bf16.msra.mxu0 %v6731_v51  ;;  %6446 = vmatprep.mubr.msk.bf16.mxu0 %vm7000_vm2, %v6999_v44  ;;  %vm1497_vm12 = vmand %vm1495_vm7, %vm1496_vm8  ;;  %v7415_v37 = vsel %vm1492_vm10, 1.0, %v6999_v44 }
 0x12f   : > { %6444 = vmatprep.subr.bf16.mxu0 %v6999_v44  ;;  %v7425_v41 = vsel %vm1497_vm12, 1.0, %v6999_v44 }
 0x132   : > { %6445 = vmatpush3.bf16.msra.mxu0 %v6732_v52 }
 0x133   : > { %6456 = vmatprep.subr.bf16.mxu0 %v6999_v44 }
 0x135   : > { %6447 = vmatmul.mubr.msk.bf16.vlgmr.msra.gmra.mxu0 %vm1289_vm3, %v1269_v50 }
 0x136   : > { %6458 = vmatprep.mubr.msk.bf16.mxu0 %vm7000_vm2, %v6999_v44 }
 0x1ec   : > { %v1387_v57 = vpop.f32.mrf.mxu1 }
 0x1ed   : > { %v1388_v58 = vadd.f32 %v5873_v55, %v1387_v57  ;;  %v1327_v59 = vpop.f32.mrf.mxu0 }
 0x1ee   : > { %v7345_v60 = vadd.f32 %v5869_v56, %v1327_v59  ;;  %v6440_v61 = vpop.f32.mrf.mxu1 }
 0x1ef   : > { %v1508_v0 = vpack.c.bf16 %v1388_v58, %v1388_v58  ;;  %v6432_v1 = vpop.f32.mrf.mxu0 }
 0x1f0   : > { %v1390_v2 = vpop.f32.mrf.mxu1  ;;  %v1509_v6 = vmul.f32 %v7348_v62, %v7345_v60  ;;  %v1574_v7 = vmul.f32 %v7351_v63, %v7345_v60 }
 0x1f1   : > { %v7354_v3 = vsel %vm1289_vm3, %v1508_v0, 0  ;;  %v7356_v4 = vadd.f32 %v5873_v55, %v1390_v2  ;;  %v1330_v5 = vpop.f32.mrf.mxu0 }
 0x1f2   : > { %v7362_v8 = vadd.f32 %v5869_v56, %v1330_v5  ;;  %v6441_v9 = vpop.f32.mrf.mxu1  ;;  %6451 = vmatpush3.bf16.xpose.msra.mxu1 %v7354_v3  ;;  %6457 = vmatpush3.bf16.xpose.msra.mxu0 %v7354_v3  ;;  %v1510_v11 = vpack.c.bf16 %v1509_v6, %v1509_v6  ;;  %v1575_v12 = vpack.c.bf16 %v1574_v7, %v1574_v7 }
 0x1f3   : > { %v6433_v10 = vpop.f32.mrf.mxu0  ;;  %6462 = vmatprep.subr.bf16.mxu1 %v6999_v44  ;;  %6468 = vmatprep.subr.bf16.mxu0 %v6999_v44 }
 0x1f5   : > { %v1447_v13 = vpop.f32.mrf.mxu0 }
 0x1f6   : > { %v1448_v19 = vadd.f32 %v5877_v14, %v1447_v13 }
 0x1f7   : > { %v6448_v15 = vpop.f32.mrf.mxu0 }
 0x1f8   : > { %v1576_v21 = vmul.f32 %v7351_v63, %v1448_v19  ;;  %v1511_v22 = vmul.f32 %v7348_v62, %v1448_v19  ;;  %v1730_v25 = vmul.f32 %v7390_v20, %v1448_v19  ;;  %v1838_v29 = vmul.f32 %v7399_v23, %v1448_v19 }
 0x1f9   : > { %6453 = vmatmul.mubr.msk.bf16.vlgmr.msra.gmra.mxu1 %vm1289_vm3, %v1510_v11  ;;  %6459 = vmatmul.mubr.msk.bf16.vlgmr.msra.gmra.mxu0 %vm1289_vm3, %v1575_v12  ;;  %v1450_v16 = vpop.f32.mrf.mxu0  ;;  %v1946_v32 = vmul.f32 %v7405_v28, %v1448_v19  ;;  %v2054_v43 = vmul.f32 %v7412_v35, %v1448_v19  ;;  %v2162_v45 = vmul.f32 %v7415_v37, %v1448_v19 }
 0x1fa   : > { %v7375_v17 = vadd.f32 %v5877_v14, %v1450_v16  ;;  %6464 = vmatprep.mubr.msk.bf16.mxu1 %vm7000_vm2, %v6999_v44  ;;  %6470 = vmatprep.mubr.msk.bf16.mxu0 %vm7000_vm2, %v6999_v44  ;;  %v1577_v26 = vpack.c.bf16 %v1576_v21, %v1576_v21  ;;  %v1512_v27 = vpack.c.bf16 %v1511_v22, %v1511_v22  ;;  %v7482_v21 = vshrl.u32 %v1454_v53, 7  ;;  %v5889_v22 = vld [vmem:[%s8194_s2] ss:$0 sm:$0xff] }
 0x1fb   : > { %v6449_v18 = vpop.f32.mrf.mxu0  ;;  %v1731_v31 = vpack.c.bf16 %v1730_v25, %v1730_v25  ;;  %v1839_v36 = vpack.c.bf16 %v1838_v29, %v1838_v29  ;;  %v1947_v40 = vpack.c.bf16 %v1946_v32, %v1946_v32  ;;  %v2270_v47 = vmul.f32 %v7425_v41, %v1448_v19 }
 0x1fc   : > { %v2452_v24 = vmul.f32 %v7351_v63, %v7375_v17  ;;  %v1640_v33 = vsel %vm1638_vm11, %v1577_v26, 0  ;;  %v1686_v34 = vsel %vm1638_vm11, %v1512_v27, 0  ;;  %v2388_v48 = vmul.f32 %v7348_v62, %v7375_v17 }
 0x1fd   : > { %6463 = vmatpush3.bf16.msra.mxu1 %v1640_v33  ;;  %6469 = vmatpush3.bf16.msra.mxu0 %v1686_v34  ;;  %v7421_v39 = vsel %vm1638_vm11, %v1731_v31, 0  ;;  %v7429_v42 = vsel %vm1638_vm11, %v1839_v36, 0  ;;  %v7434_v46 = vsel %vm1638_vm11, %v1947_v40, 0  ;;  %v2605_v49 = vmul.f32 %v7390_v20, %v7375_v17 }
 0x1fe   : > { %v2453_v30 = vpack.c.bf16 %v2452_v24, %v2452_v24  ;;  %6474 = vmatprep.subr.bf16.mxu1 %v6999_v44  ;;  %6480 = vmatprep.subr.bf16.mxu0 %v6999_v44  ;;  %v2055_v50 = vpack.c.bf16 %v2054_v43, %v2054_v43  ;;  %v2163_v51 = vpack.c.bf16 %v2162_v45, %v2162_v45 }
 0x1ff   : > { %v2713_v52 = vmul.f32 %v7399_v23, %v7375_v17  ;;  %v2271_v55 = vpack.c.bf16 %v2270_v47, %v2270_v47  ;;  %v2389_v56 = vpack.c.bf16 %v2388_v48, %v2388_v48  ;;  %v2606_v57 = vpack.c.bf16 %v2605_v49, %v2605_v49 }
 0x200   : > { %v7418_v38 = vsel %vm1638_vm11, %v2453_v30, 0  ;;  %v2821_v58 = vmul.f32 %v7405_v28, %v7375_v17  ;;  %v7446_v59 = vsel %vm1638_vm11, %v2055_v50, 0  ;;  %v7449_v61 = vsel %vm1638_vm11, %v2163_v51, 0 }
 0x201   : > { %v2714_v0 = vpack.c.bf16 %v2713_v52, %v2713_v52  ;;  %v2929_v1 = vmul.f32 %v7412_v35, %v7375_v17  ;;  %v7454_v2 = vsel %vm1638_vm11, %v2271_v55, 0  ;;  %v7457_v5 = vsel %vm1638_vm11, %v2389_v56, 0 }
 0x202   : > { %v7460_v6 = vsel %vm1638_vm11, %v2606_v57, 0  ;;  %v2822_v7 = vpack.c.bf16 %v2821_v58, %v2821_v58  ;;  %v3037_v11 = vmul.f32 %v7415_v37, %v7375_v17  ;;  %v3145_v12 = vmul.f32 %v7425_v41, %v7375_v17 }
 0x203   : > { %v7463_v9 = vsel %vm1638_vm11, %v2714_v0, 0  ;;  %v2930_v10 = vpack.c.bf16 %v2929_v1, %v2929_v1  ;;  %vm1458_vm13 = vcmp.gt.s32.totalorder %v7330_v54, %v7482_v21  ;;  %v1728_v57 = vmul.f32 %v7390_v20, %v7345_v60 }
 0x204   : > { %v7470_v13 = vsel %vm1638_vm11, %v2822_v7, 0  ;;  %v3038_v15 = vpack.c.bf16 %v3037_v11, %v3037_v11  ;;  %v3146_v16 = vpack.c.bf16 %v3145_v12, %v3145_v12  ;;  %v7487_v17 = vsel %vm1458_vm13, -1e+09, %v6999_v44 }
 0x205   : > { %v7473_v14 = vsel %vm1638_vm11, %v2930_v10, 0  ;;  %v7493_v24 = vadd.f32 %v5889_v22, %v7487_v17  ;;  %v1729_v58 = vpack.c.bf16 %v1728_v57, %v1728_v57  ;;  %v1836_v0 = vmul.f32 %v7399_v23, %v7345_v60 }
 0x206   : > { %v7476_v18 = vsel %vm1638_vm11, %v3038_v15, 0  ;;  %v7479_v19 = vsel %vm1638_vm11, %v3146_v16, 0  ;;  %v1944_v7 = vmul.f32 %v7405_v28, %v7345_v60  ;;  %v2052_v11 = vmul.f32 %v7412_v35, %v7345_v60 }
 0x207   : > { %v1837_v1 = vpack.c.bf16 %v1836_v0, %v1836_v0  ;;  %v2160_v15 = vmul.f32 %v7415_v37, %v7345_v60  ;;  %v2268_v22 = vmul.f32 %v7425_v41, %v7345_v60 }
 0x208   : > { %v1945_v10 = vpack.c.bf16 %v1944_v7, %v1944_v7  ;;  %v2053_v12 = vpack.c.bf16 %v2052_v11, %v2052_v11 }
 0x209   : > { %v2161_v16 = vpack.c.bf16 %v2160_v15, %v2160_v15 }
 0x2b9   : > { %v1553_v25 = vpop.f32.mrf.mxu1  ;;  %v1615_v26 = vpop.f32.mrf.mxu0 }
 0x2ba   : > { %v1559_v27 = vmul.f32 0.5, %v1553_v25  ;;  %v1621_v29 = vmul.f32 0.5, %v1615_v26  ;;  %v2385_v25 = vpack.c.bf16 %v7356_v4, %v7356_v4  ;;  %v2269_v26 = vpack.c.bf16 %v2268_v22, %v2268_v22 }
 0x2bb   : > { %v6454_v30 = vpop.f32.mrf.mxu1  ;;  %v6460_v53 = vpop.f32.mrf.mxu0 }
 0x2bc   : > { %v7496_v31 = vadd.f32 %v1559_v27, %v7493_v24  ;;  %v1622_v54 = vadd.f32 %v1621_v29, %v7493_v24  ;;  %v7548_v27 = vsel %vm1289_vm3, %v2385_v25, 0 }
 0x2bd   : > { %v1556_v32 = vpop.f32.mrf.mxu1  ;;  %v1618_v33 = vpop.f32.mrf.mxu0 }
 0x2be   : > { %v1562_v34 = vsel %vm1561_vm14, %v7496_v31, -inf  ;;  %v1623_v36 = vsel %vm1561_vm14, %v1622_v54, -inf }
 0x2bf   : > { %1563 = vmax.xlane.f32.xlu1 %v1562_v34  ;;  %v6455_v40 = vpop.f32.mrf.mxu1  ;;  %1624 = vmax.xlane.f32.xlu0 %v1623_v36  ;;  %v6461_v43 = vpop.f32.mrf.mxu0 }
 0x348   : > { %v1625_v45 = vpop.xlane.xlu0 %1624 }
 0x349   : > { %v1626_v47 = vsub.f32 %v1622_v54, %v1625_v45 }
 0x34b   : > { %v1627_v48 = vmul.f32 1.442695, %v1626_v47 }
 0x34d   : > { %6863 = vpow2.f32 %v1627_v48 }
 0x35a   : > { %v6864_v49 = vpop.eup %6863 }
 0x35b   : > { %v1629_v50 = vsel %vm1561_vm14, %v6864_v49, 0.0 }
 0x35c   : > { %1630 = vadd.xlane.f32.xlu0 %v1629_v50  ;;  %v1564_v50 = vpop.xlane.xlu1 %1563 }
 0x3e5   : > { %v1631_v51 = vpop.xlane.xlu0 %1630 }
 0x3e6   : > { %6865 = vrcp.f32 %v1631_v51 }
 0x3f3   : > { %v6866_v52 = vpop.eup %6865 }
 0x3f4   : > { %v1633_v55 = vmul.f32 %v6866_v52, %v6864_v49 }
 0x3f6   : > { %v1634_v56 = vpack.c.bf16 %v1633_v55, %v1633_v55  ;;  %v1565_v55 = vsub.f32 %v7496_v31, %v1564_v50 }
 0x3f8   : > { %6465 = vmatmul.mubr.msk.bf16.vlgmr.msra.gmra.mxu1 %vm1561_vm14, %v1634_v56 }
 0x3f9   : > { %6475 = vmatpush3.bf16.xpose.msra.mxu1 %v7354_v3  ;;  %6476 = vmatprep.mubr.msk.bf16.mxu1 %vm7000_vm2, %v6999_v44 }
 0x3fa   : > { %6486 = vmatprep.subr.bf16.mxu1 %v6999_v44 }
 0x400   : > { %6477 = vmatmul.mubr.msk.bf16.vlgmr.msra.gmra.mxu1 %vm1289_vm3, %v1729_v58 }
 0x401   : > { %6487 = vmatpush3.bf16.xpose.msra.mxu1 %v7354_v3  ;;  %6488 = vmatprep.mubr.msk.bf16.mxu1 %vm7000_vm2, %v6999_v44 }
 0x402   : > { %6498 = vmatprep.subr.bf16.mxu1 %v6999_v44 }
 0x408   : > { %6489 = vmatmul.mubr.msk.bf16.vlgmr.msra.gmra.mxu1 %vm1289_vm3, %v1837_v1  ;;  %v1566_v1 = vmul.f32 1.442695, %v1565_v55 }
 0x409   : > { %6499 = vmatpush3.bf16.xpose.msra.mxu1 %v7354_v3  ;;  %6500 = vmatprep.mubr.msk.bf16.mxu1 %vm7000_vm2, %v6999_v44 }
 0x40a   : > { %6510 = vmatprep.subr.bf16.mxu1 %v6999_v44  ;;  %6867 = vpow2.f32 %v1566_v1 }
 0x410   : > { %6501 = vmatmul.mubr.msk.bf16.vlgmr.msra.gmra.mxu1 %vm1289_vm3, %v1945_v10 }
 0x411   : > { %6511 = vmatpush3.bf16.xpose.msra.mxu1 %v7354_v3  ;;  %6512 = vmatprep.mubr.msk.bf16.mxu1 %vm7000_vm2, %v6999_v44 }
 0x412   : > { %6522 = vmatprep.subr.bf16.mxu1 %v6999_v44 }
 0x418   : > { %6513 = vmatmul.mubr.msk.bf16.vlgmr.msra.gmra.mxu1 %vm1289_vm3, %v2053_v12 }
 0x419   : > { %6523 = vmatpush3.bf16.xpose.msra.mxu1 %v7354_v3  ;;  %6524 = vmatprep.mubr.msk.bf16.mxu1 %vm7000_vm2, %v6999_v44 }
 0x41a   : > { %6534 = vmatprep.subr.bf16.mxu1 %v6999_v44 }
 0x420   : > { %6525 = vmatmul.mubr.msk.bf16.vlgmr.msra.gmra.mxu1 %vm1289_vm3, %v2161_v16 }
 0x421   : > { %6535 = vmatpush3.bf16.xpose.msra.mxu1 %v7354_v3  ;;  %6536 = vmatprep.mubr.msk.bf16.mxu1 %vm7000_vm2, %v6999_v44  ;;  %v2386_v3 = vmul.f32 %v7348_v62, %v7362_v8 }
 0x422   : > { %6546 = vmatprep.subr.bf16.mxu1 %v6999_v44 }
 0x423   : > { %v2387_v60 = vpack.c.bf16 %v2386_v3, %v2386_v3 }
 0x428   : > { %6537 = vmatmul.mubr.msk.bf16.vlgmr.msra.gmra.mxu1 %vm1289_vm3, %v2269_v26 }
 0x429   : > { %6547 = vmatpush3.bf16.xpose.msra.mxu1 %v7548_v27  ;;  %6548 = vmatprep.mubr.msk.bf16.mxu1 %vm7000_vm2, %v6999_v44 }
 0x42a   : > { %6558 = vmatprep.subr.bf16.mxu1 %v6999_v44 }
 0x430   : > { %6549 = vmatmul.mubr.msk.bf16.vlgmr.msra.gmra.mxu1 %vm1289_vm3, %v2387_v60 }
 0x431   : > { %6559 = vmatpush3.bf16.msra.mxu1 %v7418_v38  ;;  %6560 = vmatprep.mubr.msk.bf16.mxu1 %vm7000_vm2, %v6999_v44 }
 0x432   : > { %6570 = vmatprep.subr.bf16.mxu1 %v6999_v44 }
 0x4b8   : > { %v7562_v4 = vpop.f32.mrf.mxu1 }
 0x4ba   : > { %v6466_v29 = vpop.f32.mrf.mxu1 }
 0x4bc   : > { %v1679_v30 = vpop.f32.mrf.mxu1 }
 0x4be   : > { %v6467_v53 = vpop.f32.mrf.mxu1 }
 0x4c0   : > { %v1769_v54 = vpop.f32.mrf.mxu1 }
 0x4c1   : > { %v1775_v32 = vmul.f32 0.5, %v1769_v54  ;;  %v6868_v54 = vpop.eup %6867 }
 0x4c2   : > { %v6478_v33 = vpop.f32.mrf.mxu1 }
 0x4c3   : > { %v1776_v62 = vadd.f32 %v1775_v32, %v7493_v24 }
 0x4c4   : > { %v1772_v34 = vpop.f32.mrf.mxu1 }
 0x4c5   : > { %v1777_v36 = vsel %vm1561_vm14, %v1776_v62, -inf }
 0x4c6   : > { %1778 = vmax.xlane.f32.xlu1 %v1777_v36  ;;  %v6479_v38 = vpop.f32.mrf.mxu1  ;;  %v1568_v36 = vsel %vm1561_vm14, %v6868_v54, 0.0 }
 0x4c8   : > { %v1877_v40 = vpop.f32.mrf.mxu1 }
 0x4c9   : > { %v1883_v43 = vmul.f32 0.5, %v1877_v40 }
 0x4ca   : > { %v6490_v45 = vpop.f32.mrf.mxu1 }
 0x4cb   : > { %v1884_v47 = vadd.f32 %v1883_v43, %v7493_v24 }
 0x4cc   : > { %v1880_v48 = vpop.f32.mrf.mxu1 }
 0x4cd   : > { %v1885_v49 = vsel %vm1561_vm14, %v1884_v47, -inf }
 0x4ce   : > { %1886 = vmax.xlane.f32.xlu0 %v1885_v49  ;;  %v6491_v51 = vpop.f32.mrf.mxu1 }
 0x4d0   : > { %v1985_v52 = vpop.f32.mrf.mxu1 }
 0x4d1   : > { %v1991_v56 = vmul.f32 0.5, %v1985_v52 }
 0x4d2   : > { %v6502_v57 = vpop.f32.mrf.mxu1 }
 0x4d3   : > { %v1992_v58 = vadd.f32 %v1991_v56, %v7493_v24 }
 0x4d4   : > { %v1988_v0 = vpop.f32.mrf.mxu1 }
 0x4d5   : > { %v1993_v7 = vsel %vm1561_vm14, %v1992_v58, -inf }
 0x4d6   : > { %1994 = vmax.xlane.f32.xlu1 %v1993_v7  ;;  %v6503_v10 = vpop.f32.mrf.mxu1 }
 0x4d8   : > { %v2093_v11 = vpop.f32.mrf.mxu1 }
 0x4d9   : > { %v2099_v12 = vmul.f32 0.5, %v2093_v11 }
 0x4da   : > { %v6514_v15 = vpop.f32.mrf.mxu1 }
 0x4db   : > { %v2100_v16 = vadd.f32 %v2099_v12, %v7493_v24 }
 0x4dc   : > { %v2096_v22 = vpop.f32.mrf.mxu1 }
 0x4dd   : > { %v2101_v25 = vsel %vm1561_vm14, %v2100_v16, -inf }
 0x4de   : > { %2102 = vmax.xlane.f32.xlu0 %v2101_v25  ;;  %v6515_v31 = vpop.f32.mrf.mxu1 }
 0x4e0   : > { %v2201_v26 = vpop.f32.mrf.mxu1 }
 0x4e1   : > { %v2207_v3 = vmul.f32 0.5, %v2201_v26 }
 0x4e2   : > { %v6526_v60 = vpop.f32.mrf.mxu1 }
 0x4e3   : > { %v2208_v29 = vadd.f32 %v2207_v3, %v7493_v24 }
 0x4e4   : > { %v2204_v30 = vpop.f32.mrf.mxu1 }
 0x4e5   : > { %v2209_v53 = vsel %vm1561_vm14, %v2208_v29, -inf }
 0x4e6   : > { %2210 = vmax.xlane.f32.xlu1 %v2209_v53  ;;  %v6527_v32 = vpop.f32.mrf.mxu1 }
 0x4e8   : > { %v2309_v33 = vpop.f32.mrf.mxu1 }
 0x4e9   : > { %v2315_v34 = vmul.f32 0.5, %v2309_v33 }
 0x4ea   : > { %1569 = vadd.xlane.f32.xlu1 %v1568_v36  ;;  %v6538_v38 = vpop.f32.mrf.mxu1 }
 0x4eb   : > { %v2316_v40 = vadd.f32 %v2315_v34, %v7493_v24 }
 0x4ec   : > { %v2312_v43 = vpop.f32.mrf.mxu1 }
 0x4ed   : > { %v2317_v45 = vsel %vm1561_vm14, %v2316_v40, -inf }
 0x4ee   : > { %2318 = vmax.xlane.f32.xlu0 %v2317_v45  ;;  %v6539_v48 = vpop.f32.mrf.mxu1 }
 0x4f0   : > { %v7578_v49 = vpop.f32.mrf.mxu1 }
 0x4f2   : > { %v6550_v50 = vpop.f32.mrf.mxu1 }
 0x4f4   : > { %v2433_v51 = vpop.f32.mrf.mxu1 }
 0x4f6   : > { %v6551_v52 = vpop.f32.mrf.mxu1 }
 0x54f   : > { %v1779_v55 = vpop.xlane.xlu1 %1778 }
 0x550   : > { %v1780_v56 = vsub.f32 %v1776_v62, %v1779_v55 }
 0x552   : > { %v1781_v57 = vmul.f32 1.442695, %v1780_v56 }
 0x554   : > { %6869 = vpow2.f32 %v1781_v57 }
 0x557   : > { %v1887_v0 = vpop.xlane.xlu0 %1886 }
 0x558   : > { %v1888_v1 = vsub.f32 %v1884_v47, %v1887_v0 }
 0x55a   : > { %v1889_v7 = vmul.f32 1.442695, %v1888_v1 }
 0x55c   : > { %6871 = vpow2.f32 %v1889_v7 }
 0x55f   : > { %v1995_v10 = vpop.xlane.xlu1 %1994 }
 0x560   : > { %v1996_v24 = vsub.f32 %v1992_v58, %v1995_v10 }
 0x561   : > { %v6870_v11 = vpop.eup %6869 }
 0x562   : > { %v1997_v12 = vmul.f32 1.442695, %v1996_v24  ;;  %v1783_v15 = vsel %vm1561_vm14, %v6870_v11, 0.0 }
 0x563   : > { %1784 = vadd.xlane.f32.xlu0 %v1783_v15 }
 0x564   : > { %6873 = vpow2.f32 %v1997_v12 }
 0x567   : > { %v2103_v22 = vpop.xlane.xlu0 %2102 }
 0x568   : > { %v2104_v25 = vsub.f32 %v2100_v16, %v2103_v22 }
 0x569   : > { %v6872_v31 = vpop.eup %6871 }
 0x56a   : > { %v2105_v26 = vmul.f32 1.442695, %v2104_v25  ;;  %v1891_v62 = vsel %vm1561_vm14, %v6872_v31, 0.0 }
 0x56b   : > { %1892 = vadd.xlane.f32.xlu1 %v1891_v62 }
 0x56c   : > { %6875 = vpow2.f32 %v2105_v26 }
 0x56f   : > { %v2211_v3 = vpop.xlane.xlu1 %2210 }
 0x570   : > { %v2212_v47 = vsub.f32 %v2208_v29, %v2211_v3 }
 0x571   : > { %v6874_v60 = vpop.eup %6873 }
 0x572   : > { %v2213_v30 = vmul.f32 1.442695, %v2212_v47  ;;  %v1999_v58 = vsel %vm1561_vm14, %v6874_v60, 0.0 }
 0x573   : > { %v1570_v53 = vpop.xlane.xlu1 %1569  ;;  %2000 = vadd.xlane.f32.xlu0 %v1999_v58 }
 0x574   : > { %6877 = vpow2.f32 %v2213_v30 }
 0x575   : > { %6879 = vrcp.f32 %v1570_v53 }
 0x577   : > { %v2319_v32 = vpop.xlane.xlu0 %2318 }
 0x578   : > { %v2320_v33 = vsub.f32 %v2316_v40, %v2319_v32 }
 0x579   : > { %v6876_v34 = vpop.eup %6875 }
 0x57a   : > { %v2321_v16 = vmul.f32 1.442695, %v2320_v33  ;;  %v2107_v36 = vsel %vm1561_vm14, %v6876_v34, 0.0 }
 0x57b   : > { %2108 = vadd.xlane.f32.xlu1 %v2107_v36 }
 0x57c   : > { %6881 = vpow2.f32 %v2321_v16 }
 0x581   : > { %v6878_v38 = vpop.eup %6877 }
 0x582   : > { %v6880_v43 = vpop.eup %6879  ;;  %v2215_v29 = vsel %vm1561_vm14, %v6878_v38, 0.0 }
 0x583   : > { %2216 = vadd.xlane.f32.xlu0 %v2215_v29  ;;  %v1572_v45 = vmul.f32 %v6880_v43, %v6868_v54 }
 0x585   : > { %v1573_v48 = vpack.c.bf16 %v1572_v45, %v1572_v45 }
 0x587   : > { %6471 = vmatmul.mubr.msk.bf16.vlgmr.msra.gmra.mxu0 %vm1561_vm14, %v1573_v48 }
 0x588   : > { %6481 = vmatpush3.bf16.msra.mxu0 %v7421_v39  ;;  %6482 = vmatprep.mubr.msk.bf16.mxu0 %vm7000_vm2, %v6999_v44 }
 0x589   : > { %v6882_v40 = vpop.eup %6881  ;;  %6492 = vmatprep.subr.bf16.mxu0 %v6999_v44 }
 0x58a   : > { %v2323_v50 = vsel %vm1561_vm14, %v6882_v40, 0.0 }
 0x58b   : > { %2324 = vadd.xlane.f32.xlu1 %v2323_v50 }
 0x5ec   : > { %v1785_v51 = vpop.xlane.xlu0 %1784 }
 0x5ed   : > { %6883 = vrcp.f32 %v1785_v51 }
 0x5f4   : > { %v1893_v52 = vpop.xlane.xlu1 %1892 }
 0x5f5   : > { %6885 = vrcp.f32 %v1893_v52 }
 0x5fa   : > { %v6884_v55 = vpop.eup %6883 }
 0x5fb   : > { %v1787_v54 = vmul.f32 %v6884_v55, %v6870_v11 }
 0x5fc   : > { %v2001_v56 = vpop.xlane.xlu0 %2000 }
 0x5fd   : > { %6887 = vrcp.f32 %v2001_v56  ;;  %v1788_v57 = vpack.c.bf16 %v1787_v54, %v1787_v54 }
 0x5ff   : > { %6483 = vmatmul.mubr.msk.bf16.vlgmr.msra.gmra.mxu0 %vm1561_vm14, %v1788_v57 }
 0x600   : > { %6493 = vmatpush3.bf16.msra.mxu0 %v7429_v42  ;;  %6494 = vmatprep.mubr.msk.bf16.mxu0 %vm7000_vm2, %v6999_v44 }
 0x601   : > { %6504 = vmatprep.subr.bf16.mxu0 %v6999_v44 }
 0x602   : > { %v6886_v39 = vpop.eup %6885 }
 0x603   : > { %v1895_v0 = vmul.f32 %v6886_v39, %v6872_v31 }
 0x604   : > { %v2109_v1 = vpop.xlane.xlu1 %2108 }
 0x605   : > { %6889 = vrcp.f32 %v2109_v1  ;;  %v1896_v7 = vpack.c.bf16 %v1895_v0, %v1895_v0 }
 0x607   : > { %6495 = vmatmul.mubr.msk.bf16.vlgmr.msra.gmra.mxu0 %vm1561_vm14, %v1896_v7 }
 0x608   : > { %6505 = vmatpush3.bf16.msra.mxu0 %v7434_v46  ;;  %6506 = vmatprep.mubr.msk.bf16.mxu0 %vm7000_vm2, %v6999_v44 }
 0x609   : > { %6516 = vmatprep.subr.bf16.mxu0 %v6999_v44 }
 0x60a   : > { %v6888_v42 = vpop.eup %6887 }
 0x60b   : > { %v2003_v10 = vmul.f32 %v6888_v42, %v6874_v60 }
 0x60c   : > { %v2217_v24 = vpop.xlane.xlu0 %2216 }
 0x60d   : > { %6891 = vrcp.f32 %v2217_v24  ;;  %v2004_v11 = vpack.c.bf16 %v2003_v10, %v2003_v10 }
 0x60f   : > { %6507 = vmatmul.mubr.msk.bf16.vlgmr.msra.gmra.mxu0 %vm1561_vm14, %v2004_v11 }
 0x610   : > { %6517 = vmatpush3.bf16.msra.mxu0 %v7446_v59  ;;  %6518 = vmatprep.mubr.msk.bf16.mxu0 %vm7000_vm2, %v6999_v44 }
 0x611   : > { %6528 = vmatprep.subr.bf16.mxu0 %v6999_v44 }
 0x612   : > { %v6890_v46 = vpop.eup %6889 }
 0x613   : > { %v2111_v12 = vmul.f32 %v6890_v46, %v6876_v34 }
 0x614   : > { %v2325_v15 = vpop.xlane.xlu1 %2324 }
 0x615   : > { %6893 = vrcp.f32 %v2325_v15  ;;  %v2112_v22 = vpack.c.bf16 %v2111_v12, %v2111_v12  ;;  %v5907_v12 = vld [vmem:[%s8195_s24 + $0x1] ss:$0 sm:$0xff] }
 0x617   : > { %6519 = vmatmul.mubr.msk.bf16.vlgmr.msra.gmra.mxu0 %vm1561_vm14, %v2112_v22  ;;  %v2436_v22 = vmul.f32 0.5, %v7578_v49 }
 0x618   : > { %6529 = vmatpush3.bf16.msra.mxu0 %v7449_v61  ;;  %6530 = vmatprep.mubr.msk.bf16.mxu0 %vm7000_vm2, %v6999_v44 }
 0x619   : > { %6540 = vmatprep.subr.bf16.mxu0 %v6999_v44 }
 0x61a   : > { %v6892_v59 = vpop.eup %6891 }
 0x61b   : > { %v2219_v25 = vmul.f32 %v6892_v59, %v6878_v38 }
 0x61d   : > { %v2220_v31 = vpack.c.bf16 %v2219_v25, %v2219_v25  ;;  %v7636_v25 = vadd.f32 %v5907_v12, %v7487_v17 }
 0x61f   : > { %6531 = vmatmul.mubr.msk.bf16.vlgmr.msra.gmra.mxu0 %vm1561_vm14, %v2220_v31 }
 0x620   : > { %6541 = vmatpush3.bf16.msra.mxu0 %v7454_v2  ;;  %6542 = vmatprep.mubr.msk.bf16.mxu0 %vm7000_vm2, %v6999_v44  ;;  %v2450_v2 = vmul.f32 %v7351_v63, %v7362_v8 }
 0x621   : > { %6552 = vmatprep.subr.bf16.mxu0 %v6999_v44 }
 0x622   : > { %v6894_v26 = vpop.eup %6893  ;;  %v2451_v3 = vpack.c.bf16 %v2450_v2, %v2450_v2  ;;  %v7641_v2 = vadd.f32 %v2436_v22, %v7636_v25 }
 0x623   : > { %v2327_v62 = vmul.f32 %v6894_v26, %v6882_v40 }
 0x625   : > { %v2328_v61 = vpack.c.bf16 %v2327_v62, %v2327_v62 }
 0x627   : > { %6543 = vmatmul.mubr.msk.bf16.vlgmr.msra.gmra.mxu0 %vm1561_vm14, %v2328_v61 }
 0x628   : > { %6553 = vmatpush3.bf16.xpose.msra.mxu0 %v7548_v27  ;;  %6554 = vmatprep.mubr.msk.bf16.mxu0 %vm7000_vm2, %v6999_v44 }
 0x629   : > { %6564 = vmatprep.subr.bf16.mxu0 %v6999_v44 }
 0x62f   : > { %6555 = vmatmul.mubr.msk.bf16.vlgmr.msra.gmra.mxu0 %vm1289_vm3, %v2451_v3 }
 0x630   : > { %6565 = vmatpush3.bf16.msra.mxu0 %v7457_v5  ;;  %6566 = vmatprep.mubr.msk.bf16.mxu0 %vm7000_vm2, %v6999_v44 }
 0x631   : > { %6576 = vmatprep.subr.bf16.mxu0 %v6999_v44 }
 0x647   : > { %v1722_v47 = vpop.f32.mrf.mxu0 }
 0x648   : > { %v1723_v53 = vadd.f32 %v1722_v47, %v7562_v4  ;;  %v2438_v47 = vsel %vm1561_vm14, %v7641_v2, -inf }
 0x649   : > { %v6472_v60 = vpop.f32.mrf.mxu0 }
 0x64b   : > { %v1725_v30 = vpop.f32.mrf.mxu0 }
 0x64d   : > { %v6473_v58 = vpop.f32.mrf.mxu0 }
 0x6bf   : > { %v1829_v32 = vpop.f32.mrf.mxu0 }
 0x6c0   : > { %v1835_v33 = vadd.f32 %v1829_v32, %v1723_v53 }
 0x6c1   : > { %v6484_v34 = vpop.f32.mrf.mxu0 }
 0x6c3   : > { %v1832_v63 = vpop.f32.mrf.mxu0 }
 0x6c4   : > { %v2603_v63 = vmul.f32 %v7390_v20, %v7362_v8  ;;  %v2819_v20 = vmul.f32 %v7405_v28, %v7362_v8  ;;  %v3035_v28 = vmul.f32 %v7415_v37, %v7362_v8 }
 0x6c5   : > { %v6485_v16 = vpop.f32.mrf.mxu0 }
 0x6c6   : > { %v2604_v16 = vpack.c.bf16 %v2603_v63, %v2603_v63 }
 0x6c7   : > { %v1937_v36 = vpop.f32.mrf.mxu0 }
 0x6c8   : > { %v1943_v38 = vadd.f32 %v1937_v36, %v1835_v33  ;;  %v2711_v36 = vmul.f32 %v7399_v23, %v7362_v8  ;;  %v2927_v23 = vmul.f32 %v7412_v35, %v7362_v8  ;;  %v3143_v35 = vmul.f32 %v7425_v41, %v7362_v8 }
 0x6c9   : > { %v6496_v43 = vpop.f32.mrf.mxu0 }
 0x6ca   : > { %v2820_v43 = vpack.c.bf16 %v2819_v20, %v2819_v20 }
 0x6cb   : > { %v1940_v5 = vpop.f32.mrf.mxu0 }
 0x6cc   : > { %v2928_v5 = vpack.c.bf16 %v2927_v23, %v2927_v23 }
 0x6cd   : > { %v6497_v29 = vpop.f32.mrf.mxu0 }
 0x6ce   : > { %v3036_v29 = vpack.c.bf16 %v3035_v28, %v3035_v28 }
 0x6cf   : > { %v2045_v45 = vpop.f32.mrf.mxu0 }
 0x6d0   : > { %v2051_v48 = vadd.f32 %v2045_v45, %v1943_v38  ;;  %v2712_v38 = vpack.c.bf16 %v2711_v36, %v2711_v36  ;;  %v3144_v45 = vpack.c.bf16 %v3143_v35, %v3143_v35 }
 0x6d1   : > { %v6508_v40 = vpop.f32.mrf.mxu0 }
 0x6d3   : > { %v2048_v50 = vpop.f32.mrf.mxu0 }
 0x6d5   : > { %v6509_v51 = vpop.f32.mrf.mxu0 }
 0x6d7   : > { %v2153_v52 = vpop.f32.mrf.mxu0 }
 0x6d8   : > { %v2159_v55 = vadd.f32 %v2153_v52, %v2051_v48 }
 0x6d9   : > { %v6520_v54 = vpop.f32.mrf.mxu0 }
 0x6db   : > { %v2156_v56 = vpop.f32.mrf.mxu0 }
 0x6dd   : > { %v6521_v4 = vpop.f32.mrf.mxu0 }
 0x6df   : > { %v2261_v57 = vpop.f32.mrf.mxu0 }
 0x6e0   : > { %v2267_v39 = vadd.f32 %v2261_v57, %v2159_v55 }
 0x6e1   : > { %v6532_v0 = vpop.f32.mrf.mxu0 }
 0x6e3   : > { %v2264_v1 = vpop.f32.mrf.mxu0 }
 0x6e5   : > { %v6533_v7 = vpop.f32.mrf.mxu0 }
 0x6e7   : > { %v2369_v42 = vpop.f32.mrf.mxu0 }
 0x6e8   : > { %v7629_v10 = vadd.f32 %v2369_v42, %v2267_v39 }
 0x6e9   : > { %v6544_v24 = vpop.f32.mrf.mxu0 }
 0x6eb   : > { %v2372_v11 = vpop.f32.mrf.mxu0 }
 0x6ed   : > { %v6545_v46 = vpop.f32.mrf.mxu0 }
 0x6ef   : > { %v2491_v15 = vpop.f32.mrf.mxu0 }
 0x6f0   : > { %v2497_v59 = vmul.f32 0.5, %v2491_v15 }
 0x6f1   : > { %v6556_v31 = vpop.f32.mrf.mxu0 }
 0x6f2   : > { %v2498_v26 = vadd.f32 %v2497_v59, %v7636_v25 }
 0x6f3   : > { %v2494_v62 = vpop.f32.mrf.mxu0 }
 0x6f4   : > { %v2499_v61 = vsel %vm1561_vm14, %v2498_v26, -inf }
 0x6f5   : > { %2500 = vmax.xlane.f32.xlu0 %v2499_v61  ;;  %v6557_v3 = vpop.f32.mrf.mxu0 }
 0x6f9   : > { %2439 = vmax.xlane.f32.xlu0 %v2438_v47 }
 0x77e   : > { %v2501_v49 = vpop.xlane.xlu0 %2500 }
 0x77f   : > { %v2502_v60 = vsub.f32 %v2498_v26, %v2501_v49 }
 0x781   : > { %v2503_v30 = vmul.f32 1.442695, %v2502_v60 }
 0x782   : > { %v2440_v7 = vpop.xlane.xlu0 %2439 }
 0x783   : > { %6895 = vpow2.f32 %v2503_v30  ;;  %v2441_v11 = vsub.f32 %v7641_v2, %v2440_v7 }
 0x785   : > { %v2442_v59 = vmul.f32 1.442695, %v2441_v11 }
 0x790   : > { %v6896_v17 = vpop.eup %6895 }
 0x791   : > { %v2505_v58 = vsel %vm1561_vm14, %v6896_v17, 0.0 }
 0x792   : > { %2506 = vadd.xlane.f32.xlu1 %v2505_v58 }
 0x81b   : > { %v2507_v53 = vpop.xlane.xlu1 %2506 }
 0x81c   : > { %6897 = vrcp.f32 %v2507_v53 }
 0x81d   : > { %6899 = vpow2.f32 %v2442_v59 }
 0x829   : > { %v6898_v32 = vpop.eup %6897 }
 0x82a   : > { %v2509_v33 = vmul.f32 %v6898_v32, %v6896_v17 }
 0x82c   : > { %v2510_v34 = vpack.c.bf16 %v2509_v33, %v2509_v33 }
 0x82e   : > { %6561 = vmatmul.mubr.msk.bf16.vlgmr.msra.gmra.mxu1 %vm1561_vm14, %v2510_v34  ;;  %v6900_v34 = vpop.eup %6899 }
 0x82f   : > { %6571 = vmatpush3.bf16.xpose.msra.mxu1 %v7548_v27  ;;  %6572 = vmatprep.mubr.msk.bf16.mxu1 %vm7000_vm2, %v6999_v44 }
 0x830   : > { %6582 = vmatprep.subr.bf16.mxu1 %v6999_v44 }
 0x836   : > { %6573 = vmatmul.mubr.msk.bf16.vlgmr.msra.gmra.mxu1 %vm1289_vm3, %v2604_v16 }
 0x837   : > { %6583 = vmatpush3.bf16.xpose.msra.mxu1 %v7548_v27  ;;  %6584 = vmatprep.mubr.msk.bf16.mxu1 %vm7000_vm2, %v6999_v44 }
 0x838   : > { %6594 = vmatprep.subr.bf16.mxu1 %v6999_v44 }
 0x83e   : > { %6585 = vmatmul.mubr.msk.bf16.vlgmr.msra.gmra.mxu1 %vm1289_vm3, %v2712_v38  ;;  %v2444_v38 = vsel %vm1561_vm14, %v6900_v34, 0.0 }
 0x83f   : > { %6595 = vmatpush3.bf16.xpose.msra.mxu1 %v7548_v27  ;;  %6596 = vmatprep.mubr.msk.bf16.mxu1 %vm7000_vm2, %v6999_v44 }
 0x840   : > { %6606 = vmatprep.subr.bf16.mxu1 %v6999_v44 }
 0x846   : > { %6597 = vmatmul.mubr.msk.bf16.vlgmr.msra.gmra.mxu1 %vm1289_vm3, %v2820_v43 }
 0x847   : > { %6607 = vmatpush3.bf16.xpose.msra.mxu1 %v7548_v27  ;;  %6608 = vmatprep.mubr.msk.bf16.mxu1 %vm7000_vm2, %v6999_v44 }
 0x848   : > { %6618 = vmatprep.subr.bf16.mxu1 %v6999_v44 }
 0x84e   : > { %6609 = vmatmul.mubr.msk.bf16.vlgmr.msra.gmra.mxu1 %vm1289_vm3, %v2928_v5 }
 0x84f   : > { %6619 = vmatpush3.bf16.xpose.msra.mxu1 %v7548_v27  ;;  %6620 = vmatprep.mubr.msk.bf16.mxu1 %vm7000_vm2, %v6999_v44 }
 0x850   : > { %6630 = vmatprep.subr.bf16.mxu1 %v6999_v44 }
 0x856   : > { %6621 = vmatmul.mubr.msk.bf16.vlgmr.msra.gmra.mxu1 %vm1289_vm3, %v3036_v29 }
 0x857   : > { %6631 = vmatpush3.bf16.xpose.msra.mxu1 %v7548_v27  ;;  %6632 = vmatprep.mubr.msk.bf16.mxu1 %vm7000_vm2, %v6999_v44 }
 0x858   : > { %6642 = vmatprep.subr.bf16.mxu1 %v6999_v44 }
 0x85e   : > { %6633 = vmatmul.mubr.msk.bf16.vlgmr.msra.gmra.mxu1 %vm1289_vm3, %v3144_v45 }
 0x85f   : > { %6646 = vmatprep.mubr.msk.bf16.mxu1 %vm7000_vm2, %v6999_v44 }
 0x8ee   : > { %v7691_v37 = vpop.f32.mrf.mxu1 }
 0x8f0   : > { %v6562_v48 = vpop.f32.mrf.mxu1 }
 0x8f2   : > { %v2554_v40 = vpop.f32.mrf.mxu1 }
 0x8f4   : > { %v6563_v50 = vpop.f32.mrf.mxu1 }
 0x8f6   : > { %v2644_v27 = vpop.f32.mrf.mxu1 }
 0x8f7   : > { %v2650_v51 = vmul.f32 0.5, %v2644_v27 }
 0x8f8   : > { %v6574_v52 = vpop.f32.mrf.mxu1 }
 0x8f9   : > { %v2651_v55 = vadd.f32 %v2650_v51, %v7636_v25 }
 0x8fa   : > { %v2647_v54 = vpop.f32.mrf.mxu1 }
 0x8fb   : > { %v2652_v8 = vsel %vm1561_vm14, %v2651_v55, -inf }
 0x8fc   : > { %2653 = vmax.xlane.f32.xlu1 %v2652_v8  ;;  %v6575_v41 = vpop.f32.mrf.mxu1 }
 0x8fe   : > { %v2752_v56 = vpop.f32.mrf.mxu1 }
 0x8ff   : > { %v2758_v4 = vmul.f32 0.5, %v2752_v56 }
 0x900   : > { %v6586_v57 = vpop.f32.mrf.mxu1 }
 0x901   : > { %v2759_v39 = vadd.f32 %v2758_v4, %v7636_v25 }
 0x902   : > { %v2755_v0 = vpop.f32.mrf.mxu1 }
 0x903   : > { %v2760_v1 = vsel %vm1561_vm14, %v2759_v39, -inf }
 0x904   : > { %2761 = vmax.xlane.f32.xlu0 %v2760_v1  ;;  %v6587_v42 = vpop.f32.mrf.mxu1 }
 0x906   : > { %v2860_v24 = vpop.f32.mrf.mxu1 }
 0x907   : > { %v2866_v46 = vmul.f32 0.5, %v2860_v24 }
 0x908   : > { %v6598_v12 = vpop.f32.mrf.mxu1 }
 0x909   : > { %v2867_v15 = vadd.f32 %v2866_v46, %v7636_v25 }
 0x90a   : > { %v2863_v22 = vpop.f32.mrf.mxu1 }
 0x90b   : > { %v2868_v31 = vsel %vm1561_vm14, %v2867_v15, -inf }
 0x90c   : > { %2869 = vmax.xlane.f32.xlu1 %v2868_v31  ;;  %v6599_v26 = vpop.f32.mrf.mxu1 }
 0x90e   : > { %v2968_v62 = vpop.f32.mrf.mxu1 }
 0x90f   : > { %v2974_v61 = vmul.f32 0.5, %v2968_v62 }
 0x910   : > { %v6610_v3 = vpop.f32.mrf.mxu1 }
 0x911   : > { %v2975_v47 = vadd.f32 %v2974_v61, %v7636_v25 }
 0x912   : > { %v2971_v49 = vpop.f32.mrf.mxu1 }
 0x913   : > { %v2976_v60 = vsel %vm1561_vm14, %v2975_v47, -inf }
 0x914   : > { %2977 = vmax.xlane.f32.xlu0 %v2976_v60  ;;  %v6611_v2 = vpop.f32.mrf.mxu1 }
 0x916   : > { %v3076_v30 = vpop.f32.mrf.mxu1 }
 0x917   : > { %v3082_v17 = vmul.f32 0.5, %v3076_v30 }
 0x918   : > { %v6622_v58 = vpop.f32.mrf.mxu1 }
 0x919   : > { %v3083_v53 = vadd.f32 %v3082_v17, %v7636_v25 }
 0x91a   : > { %v3079_v32 = vpop.f32.mrf.mxu1 }
 0x91b   : > { %v3084_v33 = vsel %vm1561_vm14, %v3083_v53, -inf }
 0x91c   : > { %3085 = vmax.xlane.f32.xlu1 %v3084_v33  ;;  %v6623_v63 = vpop.f32.mrf.mxu1 }
 0x91e   : > { %v3184_v16 = vpop.f32.mrf.mxu1 }
 0x91f   : > { %v3190_v36 = vmul.f32 0.5, %v3184_v16 }
 0x920   : > { %v6634_v20 = vpop.f32.mrf.mxu1  ;;  %2445 = vadd.xlane.f32.xlu1 %v2444_v38 }
 0x921   : > { %v3191_v43 = vadd.f32 %v3190_v36, %v7636_v25 }
 0x922   : > { %v3187_v23 = vpop.f32.mrf.mxu1 }
 0x923   : > { %v3192_v5 = vsel %vm1561_vm14, %v3191_v43, -inf }
 0x924   : > { %3193 = vmax.xlane.f32.xlu0 %v3192_v5  ;;  %v6635_v28 = vpop.f32.mrf.mxu1 }
 0x985   : > { %v2654_v29 = vpop.xlane.xlu1 %2653 }
 0x986   : > { %v2655_v35 = vsub.f32 %v2651_v55, %v2654_v29 }
 0x988   : > { %v2656_v45 = vmul.f32 1.442695, %v2655_v35 }
 0x98a   : > { %6901 = vpow2.f32 %v2656_v45 }
 0x98d   : > { %v2762_v48 = vpop.xlane.xlu0 %2761 }
 0x98e   : > { %v2763_v40 = vsub.f32 %v2759_v39, %v2762_v48  ;;  %v6733_v48 = vld [vmem:[%s7174_s27 + $0x8] sm:$0xff]  }
 0x98f   : > { %6643 = vmatpush3.bf16.msra.mxu1 %v6733_v48 }
 0x990   : > { %v2764_v50 = vmul.f32 1.442695, %v2763_v40  ;;  %6644 = vmatprep.subr.bf16.mxu1 %v6999_v44  ;;  %v6734_v40 = vld [vmem:[%s7174_s27] sm:$0xff]   ;;  %s8201_s27 = sld [smem:[#allocation23_spill]] (!%p6101_p6) }
 0x992   : > { %6903 = vpow2.f32 %v2764_v50 }
 0x993   : > { %6645 = vmatpush3.bf16.msra.mxu1 %v6734_v40 }
 0x995   : > { %v2870_v27 = vpop.xlane.xlu1 %2869 }
 0x996   : > { %v2871_v51 = vsub.f32 %v2867_v15, %v2870_v27 }
 0x997   : > { %v6902_v52 = vpop.eup %6901 }
 0x998   : > { %v2872_v54 = vmul.f32 1.442695, %v2871_v51  ;;  %v2658_v8 = vsel %vm1561_vm14, %v6902_v52, 0.0 }
 0x999   : > { %2659 = vadd.xlane.f32.xlu0 %v2658_v8 }
 0x99a   : > { %6905 = vpow2.f32 %v2872_v54 }
 0x99d   : > { %v2978_v25 = vpop.xlane.xlu0 %2977 }
 0x99e   : > { %v2979_v41 = vsub.f32 %v2975_v47, %v2978_v25 }
 0x99f   : > { %v6904_v56 = vpop.eup %6903 }
 0x9a0   : > { %v2980_v4 = vmul.f32 1.442695, %v2979_v41  ;;  %v2766_v55 = vsel %vm1561_vm14, %v6904_v56, 0.0 }
 0x9a1   : > { %2767 = vadd.xlane.f32.xlu1 %v2766_v55 }
 0x9a2   : > { %6907 = vpow2.f32 %v2980_v4 }
 0x9a5   : > { %v3086_v57 = vpop.xlane.xlu1 %3085 }
 0x9a6   : > { %v3087_v39 = vsub.f32 %v3083_v53, %v3086_v57 }
 0x9a7   : > { %v6906_v0 = vpop.eup %6905 }
 0x9a8   : > { %v3088_v1 = vmul.f32 1.442695, %v3087_v39  ;;  %v2874_v7 = vsel %vm1561_vm14, %v6906_v0, 0.0 }
 0x9a9   : > { %2875 = vadd.xlane.f32.xlu0 %v2874_v7  ;;  %v2446_v42 = vpop.xlane.xlu1 %2445 }
 0x9aa   : > { %6909 = vpow2.f32 %v3088_v1 }
 0x9ab   : > { %6911 = vrcp.f32 %v2446_v42 }
 0x9ad   : > { %v3194_v24 = vpop.xlane.xlu0 %3193 }
 0x9ae   : > { %v3195_v11 = vsub.f32 %v3191_v43, %v3194_v24 }
 0x9af   : > { %v6908_v46 = vpop.eup %6907 }
 0x9b0   : > { %v3196_v12 = vmul.f32 1.442695, %v3195_v11  ;;  %v2982_v15 = vsel %vm1561_vm14, %v6908_v46, 0.0 }
 0x9b1   : > { %2983 = vadd.xlane.f32.xlu1 %v2982_v15 }
 0x9b2   : > { %6913 = vpow2.f32 %v3196_v12 }
 0x9b7   : > { %v6910_v22 = vpop.eup %6909 }
 0x9b8   : > { %v6912_v59 = vpop.eup %6911  ;;  %v3090_v31 = vsel %vm1561_vm14, %v6910_v22, 0.0 }
 0x9b9   : > { %3091 = vadd.xlane.f32.xlu0 %v3090_v31  ;;  %v2448_v26 = vmul.f32 %v6912_v59, %v6900_v34 }
 0x9bb   : > { %v2449_v62 = vpack.c.bf16 %v2448_v26, %v2448_v26 }
 0x9bd   : > { %6567 = vmatmul.mubr.msk.bf16.vlgmr.msra.gmra.mxu0 %vm1561_vm14, %v2449_v62 }
 0x9be   : > { %6577 = vmatpush3.bf16.msra.mxu0 %v7460_v6  ;;  %6578 = vmatprep.mubr.msk.bf16.mxu0 %vm7000_vm2, %v6999_v44 }
 0x9bf   : > { %v6914_v61 = vpop.eup %6913  ;;  %6588 = vmatprep.subr.bf16.mxu0 %v6999_v44 }
 0x9c0   : > { %v3198_v3 = vsel %vm1561_vm14, %v6914_v61, 0.0 }
 0x9c1   : > { %3199 = vadd.xlane.f32.xlu1 %v3198_v3 }
 0xa22   : > { %v2660_v47 = vpop.xlane.xlu0 %2659 }
 0xa23   : > { %6915 = vrcp.f32 %v2660_v47  ;;  %v5924_v47 = vld [vmem:[%s8196_s29] ss:$0 sm:$0xff] }
 0xa2a   : > { %v2768_v49 = vpop.xlane.xlu1 %2767 }
 0xa2b   : > { %6917 = vrcp.f32 %v2768_v49 }
 0xa30   : > { %v6916_v60 = vpop.eup %6915 }
 0xa31   : > { %v2662_v2 = vmul.f32 %v6916_v60, %v6902_v52 }
 0xa32   : > { %v2876_v30 = vpop.xlane.xlu0 %2875 }
 0xa33   : > { %6919 = vrcp.f32 %v2876_v30  ;;  %v2663_v17 = vpack.c.bf16 %v2662_v2, %v2662_v2  ;;  %v6935_v30 = vld [vmem:[#allocation2] sm:$0xff] }
 0xa35   : > { %6579 = vmatmul.mubr.msk.bf16.vlgmr.msra.gmra.mxu0 %vm1561_vm14, %v2663_v17 }
 0xa36   : > { %6589 = vmatpush3.bf16.msra.mxu0 %v7463_v9  ;;  %6590 = vmatprep.mubr.msk.bf16.mxu0 %vm7000_vm2, %v6999_v44 }
 0xa37   : > { %6600 = vmatprep.subr.bf16.mxu0 %v6999_v44 }
 0xa38   : > { %v6918_v6 = vpop.eup %6917 }
 0xa39   : > { %v2770_v58 = vmul.f32 %v6918_v6, %v6904_v56 }
 0xa3a   : > { %v2984_v53 = vpop.xlane.xlu1 %2983 }
 0xa3b   : > { %6921 = vrcp.f32 %v2984_v53  ;;  %v2771_v32 = vpack.c.bf16 %v2770_v58, %v2770_v58 }
 0xa3d   : > { %6591 = vmatmul.mubr.msk.bf16.vlgmr.msra.gmra.mxu0 %vm1561_vm14, %v2771_v32  ;;  %v6936_v32 = vld [vmem:[#allocation2 + $0x8] sm:$0xff] }
 0xa3e   : > { %6601 = vmatpush3.bf16.msra.mxu0 %v7470_v13  ;;  %6602 = vmatprep.mubr.msk.bf16.mxu0 %vm7000_vm2, %v6999_v44 }
 0xa3f   : > { %6612 = vmatprep.subr.bf16.mxu0 %v6999_v44 }
 0xa40   : > { %v6920_v9 = vpop.eup %6919 }
 0xa41   : > { %v2878_v33 = vmul.f32 %v6920_v9, %v6906_v0 }
 0xa42   : > { %v3092_v34 = vpop.xlane.xlu0 %3091 }
 0xa43   : > { %6923 = vrcp.f32 %v3092_v34  ;;  %v2879_v63 = vpack.c.bf16 %v2878_v33, %v2878_v33 }
 0xa45   : > { %6603 = vmatmul.mubr.msk.bf16.vlgmr.msra.gmra.mxu0 %vm1561_vm14, %v2879_v63 }
 0xa46   : > { %6613 = vmatpush3.bf16.msra.mxu0 %v7473_v14  ;;  %6614 = vmatprep.mubr.msk.bf16.mxu0 %vm7000_vm2, %v6999_v44 }
 0xa47   : > { %6624 = vmatprep.subr.bf16.mxu0 %v6999_v44 }
 0xa48   : > { %v6922_v13 = vpop.eup %6921 }
 0xa49   : > { %v2986_v16 = vmul.f32 %v6922_v13, %v6908_v46 }
 0xa4a   : > { %v3200_v36 = vpop.xlane.xlu1 %3199 }
 0xa4b   : > { %6925 = vrcp.f32 %v3200_v36  ;;  %v2987_v38 = vpack.c.bf16 %v2986_v16, %v2986_v16 }
 0xa4d   : > { %6615 = vmatmul.mubr.msk.bf16.vlgmr.msra.gmra.mxu0 %vm1561_vm14, %v2987_v38 }
 0xa4e   : > { %6625 = vmatpush3.bf16.msra.mxu0 %v7476_v18  ;;  %6626 = vmatprep.mubr.msk.bf16.mxu0 %vm7000_vm2, %v6999_v44 }
 0xa4f   : > { %6636 = vmatprep.subr.bf16.mxu0 %v6999_v44 }
 0xa50   : > { %v6924_v14 = vpop.eup %6923 }
 0xa51   : > { %v3094_v20 = vmul.f32 %v6924_v14, %v6910_v22 }
 0xa53   : > { %v3095_v43 = vpack.c.bf16 %v3094_v20, %v3094_v20 }
 0xa55   : > { %6627 = vmatmul.mubr.msk.bf16.vlgmr.msra.gmra.mxu0 %vm1561_vm14, %v3095_v43 }
 0xa56   : > { %6637 = vmatpush3.bf16.msra.mxu0 %v7479_v19  ;;  %6638 = vmatprep.mubr.msk.bf16.mxu0 %vm7000_vm2, %v6999_v44 }
 0xa58   : > { %v6926_v23 = vpop.eup %6925 }
 0xa59   : > { %v3202_v5 = vmul.f32 %v6926_v23, %v6914_v61 }
 0xa5b   : > { %v3203_v18 = vpack.c.bf16 %v3202_v5, %v3202_v5  ;;  %v3379_v5 = vld [vmem:[%s7192_s22 + $0x80] sm:$0xff] }
 0xa5d   : > { %6639 = vmatmul.mubr.msk.bf16.vlgmr.msra.gmra.mxu0 %vm1561_vm14, %v3203_v18  ;;  %v3387_v18 = vld [vmem:[%s7192_s22 + $0xc0] sm:$0xff] }
 0xa7d   : > { %v2597_v28 = vpop.f32.mrf.mxu0 }
 0xa7e   : > { %v2598_v1 = vadd.f32 %v2597_v28, %v7691_v37  ;;  %v3380_v28 = vld [vmem:[%s7192_s22 + $0x88] sm:$0xff] }
 0xa7f   : > { %v6568_v29 = vpop.f32.mrf.mxu0 }
 0xa80   : > { %v5947_v29 = vcombine.high %v3379_v5, %v3387_v18 }
 0xa81   : > { %v2600_v35 = vpop.f32.mrf.mxu0 }
 0xa82   : > { %v3388_v35 = vld [vmem:[%s7192_s22 + $0xc8] sm:$0xff]  ;;  %3654 = vmatprep.subr.bf16.mxu0 %v5947_v29  ;;  %v3386_v29 = vld [vmem:[%s7192_s22 + $0xb8] sm:$0xff] }
 0xa83   : > { %v6569_v45 = vpop.f32.mrf.mxu0  ;;  %v5948_v48 = vcombine.low %v3380_v28, %v3388_v35  ;;  %v5949_v40 = vcombine.high %v3380_v28, %v3388_v35  ;;  %v3393_v28 = vld [vmem:[%s7192_s22 + $0xf0] sm:$0xff]  ;;  %v3394_v35 = vld [vmem:[%s7192_s22 + $0xf8] sm:$0xff] }
 0xa84   : > { %v5946_v45 = vcombine.low %v3379_v5, %v3387_v18  ;;  %v3385_v18 = vld [vmem:[%s7192_s22 + $0xb0] sm:$0xff] }
 0xa85   : > { %3697 = vmatprep.subr.bf16.mxu1 %v5949_v40  ;;  %v5959_v40 = vcombine.high %v3385_v18, %v3393_v28 }
 0xa86   : > { %3655 = vmatpush1.bf16.msra.mxu0 %v5946_v45 }
 0xaf5   : > { %v2704_v50 = vpop.f32.mrf.mxu0 }
 0xaf6   : > { %v2710_v7 = vadd.f32 %v2704_v50, %v2598_v1  ;;  %v3363_v50 = vld [vmem:[%s7192_s22] sm:$0xff] }
 0xaf7   : > { %v6580_v19 = vpop.f32.mrf.mxu0 }
 0xaf8   : > { %v3371_v19 = vld [vmem:[%s7192_s22 + $0x40] sm:$0xff] }
 0xaf9   : > { %v2707_v27 = vpop.f32.mrf.mxu0 }
 0xafa   : > { %v3364_v27 = vld [vmem:[%s7192_s22 + $0x8] sm:$0xff] }
 0xafb   : > { %v6581_v51 = vpop.f32.mrf.mxu0 }
 0xafc   : > { %v5931_v51 = vcombine.high %v3363_v50, %v3371_v19 }
 0xafd   : > { %v2812_v52 = vpop.f32.mrf.mxu0 }
 0xafe   : > { %v2818_v24 = vadd.f32 %v2812_v52, %v2710_v7  ;;  %v3372_v52 = vld [vmem:[%s7192_s22 + $0x48] sm:$0xff]  ;;  %3656 = vmatprep.subr.bf16.mxu0 %v5931_v51  ;;  %v3370_v51 = vld [vmem:[%s7192_s22 + $0x38] sm:$0xff] }
 0xaff   : > { %v6592_v54 = vpop.f32.mrf.mxu0 }
 0xb00   : > { %v5930_v54 = vcombine.low %v3363_v50, %v3371_v19  ;;  %v5961_v50 = vcombine.high %v3386_v29, %v3394_v35  ;;  %v3369_v19 = vld [vmem:[%s7192_s22 + $0x30] sm:$0xff] }
 0xb01   : > { %v2815_v8 = vpop.f32.mrf.mxu0 }
 0xb02   : > { %v5932_v8 = vcombine.low %v3364_v27, %v3372_v52  ;;  %3657 = vmatpush1.bf16.msra.mxu0 %v5930_v54  ;;  %v5958_v54 = vcombine.low %v3385_v18, %v3393_v28 }
 0xb03   : > { %v6593_v25 = vpop.f32.mrf.mxu0 }
 0xb04   : > { %v5933_v25 = vcombine.high %v3364_v27, %v3372_v52  ;;  %v3377_v27 = vld [vmem:[%s7192_s22 + $0x70] sm:$0xff]  ;;  %v3378_v52 = vld [vmem:[%s7192_s22 + $0x78] sm:$0xff] }
 0xb05   : > { %v2920_v41 = vpop.f32.mrf.mxu0 }
 0xb06   : > { %v2926_v46 = vadd.f32 %v2920_v41, %v2818_v24  ;;  %v7001_v41 = vmov 0  }
 0xb07   : > { %v6604_v56 = vpop.f32.mrf.mxu0  ;;  %3674 = vmatprep.mubr.bf16.mxu0 %v7001_v41 }
 0xb08   : > { %v3381_v56 = vld [vmem:[%s7192_s22 + $0x90] sm:$0xff] }
 0xb09   : > { %v2923_v4 = vpop.f32.mrf.mxu0 }
 0xb0a   : > { %v3389_v4 = vld [vmem:[%s7192_s22 + $0xd0] sm:$0xff] }
 0xb0b   : > { %v6605_v55 = vpop.f32.mrf.mxu0 }
 0xb0c   : > { %v3382_v55 = vld [vmem:[%s7192_s22 + $0x98] sm:$0xff] }
 0xb0d   : > { %v3028_v57 = vpop.f32.mrf.mxu0 }
 0xb0e   : > { %v3034_v15 = vadd.f32 %v3028_v57, %v2926_v46  ;;  %v5950_v57 = vcombine.low %v3381_v56, %v3389_v4 }
 0xb0f   : > { %v6616_v39 = vpop.f32.mrf.mxu0 }
 0xb10   : > { %v5951_v39 = vcombine.high %v3381_v56, %v3389_v4  ;;  %v5945_v56 = vcombine.high %v3370_v51, %v3378_v52  ;;  %v5942_v4 = vcombine.low %v3369_v19, %v3377_v27 }
 0xb11   : > { %v3031_v0 = vpop.f32.mrf.mxu0 }
 0xb12   : > { %v3390_v0 = vld [vmem:[%s7192_s22 + $0xd8] sm:$0xff]  ;;  %3740 = vmatprep.subr.bf16.mxu0 %v5951_v39 }
 0xb13   : > { %v6617_v44 = vpop.f32.mrf.mxu0  ;;  %v5952_v1 = vcombine.low %v3382_v55, %v3390_v0  ;;  %v6736_v39 = vld [vmem:[%s7207_s19 + $0xf8] sm:$0xff]  }
 0xb14   : > { %v5953_v44 = vcombine.high %v3382_v55, %v3390_v0  ;;  %v5944_v55 = vcombine.low %v3370_v51, %v3378_v52  ;;  %v6737_v0 = vld [vmem:[%s7207_s19 + $0x38] sm:$0xff]  }
 0xb15   : > { %v3136_v42 = vpop.f32.mrf.mxu0 }
 0xb16   : > { %v3142_v59 = vadd.f32 %v3136_v42, %v3034_v15 }
 0xb17   : > { %v6628_v11 = vpop.f32.mrf.mxu0 }
 0xb19   : > { %v3139_v12 = vpop.f32.mrf.mxu0 }
 0xb1b   : > { %v6629_v22 = vpop.f32.mrf.mxu0 }
 0xb1d   : > { %v3244_v31 = vpop.f32.mrf.mxu0 }
 0xb1e   : > { %v3250_v26 = vadd.f32 %v3244_v31, %v3142_v59  ;;  %v5928_v59 = vld [vmem:[%s8197_s5] ss:$0 sm:$0xff] }
 0xb1f   : > { %v6640_v62 = vpop.f32.mrf.mxu0 }
 0xb20   : > { %v3251_v61 = vpack.c.bf16 %v3250_v26, %v7629_v10 }
 0xb21   : > { %v3247_v3 = vpop.f32.mrf.mxu0 }
 0xb22   : > { %6647 = vmatmul.mubr.msk.bf16.vlgmr.msra.gmra.mxu1 %vm1289_vm3, %v3251_v61  ;;  %v5929_v61 = vld [vmem:[%s8198_s14] ss:$0 sm:$0xff] }
 0xb23   : > { %v6641_v37 = vpop.f32.mrf.mxu0  ;;  %3698 = vmatpush1.bf16.msra.mxu1 %v5948_v48  ;;  %3717 = vmatprep.mubr.bf16.mxu1 %v7001_v41 }
 0xb24   : > { %3699 = vmatprep.subr.bf16.mxu1 %v5933_v25  ;;  %v3365_v37 = vld [vmem:[%s7192_s22 + $0x10] sm:$0xff]  ;;  %v5943_v25 = vcombine.high %v3369_v19, %v3377_v27 }
 0xb27   : > { %3700 = vmatpush1.bf16.msra.mxu1 %v5932_v8  ;;  %v5960_v8 = vcombine.low %v3386_v29, %v3394_v35 }
 0xb28   : > { %3783 = vmatprep.subr.bf16.mxu1 %v5953_v44  ;;  %v6739_v44 = vld [vmem:[%s7207_s19 + $0x70] sm:$0xff]  }
 0xbe2   : > { %v3308_v49 = vpop.f32.mrf.mxu1 }
 0xbe3   : > { %v3309_v60 = vadd.f32 %v5924_v47, %v3308_v49  ;;  %v3366_v49 = vld [vmem:[%s7192_s22 + $0x18] sm:$0xff] }
 0xbe4   : > { %v6648_v2 = vpop.f32.mrf.mxu1 }
 0xbe5   : > { %v3315_v17 = vadd.f32 %v6935_v30, %v3309_v60  ;;  %v3374_v60 = vld [vmem:[%s7192_s22 + $0x58] sm:$0xff] }
 0xbe6   : > { %v3311_v6 = vpop.f32.mrf.mxu1 }
 0xbe7   : > { %v3312_v58 = vadd.f32 %v5924_v47, %v3311_v6  ;;  %v3319_v53 = vsel %vm1289_vm3, %v3315_v17, 0.0  ;;  %v3373_v47 = vld [vmem:[%s7192_s22 + $0x50] sm:$0xff] }
 0xbe8   : > { %3320 = vadd.xlane.f32.xlu0 %v3319_v53  ;;  %v6649_v10 = vpop.f32.mrf.mxu1  ;;  %v5935_v6 = vcombine.high %v3365_v37, %v3373_v47  ;;  %v3383_v53 = vld [vmem:[%s7192_s22 + $0xa0] sm:$0xff] }
 0xbe9   : > { %v3316_v9 = vadd.f32 %v6936_v32, %v3312_v58  ;;  %v5937_v58 = vcombine.high %v3366_v49, %v3374_v60  ;;  %v3391_v10 = vld [vmem:[%s7192_s22 + $0xe0] sm:$0xff]  ;;  %v3384_v32 = vld [vmem:[%s7192_s22 + $0xa8] sm:$0xff] }
 0xbeb   : > { %v3322_v33 = vsel %vm1289_vm3, %v3316_v9, 0.0 }
 0xbec   : > { %3323 = vadd.xlane.f32.xlu1 %v3322_v33  ;;  %v5934_v33 = vcombine.low %v3365_v37, %v3373_v47  ;;  %v6755_v37 = vld [vmem:[%s7207_s19 + $0x50] sm:$0xff]  }
 0xbed   : > { %v6756_v47 = vld [vmem:[%s7207_s19 + $0xd0] sm:$0xff]  }
 0xc71   : > { %v3321_v34 = vpop.xlane.xlu0 %3320 }
 0xc72   : > { %v3326_v63 = vmul.f32 0.03125, %v3321_v34  ;;  %v5936_v34 = vcombine.low %v3366_v49, %v3374_v60  ;;  %v6757_v49 = vld [vmem:[%s7207_s19 + $0x10] sm:$0xff]  }
 0xc73   : > { %v6758_v60 = vld [vmem:[%s7207_s19 + $0x90] sm:$0xff]  }
 0xc74   : > { %v3328_v13 = vsub.f32 %v3315_v17, %v3326_v63  ;;  %v5955_v63 = vcombine.high %v3383_v53, %v3391_v10 }
 0xc75   : > { %v3324_v16 = vpop.xlane.xlu1 %3323 }
 0xc76   : > { %v3327_v36 = vmul.f32 0.03125, %v3324_v16  ;;  %v3330_v38 = vmul.f32 %v3328_v13, %v3328_v13  ;;  %v3367_v16 = vld [vmem:[%s7192_s22 + $0x20] sm:$0xff] }
 0xc78   : > { %v3329_v14 = vsub.f32 %v3316_v9, %v3327_v36  ;;  %v3332_v20 = vsel %vm1289_vm3, %v3330_v38, 0.0  ;;  %v3392_v9 = vld [vmem:[%s7192_s22 + $0xe8] sm:$0xff]  ;;  %v3375_v36 = vld [vmem:[%s7192_s22 + $0x60] sm:$0xff] }
 0xc79   : > { %3333 = vadd.xlane.f32.xlu0 %v3332_v20  ;;  %v3368_v38 = vld [vmem:[%s7192_s22 + $0x28] sm:$0xff]  ;;  %v5954_v20 = vcombine.low %v3383_v53, %v3391_v10  ;;  %v5938_v45 = vcombine.low %v3367_v16, %v3375_v36  ;;  %v6763_v10 = vld [vmem:[%s7207_s19 + $0x40] sm:$0xff]  }
 0xc7a   : > { %v3331_v43 = vmul.f32 %v3329_v14, %v3329_v14  ;;  %v6762_v53 = vld [vmem:[%s7207_s19 + $0x88] sm:$0xff]  }
 0xc7c   : > { %v3335_v23 = vsel %vm1289_vm3, %v3331_v43, 0.0  ;;  %v5956_v43 = vcombine.low %v3384_v32, %v3392_v9 }
 0xc7d   : > { %3336 = vadd.xlane.f32.xlu1 %v3335_v23  ;;  %v5939_v23 = vcombine.high %v3367_v16, %v3375_v36  ;;  %v3413_v16 = vsub.s32 3, %v7482_v21  ;;  %v3401_v36 = vsub.s32 0, %v7482_v21 }
 0xd02   : > { %v3334_v7 = vpop.xlane.xlu0 %3333 }
 0xd03   : > { %v3338_v42 = vmul.f32 0.03125, %v3334_v7  ;;  %v6740_v7 = vld [vmem:[%s7207_s19 + $0xf0] sm:$0xff]  }
 0xd05   : > { %v3340_v24 = vadd.f32 1e-05, %v3338_v42  ;;  %v6742_v42 = vld [vmem:[%s7207_s19 + $0xb0] sm:$0xff]  }
 0xd06   : > { %v3337_v11 = vpop.xlane.xlu1 %3336 }
 0xd07   : > { %6927 = vrsqrt.f32 %v3340_v24  ;;  %v3339_v46 = vmul.f32 0.03125, %v3337_v11  ;;  %v6743_v24 = vld [vmem:[%s7207_s19 + $0x68] sm:$0xff]  }
 0xd08   : > { %v6744_v11 = vld [vmem:[%s7207_s19 + $0xe8] sm:$0xff]  }
 0xd09   : > { %v3341_v12 = vadd.f32 1e-05, %v3339_v46  ;;  %v6745_v46 = vld [vmem:[%s7207_s19 + $0x28] sm:$0xff]  }
 0xd0b   : > { %6929 = vrsqrt.f32 %v3341_v12  ;;  %v6746_v12 = vld [vmem:[%s7207_s19 + $0xa8] sm:$0xff]  }
 0xd14   : > { %v6928_v15 = vpop.eup %6927 }
 0xd15   : > { %v3344_v22 = vmul.f32 %v6928_v15, %v3328_v13  ;;  %v5957_v13 = vcombine.high %v3384_v32, %v3392_v9  ;;  %v6747_v15 = vld [vmem:[%s7207_s19 + $0x60] sm:$0xff]  }
 0xd16   : > { %v6764_v32 = vld [vmem:[%s7207_s19 + $0xc0] sm:$0xff]  }
 0xd17   : > { %v3352_v26 = vmul.f32 %v5928_v59, %v3344_v22  ;;  %v6748_v22 = vld [vmem:[%s7207_s19 + $0xe0] sm:$0xff]  }
 0xd18   : > { %v6930_v31 = vpop.eup %6929  ;;  %v6765_v9 = vld [vmem:[%s7207_s19] sm:$0xff]  }
 0xd19   : > { %v3345_v62 = vmul.f32 %v6930_v31, %v3329_v14  ;;  %v7786_v2 = vadd.f32 %v5929_v61, %v3352_v26  ;;  %v3376_v14 = vld [vmem:[%s7192_s22 + $0x68] sm:$0xff]  ;;  %v6750_v31 = vld [vmem:[%s7207_s19 + $0xa0] sm:$0xff]   ;;  %v6751_v26 = vld [vmem:[%s7207_s19 + $0x58] sm:$0xff]  }
 0xd1a   : > { %v5941_v5 = vcombine.high %v3368_v38, %v3376_v14  ;;  %v5940_v48 = vcombine.low %v3368_v38, %v3376_v14  ;;  %v3409_v38 = vsub.s32 2, %v7482_v21  ;;  %v7871_v14 = vld [vmem:[%s7197_s10] sm:$0xff] }
 0xd1b   : > { %v3353_v3 = vmul.f32 %v5928_v59, %v3345_v62  ;;  %v6749_v59 = vld [vmem:[%s7207_s19 + $0x20] sm:$0xff]   ;;  %v6752_v62 = vld [vmem:[%s7207_s19 + $0xd8] sm:$0xff]   ;;  %v3402_v18 = vrot.slane %v7871_v14, %v3401_v36 }
 0xd1c   : > { %v3410_v28 = vrot.slane %v7871_v14, %v3409_v38 }
 0xd1d   : > { %v7788_v30 = vadd.f32 %v5929_v61, %v3353_v3  ;;  %v6753_v61 = vld [vmem:[%s7207_s19 + $0x18] sm:$0xff]  }
 0xd1e   : > { %v6754_v3 = vld [vmem:[%s7207_s19 + $0x98] sm:$0xff]  }
 0xd1f   : > { %v7792_v17 = vpack.c.bf16 %v7788_v30, %v7786_v2 }
 0xd21   : > { %5962 = vmatmul.mubr.msk.bf16.vlgmr.msra.gmra.mxu0 %vm1289_vm3, %v7792_v17  ;;  %5963 = vmatmul.mubr.msk.bf16.vlgmr.msra.gmra.mxu1 %vm1289_vm3, %v7792_v17 }
 0xd22   : > { %3741 = vmatpush1.bf16.msra.mxu0 %v5950_v57  ;;  %3784 = vmatpush1.bf16.msra.mxu1 %v5952_v1  ;;  %v6735_v57 = vld [vmem:[%s7207_s19 + $0x78] sm:$0xff]  }
 0xd23   : > { %3742 = vmatprep.subr.bf16.mxu0 %v5935_v6  ;;  %3785 = vmatprep.subr.bf16.mxu1 %v5937_v58  ;;  %v6738_v1 = vld [vmem:[%s7207_s19 + $0xb8] sm:$0xff]   ;;  %v6760_v6 = vld [vmem:[%s7207_s19 + $0xc8] sm:$0xff]  }
 0xd24   : > { %3760 = vmatprep.mubr.bf16.mxu0 %v7001_v41  ;;  %3803 = vmatprep.mubr.bf16.mxu1 %v7001_v41  ;;  %v6761_v58 = vld [vmem:[%s7207_s19 + $0x8] sm:$0xff]  }
 0xd26   : > { %3743 = vmatpush1.bf16.msra.mxu0 %v5934_v33  ;;  %3786 = vmatpush1.bf16.msra.mxu1 %v5936_v34  ;;  %v6766_v33 = vld [vmem:[%s7207_s19 + $0x80] sm:$0xff]   ;;  %v6767_v34 = vld [vmem:[%s7207_s19 + $0x178] sm:$0xff]  }
 0xd27   : > { %3826 = vmatprep.subr.bf16.mxu0 %v5955_v63  ;;  %3869 = vmatprep.subr.bf16.mxu1 %v5957_v13  ;;  %v6768_v63 = vld [vmem:[%s7207_s19 + $0x1f8] sm:$0xff]   ;;  %v3405_v13 = vsub.s32 1, %v7482_v21 }
 0xd29   : > { %5964 = vmatmul.mubr.msk.bf16.vlgmr.msra.gmra.mxu0 %vm1289_vm3, %v7792_v17  ;;  %5965 = vmatmul.mubr.msk.bf16.vlgmr.msra.gmra.mxu1 %vm1289_vm3, %v7792_v17 }
 0xd2a   : > { %3827 = vmatpush1.bf16.msra.mxu0 %v5954_v20  ;;  %3870 = vmatpush1.bf16.msra.mxu1 %v5956_v43 }
 0xd2b   : > { %3828 = vmatprep.subr.bf16.mxu0 %v5939_v23  ;;  %3871 = vmatprep.subr.bf16.mxu1 %v5941_v5  ;;  %v3406_v23 = vrot.slane %v7871_v14, %v3405_v13  ;;  %v3414_v5 = vrot.slane %v7871_v14, %v3413_v16 }
 0xd2c   : > { %3846 = vmatprep.mubr.bf16.mxu0 %v7001_v41  ;;  %3889 = vmatprep.mubr.bf16.mxu1 %v7001_v41 }
 0xd2e   : > { %3829 = vmatpush1.bf16.msra.mxu0 %v5938_v45  ;;  %3872 = vmatpush1.bf16.msra.mxu1 %v5940_v48 }
 0xd2f   : > { %3912 = vmatprep.subr.bf16.mxu0 %v5959_v40  ;;  %3955 = vmatprep.subr.bf16.mxu1 %v5961_v50  ;;  %v3421_v40 = vsub.s32 5, %v7482_v21  ;;  %v3429_v50 = vsub.s32 7, %v7482_v21 }
 0xd31   : > { %5966 = vmatmul.mubr.msk.bf16.vlgmr.msra.gmra.mxu0 %vm1289_vm3, %v7792_v17  ;;  %5967 = vmatmul.mubr.msk.bf16.vlgmr.msra.gmra.mxu1 %vm1289_vm3, %v7792_v17 }
 0xd32   : > { %3913 = vmatpush1.bf16.msra.mxu0 %v5958_v54  ;;  %3956 = vmatpush1.bf16.msra.mxu1 %v5960_v8 }
 0xd33   : > { %3914 = vmatprep.subr.bf16.mxu0 %v5943_v25  ;;  %3957 = vmatprep.subr.bf16.mxu1 %v5945_v56 }
 0xd34   : > { %3932 = vmatprep.mubr.bf16.mxu0 %v7001_v41  ;;  %3975 = vmatprep.mubr.bf16.mxu1 %v7001_v41  ;;  %v6741_v41 = vld [vmem:[%s7207_s19 + $0x30] sm:$0xff]  }
 0xd36   : > { %3915 = vmatpush1.bf16.msra.mxu0 %v5942_v4  ;;  %3958 = vmatpush1.bf16.msra.mxu1 %v5944_v55 }
 0xd37   : > { %6227 = vmatprep.subr.bf16.mxu0 %v6735_v57  ;;  %6249 = vmatprep.subr.bf16.mxu1 %v6736_v39 }
 0xd39   : > { %5968 = vmatmul.mubr.msk.bf16.vlgmr.msra.gmra.mxu0 %vm1289_vm3, %v7792_v17  ;;  %5969 = vmatmul.mubr.msk.bf16.vlgmr.msra.gmra.mxu1 %vm1289_vm3, %v7792_v17  ;;  %v6759_v17 = vld [vmem:[%s7207_s19 + $0x48] sm:$0xff]  }
 0xd3a   : > { %6228 = vmatpush3.bf16.msra.mxu0 %v6737_v0  ;;  %6250 = vmatpush3.bf16.msra.mxu1 %v6738_v1 }
 0xd3b   : > { %6229 = vmatprep.subr.bf16.mxu0 %v6739_v44  ;;  %6251 = vmatprep.subr.bf16.mxu1 %v6740_v7  ;;  %v3422_v44 = vrot.slane %v7871_v14, %v3421_v40  ;;  %v3430_v7 = vrot.slane %v7871_v14, %v3429_v50 }
 0xd3e   : > { %6230 = vmatpush3.bf16.msra.mxu0 %v6741_v41  ;;  %6252 = vmatpush3.bf16.msra.mxu1 %v6742_v42 }
 0xd3f   : > { %6231 = vmatprep.subr.bf16.mxu0 %v6743_v24  ;;  %6253 = vmatprep.subr.bf16.mxu1 %v6744_v11 }
 0xd42   : > { %6232 = vmatpush3.bf16.msra.mxu0 %v6745_v46  ;;  %6254 = vmatpush3.bf16.msra.mxu1 %v6746_v12 }
 0xd43   : > { %6233 = vmatprep.subr.bf16.mxu0 %v6747_v15  ;;  %6255 = vmatprep.subr.bf16.mxu1 %v6748_v22 }
 0xd46   : > { %6234 = vmatpush3.bf16.msra.mxu0 %v6749_v59  ;;  %6256 = vmatpush3.bf16.msra.mxu1 %v6750_v31 }
 0xd47   : > { %6235 = vmatprep.subr.bf16.mxu0 %v6751_v26  ;;  %6257 = vmatprep.subr.bf16.mxu1 %v6752_v62  ;;  %v6769_v26 = vld [vmem:[%s7207_s19 + $0x138] sm:$0xff]  }
 0xd48   : > { %v6770_v62 = vld [vmem:[%s7207_s19 + $0x1b8] sm:$0xff]  }
 0xd4a   : > { %6236 = vmatpush3.bf16.msra.mxu0 %v6753_v61  ;;  %6258 = vmatpush3.bf16.msra.mxu1 %v6754_v3 }
 0xd4b   : > { %6237 = vmatprep.subr.bf16.mxu0 %v6755_v37  ;;  %6259 = vmatprep.subr.bf16.mxu1 %v6756_v47 }
 0xd4e   : > { %6238 = vmatpush3.bf16.msra.mxu0 %v6757_v49  ;;  %6260 = vmatpush3.bf16.msra.mxu1 %v6758_v60  ;;  %v6771_v49 = vld [vmem:[%s7207_s19 + $0x170] sm:$0xff]  }
 0xd4f   : > { %6239 = vmatprep.subr.bf16.mxu0 %v6759_v17  ;;  %6261 = vmatprep.subr.bf16.mxu1 %v6760_v6  ;;  %v6772_v60 = vld [vmem:[%s7207_s19 + $0x1f0] sm:$0xff]  }
 0xd52   : > { %6240 = vmatpush3.bf16.msra.mxu0 %v6761_v58  ;;  %6262 = vmatpush3.bf16.msra.mxu1 %v6762_v53 }
 0xd53   : > { %6241 = vmatprep.subr.bf16.mxu0 %v6763_v10  ;;  %6263 = vmatprep.subr.bf16.mxu1 %v6764_v32 }
 0xd56   : > { %6242 = vmatpush3.bf16.msra.mxu0 %v6765_v9  ;;  %6264 = vmatpush3.bf16.msra.mxu1 %v6766_v33  ;;  %v6773_v9 = vld [vmem:[%s7207_s19 + $0x130] sm:$0xff]  }
 0xd57   : > { %6271 = vmatprep.subr.bf16.mxu0 %v6767_v34  ;;  %6293 = vmatprep.subr.bf16.mxu1 %v6768_v63  ;;  %v6774_v33 = vld [vmem:[%s7207_s19 + $0x1b0] sm:$0xff]   ;;  %v6775_v34 = vld [vmem:[%s7207_s19 + $0x168] sm:$0xff]  }
 0xde1   : > { %v3676_v20 = vpop.f32.mrf.mxu0  ;;  %v3719_v43 = vpop.f32.mrf.mxu1 }
 0xde2   : > { %v3677_v54 = vadd.f32 %v3676_v20, %v3402_v18  ;;  %v3720_v8 = vadd.f32 %v3719_v43, %v3410_v28 }
 0xde3   : > { %v3678_v29 = vpop.f32.mrf.mxu0  ;;  %v3721_v35 = vpop.f32.mrf.mxu1 }
 0xde4   : > { %v3679_v19 = vadd.f32 %v3678_v29, %v3406_v23  ;;  %v3722_v27 = vadd.f32 %v3721_v35, %v3414_v5  ;;  %v3986_v46 = vmax.f32 %v3677_v54, 0.0  ;;  %v3988_v12 = vmax.f32 %v3720_v8, 0.0  ;;  %v6777_v29 = vld [vmem:[%s7207_s19 + $0x128] sm:$0xff]   ;;  %v6783_v54 = vld [vmem:[%s7207_s19 + $0x158] sm:$0xff]  }
 0xde5   : > { %v3680_v45 = vpop.f32.mrf.mxu0  ;;  %v3723_v48 = vpop.f32.mrf.mxu1  ;;  %v6778_v35 = vld [vmem:[%s7207_s19 + $0x1a8] sm:$0xff]   ;;  %v6784_v8 = vld [vmem:[%s7207_s19 + $0x1d8] sm:$0xff]  }
 0xde6   : > { %v3681_v51 = vadd.f32 %v3680_v45, %v3402_v18  ;;  %v3724_v52 = vadd.f32 %v3723_v48, %v3410_v28  ;;  %v3987_v41 = vmax.f32 %v3679_v19, 0.0  ;;  %v3989_v42 = vmax.f32 %v3722_v27, 0.0  ;;  %v6779_v45 = vld [vmem:[%s7207_s19 + $0x160] sm:$0xff]  }
 0xde7   : > { %v3682_v25 = vpop.f32.mrf.mxu0  ;;  %v3725_v56 = vpop.f32.mrf.mxu1  ;;  %v6780_v48 = vld [vmem:[%s7207_s19 + $0x1e0] sm:$0xff]  }
 0xde8   : > { %v3683_v4 = vadd.f32 %v3682_v25, %v3406_v23  ;;  %v3726_v55 = vadd.f32 %v3725_v56, %v3414_v5  ;;  %v4002_v57 = vmax.f32 %v3681_v51, 0.0  ;;  %v4004_v39 = vmax.f32 %v3724_v52, 0.0  ;;  %v6776_v5 = vld [vmem:[%s7207_s19 + $0x1e8] sm:$0xff]   ;;  %v6781_v27 = vld [vmem:[%s7207_s19 + $0x120] sm:$0xff]   ;;  %v6785_v56 = vld [vmem:[%s7207_s19 + $0x118] sm:$0xff]  }
 0xde9   : > { %v7887_v0 = vpop.f32.mrf.mxu0  ;;  %v7889_v1 = vpop.f32.mrf.mxu1  ;;  %v6782_v52 = vld [vmem:[%s7207_s19 + $0x1a0] sm:$0xff]  }
 0xdea   : > { %v4003_v24 = vmax.f32 %v3683_v4, 0.0  ;;  %v4005_v11 = vmax.f32 %v3726_v55, 0.0  ;;  %v4018_v61 = vpack.c.bf16 %v4002_v57, %v3986_v46  ;;  %v4020_v3 = vpack.c.bf16 %v4004_v39, %v3988_v12  ;;  %v6786_v55 = vld [vmem:[%s7207_s19 + $0x198] sm:$0xff]   ;;  %v6787_v57 = vld [vmem:[%s7207_s19 + $0x150] sm:$0xff]   ;;  %v6791_v46 = vld [vmem:[%s7207_s19 + $0x148] sm:$0xff]  }
 0xdeb   : > { %v3764_v15 = vpop.f32.mrf.mxu0  ;;  %v3807_v22 = vpop.f32.mrf.mxu1  ;;  %v6788_v39 = vld [vmem:[%s7207_s19 + $0x1d0] sm:$0xff]   ;;  %v6792_v12 = vld [vmem:[%s7207_s19 + $0x1c8] sm:$0xff]  }
 0xdec   : > { %v4019_v59 = vpack.c.bf16 %v4003_v24, %v3987_v41  ;;  %v4021_v31 = vpack.c.bf16 %v4005_v11, %v3989_v42  ;;  %v3765_v17 = vadd.f32 %v3764_v15, %v3422_v44  ;;  %v3808_v6 = vadd.f32 %v3807_v22, %v3430_v7  ;;  %v6789_v42 = vld [vmem:[%s7207_s19 + $0x110] sm:$0xff]  }
 0xded   : > { %v7899_v37 = vpop.f32.mrf.mxu0  ;;  %v7901_v47 = vpop.f32.mrf.mxu1  ;;  %v6790_v11 = vld [vmem:[%s7207_s19 + $0x190] sm:$0xff]  }
 0xdee   : > { %5097 = vmatprep.mubr.bf16.mxu0 %v4019_v59  ;;  %5138 = vmatprep.mubr.bf16.mxu1 %v4021_v31  ;;  %v3991_v63 = vmax.f32 %v3765_v17, 0.0  ;;  %v3993_v20 = vmax.f32 %v3808_v6, 0.0  ;;  %v7942_v59 = vld [vmem:[%s7197_s10 + $0x8] sm:$0xff] }
 0xdef   : > { %v3768_v58 = vpop.f32.mrf.mxu0  ;;  %v3811_v53 = vpop.f32.mrf.mxu1  ;;  %5098 = vmatmul.mubr.bf16.vlgmr.msra.gmra.mxu0 %v4018_v61  ;;  %5139 = vmatmul.mubr.bf16.vlgmr.msra.gmra.mxu1 %v4020_v3  ;;  %v3438_v61 = vrot.slane %v7942_v59, %v3405_v13  ;;  %v3446_v17 = vrot.slane %v7942_v59, %v3413_v16 }
 0xdf0   : > { %v3769_v10 = vadd.f32 %v3768_v58, %v3422_v44  ;;  %v3812_v32 = vadd.f32 %v3811_v53, %v3430_v7  ;;  %6272 = vmatpush3.bf16.msra.mxu0 %v6769_v26  ;;  %6294 = vmatpush3.bf16.msra.mxu1 %v6770_v62  ;;  %v3417_v44 = vsub.s32 4, %v7482_v21  ;;  %v3425_v7 = vsub.s32 6, %v7482_v21  ;;  %v6793_v26 = vld [vmem:[%s7207_s19 + $0x108] sm:$0xff]   ;;  %v6861_v21 = vld [vmem:[%s7207_s19 + $0x300] sm:$0xff]  }
 0xdf1   : > { %6273 = vmatprep.subr.bf16.mxu0 %v6771_v49  ;;  %6295 = vmatprep.subr.bf16.mxu1 %v6772_v60  ;;  %v7913_v19 = vpop.f32.mrf.mxu0  ;;  %v7916_v51 = vpop.f32.mrf.mxu1  ;;  %v6794_v49 = vld [vmem:[%s7207_s19 + $0x188] sm:$0xff]   ;;  %v6795_v60 = vld [vmem:[%s7207_s19 + $0x140] sm:$0xff]  }
 0xdf2   : > { %v4007_v43 = vmax.f32 %v3769_v10, 0.0  ;;  %v4009_v23 = vmax.f32 %v3812_v32, 0.0  ;;  %v3418_v15 = vrot.slane %v7871_v14, %v3417_v44  ;;  %v3426_v22 = vrot.slane %v7871_v14, %v3425_v7  ;;  %v6797_v10 = vld [vmem:[%s7207_s19 + $0x100] sm:$0xff]  }
 0xdf3   : > { %v3850_v25 = vpop.f32.mrf.mxu0  ;;  %v3893_v4 = vpop.f32.mrf.mxu1 }
 0xdf4   : > { %v4023_v18 = vpack.c.bf16 %v4007_v43, %v3991_v63  ;;  %v4025_v28 = vpack.c.bf16 %v4009_v23, %v3993_v20  ;;  %6274 = vmatpush3.bf16.msra.mxu0 %v6773_v9  ;;  %6296 = vmatpush3.bf16.msra.mxu1 %v6774_v33  ;;  %v3767_v62 = vadd.f32 %v7899_v37, %v3418_v15  ;;  %v6796_v37 = vld [vmem:[%s7207_s19 + $0x1c0] sm:$0xff]   ;;  %v6799_v33 = vld [vmem:[%s7207_s19 + $0x278] sm:$0xff]  }
 0xdf5   : > { %6275 = vmatprep.subr.bf16.mxu0 %v6775_v34  ;;  %6297 = vmatprep.subr.bf16.mxu1 %v6776_v5  ;;  %v7927_v41 = vpop.f32.mrf.mxu0  ;;  %v7930_v24 = vpop.f32.mrf.mxu1  ;;  %v3810_v14 = vadd.f32 %v7901_v47, %v3426_v22  ;;  %v3763_v6 = vadd.f32 %v7887_v0, %v3418_v15  ;;  %v3806_v13 = vadd.f32 %v7889_v1, %v3426_v22  ;;  %v6798_v47 = vld [vmem:[%s7207_s19 + $0x180] sm:$0xff]   ;;  %v6800_v63 = vld [vmem:[%s7207_s19 + $0x2f8] sm:$0xff]  }
 0xdf6   : > { %5179 = vmatprep.mubr.bf16.mxu0 %v4023_v18  ;;  %5220 = vmatprep.mubr.bf16.mxu1 %v4025_v28  ;;  %v4006_v32 = vmax.f32 %v3767_v62, 0.0  ;;  %v3851_v9 = vadd.f32 %v3850_v25, %v3438_v61  ;;  %v3894_v34 = vadd.f32 %v3893_v4, %v3446_v17  ;;  %v6801_v23 = vld [vmem:[%s7207_s19 + $0x238] sm:$0xff]   ;;  %v6807_v25 = vld [vmem:[%s7207_s19 + $0x268] sm:$0xff]  }
 0xdf7   : > { %v3854_v31 = vpop.f32.mrf.mxu0  ;;  %v3897_v3 = vpop.f32.mrf.mxu1  ;;  %v4008_v16 = vmax.f32 %v3810_v14, 0.0  ;;  %v3990_v0 = vmax.f32 %v3763_v6, 0.0  ;;  %v3992_v1 = vmax.f32 %v3806_v13, 0.0  ;;  %v6802_v28 = vld [vmem:[%s7207_s19 + $0x2b8] sm:$0xff]   ;;  %v6809_v4 = vld [vmem:[%s7207_s19 + $0x228] sm:$0xff]   ;;  %v6821_v14 = vld [vmem:[%s7207_s19 + $0x210] sm:$0xff]   ;;  %v3434_v13 = vrot.slane %v7942_v59, %v3401_v36 }
 0xdf8   : > { %6276 = vmatpush3.bf16.msra.mxu0 %v6777_v29  ;;  %6298 = vmatpush3.bf16.msra.mxu1 %v6778_v35  ;;  %v3855_v58 = vadd.f32 %v3854_v31, %v3438_v61  ;;  %v3898_v53 = vadd.f32 %v3897_v3, %v3446_v17  ;;  %v3995_v18 = vmax.f32 %v3851_v9, 0.0  ;;  %v3997_v35 = vmax.f32 %v3894_v34, 0.0  ;;  %v6815_v15 = vld [vmem:[%s7207_s19 + $0x258] sm:$0xff]   ;;  %v6819_v3 = vld [vmem:[%s7207_s19 + $0x250] sm:$0xff]   ;;  %v6823_v6 = vld [vmem:[%s7207_s19 + $0x248] sm:$0xff]  }
 0xdf9   : > { %6277 = vmatprep.subr.bf16.mxu0 %v6779_v45  ;;  %6299 = vmatprep.subr.bf16.mxu1 %v6780_v48  ;;  %v4022_v5 = vpack.c.bf16 %v4006_v32, %v3990_v0  ;;  %v4024_v29 = vpack.c.bf16 %v4008_v16, %v3992_v1  ;;  %v6803_v45 = vld [vmem:[%s7207_s19 + $0x270] sm:$0xff]   ;;  %v6816_v22 = vld [vmem:[%s7207_s19 + $0x2d8] sm:$0xff]   ;;  %v6825_v32 = vld [vmem:[%s7207_s19 + $0x208] sm:$0xff]   ;;  %v3853_v9 = vadd.f32 %v7927_v41, %v3434_v13 }
 0xdfa   : > { %v4011_v20 = vmax.f32 %v3855_v58, 0.0  ;;  %v4013_v43 = vmax.f32 %v3898_v53, 0.0  ;;  %v6818_v61 = vld [vmem:[%s7207_s19 + $0x298] sm:$0xff]   ;;  %v6824_v58 = vld [vmem:[%s7207_s19 + $0x2c8] sm:$0xff]   ;;  %v3442_v53 = vrot.slane %v7942_v59, %v3409_v38  ;;  %v6827_v36 = vld [vmem:[%s7207_s19 + $0x240] sm:$0xff]   ;;  %v3462_v38 = vrot.slane %v7942_v59, %v3429_v50 }
 0xdfb   : > { %v6826_v16 = vld [vmem:[%s7207_s19 + $0x288] sm:$0xff]   ;;  %v6828_v41 = vld [vmem:[%s7207_s19 + $0x2c0] sm:$0xff]  }
 0xdfc   : > { %6278 = vmatpush3.bf16.msra.mxu0 %v6781_v27  ;;  %6300 = vmatpush3.bf16.msra.mxu1 %v6782_v52  ;;  %v4027_v48 = vpack.c.bf16 %v4011_v20, %v3995_v18  ;;  %v6804_v27 = vld [vmem:[%s7207_s19 + $0x2f0] sm:$0xff]   ;;  %v4029_v52 = vpack.c.bf16 %v4013_v43, %v3997_v35  ;;  %v3896_v34 = vadd.f32 %v7930_v24, %v3442_v53  ;;  %v6829_v1 = vld [vmem:[%s7207_s19 + $0x200] sm:$0xff]   ;;  %v4010_v43 = vmax.f32 %v3853_v9, 0.0 }
 0xdfd   : > { %6279 = vmatprep.subr.bf16.mxu0 %v6783_v54  ;;  %6301 = vmatprep.subr.bf16.mxu1 %v6784_v8  ;;  %v6805_v54 = vld [vmem:[%s7207_s19 + $0x230] sm:$0xff]   ;;  %v6830_v24 = vld [vmem:[%s7207_s19 + $0x280] sm:$0xff]   ;;  %v3450_v9 = vrot.slane %v7942_v59, %v3417_v44 }
 0xdfe   : > { %v6806_v8 = vld [vmem:[%s7207_s19 + $0x2b0] sm:$0xff]   ;;  %v4012_v50 = vmax.f32 %v3896_v34, 0.0  ;;  %v6859_v34 = vld [vmem:[%s7207_s19 + $0x340] sm:$0xff]  }
 0xe00   : > { %6280 = vmatpush3.bf16.msra.mxu0 %v6785_v56  ;;  %6302 = vmatpush3.bf16.msra.mxu1 %v6786_v55  ;;  %v6808_v56 = vld [vmem:[%s7207_s19 + $0x2e8] sm:$0xff]  }
 0xe01   : > { %6281 = vmatprep.subr.bf16.mxu0 %v6787_v57  ;;  %6303 = vmatprep.subr.bf16.mxu1 %v6788_v39  ;;  %v6810_v55 = vld [vmem:[%s7207_s19 + $0x2a8] sm:$0xff]   ;;  %v6811_v57 = vld [vmem:[%s7207_s19 + $0x260] sm:$0xff]  }
 0xe02   : > { %v6812_v39 = vld [vmem:[%s7207_s19 + $0x2e0] sm:$0xff]  }
 0xe04   : > { %6282 = vmatpush3.bf16.msra.mxu0 %v6789_v42  ;;  %6304 = vmatpush3.bf16.msra.mxu1 %v6790_v11  ;;  %v7974_v42 = vpop.f32.mrf.mxu0  ;;  %v6813_v11 = vld [vmem:[%s7207_s19 + $0x220] sm:$0xff]  }
 0xe05   : > { %6283 = vmatprep.subr.bf16.mxu0 %v6791_v46  ;;  %6305 = vmatprep.subr.bf16.mxu1 %v6792_v12  ;;  %v7977_v46 = vpop.f32.mrf.mxu1  ;;  %v6814_v12 = vld [vmem:[%s7207_s19 + $0x2a0] sm:$0xff]  }
 0xe06   : > { %v3936_v31 = vpop.f32.mrf.mxu0 }
 0xe07   : > { %v3979_v62 = vpop.f32.mrf.mxu1 }
 0xe08   : > { %6284 = vmatpush3.bf16.msra.mxu0 %v6793_v26  ;;  %6306 = vmatpush3.bf16.msra.mxu1 %v6794_v49  ;;  %v6817_v26 = vld [vmem:[%s7207_s19 + $0x218] sm:$0xff]   ;;  %v6820_v49 = vld [vmem:[%s7207_s19 + $0x2d0] sm:$0xff]   ;;  %v3980_v18 = vadd.f32 %v3979_v62, %v3462_v38  ;;  %v6845_v62 = vld [vmem:[%s7207_s19 + $0x320] sm:$0xff]  }
 0xe09   : > { %6285 = vmatprep.subr.bf16.mxu0 %v6795_v60  ;;  %6307 = vmatprep.subr.bf16.mxu1 %v6796_v37  ;;  %v7986_v60 = vpop.f32.mrf.mxu0  ;;  %v7989_v17 = vpop.f32.mrf.mxu1  ;;  %v6822_v37 = vld [vmem:[%s7207_s19 + $0x290] sm:$0xff]  }
 0xe0c   : > { %6286 = vmatpush3.bf16.msra.mxu0 %v6797_v10  ;;  %6308 = vmatpush3.bf16.msra.mxu1 %v6798_v47  ;;  %v3940_v10 = vpop.f32.mrf.mxu0  ;;  %v3454_v47 = vrot.slane %v7942_v59, %v3421_v40  ;;  %v3892_v40 = vadd.f32 %v7916_v51, %v3442_v53  ;;  %v6854_v53 = vld [vmem:[%s7207_s19 + $0x390] sm:$0xff]  }
 0xe0d   : > { %6315 = vmatprep.subr.bf16.mxu0 %v6799_v33  ;;  %6337 = vmatprep.subr.bf16.mxu1 %v6800_v63  ;;  %v3983_v33 = vpop.f32.mrf.mxu1  ;;  %v3849_v63 = vadd.f32 %v7913_v19, %v3434_v13  ;;  %v6853_v13 = vld [vmem:[%s7207_s19 + $0x310] sm:$0xff]  }
 0xe0e   : > { %v3941_v0 = vadd.f32 %v3940_v10, %v3454_v47  ;;  %v3984_v20 = vadd.f32 %v3983_v33, %v3462_v38  ;;  %v3996_v51 = vmax.f32 %v3892_v40, 0.0  ;;  %v6855_v10 = vld [vmem:[%s7207_s19 + $0x348] sm:$0xff]  }
 0xe0f   : > { %5180 = vmatmul.mubr.bf16.vlgmr.msra.gmra.mxu0 %v4022_v5  ;;  %5221 = vmatmul.mubr.bf16.vlgmr.msra.gmra.mxu1 %v4024_v29  ;;  %v6831_v5 = vld [vmem:[%s7207_s19 + $0x378] sm:$0xff]   ;;  %v3994_v19 = vmax.f32 %v3849_v63, 0.0  ;;  %v6857_v33 = vld [vmem:[%s7207_s19 + $0x308] sm:$0xff]   ;;  %v3935_v63 = vadd.f32 %v7974_v42, %v3450_v9 }
 0xe10   : > { %6316 = vmatpush3.bf16.msra.mxu0 %v6801_v23  ;;  %5261 = vmatprep.mubr.bf16.mxu0 %v4027_v48  ;;  %v3937_v23 = vadd.f32 %v3936_v31, %v3454_v47  ;;  %v4015_v29 = vmax.f32 %v3941_v0, 0.0  ;;  %v4017_v35 = vmax.f32 %v3984_v20, 0.0  ;;  %v6843_v31 = vld [vmem:[%s7207_s19 + $0x360] sm:$0xff]   ;;  %v3458_v47 = vrot.slane %v7942_v59, %v3425_v7 }
 0xe11   : > { %6338 = vmatpush3.bf16.msra.mxu1 %v6802_v28  ;;  %5302 = vmatprep.mubr.bf16.mxu1 %v4029_v52  ;;  %v6832_v28 = vld [vmem:[%s7207_s19 + $0x3f8] sm:$0xff]   ;;  %v4026_v48 = vpack.c.bf16 %v4010_v43, %v3994_v19  ;;  %v6862_v59 = vld [vmem:[%s7207_s19 + $0x380] sm:$0xff]  }
 0xe12   : > { %6317 = vmatprep.subr.bf16.mxu0 %v6803_v45  ;;  %6339 = vmatprep.subr.bf16.mxu1 %v6804_v27  ;;  %v6833_v45 = vld [vmem:[%s7207_s19 + $0x338] sm:$0xff]   ;;  %v3999_v27 = vmax.f32 %v3937_v23, 0.0  ;;  %v3982_v38 = vadd.f32 %v7989_v17, %v3458_v47  ;;  %v3978_v44 = vadd.f32 %v7977_v46, %v3458_v47 }
 0xe13   : > { %v6834_v52 = vld [vmem:[%s7207_s19 + $0x3b8] sm:$0xff]  }
 0xe14   : > { %6318 = vmatpush3.bf16.msra.mxu0 %v6805_v54  ;;  %v4028_v54 = vpack.c.bf16 %v4012_v50, %v3996_v51  ;;  %v4016_v0 = vmax.f32 %v3982_v38, 0.0  ;;  %v4000_v40 = vmax.f32 %v3978_v44, 0.0 }
 0xe15   : > { %6340 = vmatpush3.bf16.msra.mxu1 %v6806_v8  ;;  %6319 = vmatprep.subr.bf16.mxu0 %v6807_v25  ;;  %v4001_v8 = vmax.f32 %v3980_v18, 0.0  ;;  %v6835_v25 = vld [vmem:[%s7207_s19 + $0x370] sm:$0xff]  }
 0xe16   : > { %6341 = vmatprep.subr.bf16.mxu1 %v6808_v56  ;;  %v4031_v56 = vpack.c.bf16 %v4015_v29, %v3999_v27  ;;  %v4032_v17 = vpack.c.bf16 %v4016_v0, %v4000_v40  ;;  %v5970_v27 = vld [vmem:[%s940_s21] ss:$0 sm:$0xff] }
 0xe18   : > { %6320 = vmatpush3.bf16.msra.mxu0 %v6809_v4  ;;  %v6836_v4 = vld [vmem:[%s7207_s19 + $0x3f0] sm:$0xff]  }
 0xe19   : > { %6342 = vmatpush3.bf16.msra.mxu1 %v6810_v55  ;;  %6321 = vmatprep.subr.bf16.mxu0 %v6811_v57  ;;  %v4033_v55 = vpack.c.bf16 %v4017_v35, %v4001_v8  ;;  %v6837_v57 = vld [vmem:[%s7207_s19 + $0x330] sm:$0xff]  }
 0xe1a   : > { %6343 = vmatprep.subr.bf16.mxu1 %v6812_v39  ;;  %v6838_v39 = vld [vmem:[%s7207_s19 + $0x3b0] sm:$0xff]  }
 0xe1c   : > { %6322 = vmatpush3.bf16.msra.mxu0 %v6813_v11  ;;  %v6839_v11 = vld [vmem:[%s7207_s19 + $0x368] sm:$0xff]  }
 0xe1d   : > { %6344 = vmatpush3.bf16.msra.mxu1 %v6814_v12  ;;  %6323 = vmatprep.subr.bf16.mxu0 %v6815_v15  ;;  %v6840_v12 = vld [vmem:[%s7207_s19 + $0x3e8] sm:$0xff]  }
 0xe1e   : > { %6345 = vmatprep.subr.bf16.mxu1 %v6816_v22  ;;  %v6841_v15 = vld [vmem:[%s7207_s19 + $0x328] sm:$0xff]  }
 0xe1f   : > { %v6842_v22 = vld [vmem:[%s7207_s19 + $0x3a8] sm:$0xff]  }
 0xe20   : > { %6324 = vmatpush3.bf16.msra.mxu0 %v6817_v26  ;;  %v6844_v26 = vld [vmem:[%s7207_s19 + $0x3e0] sm:$0xff]  }
 0xe21   : > { %6346 = vmatpush3.bf16.msra.mxu1 %v6818_v61  ;;  %6325 = vmatprep.subr.bf16.mxu0 %v6819_v3  ;;  %v6846_v61 = vld [vmem:[%s7207_s19 + $0x3a0] sm:$0xff]   ;;  %v6847_v3 = vld [vmem:[%s7207_s19 + $0x358] sm:$0xff]  }
 0xe22   : > { %6347 = vmatprep.subr.bf16.mxu1 %v6820_v49  ;;  %v6848_v49 = vld [vmem:[%s7207_s19 + $0x3d8] sm:$0xff]  }
 0xe24   : > { %6326 = vmatpush3.bf16.msra.mxu0 %v6821_v14  ;;  %v6849_v14 = vld [vmem:[%s7207_s19 + $0x318] sm:$0xff]  }
 0xe25   : > { %6348 = vmatpush3.bf16.msra.mxu1 %v6822_v37  ;;  %6327 = vmatprep.subr.bf16.mxu0 %v6823_v6  ;;  %v6850_v37 = vld [vmem:[%s7207_s19 + $0x398] sm:$0xff]   ;;  %v6851_v6 = vld [vmem:[%s7207_s19 + $0x350] sm:$0xff]  }
 0xe26   : > { %6349 = vmatprep.subr.bf16.mxu1 %v6824_v58  ;;  %v6852_v58 = vld [vmem:[%s7207_s19 + $0x3d0] sm:$0xff]  }
 0xe28   : > { %6328 = vmatpush3.bf16.msra.mxu0 %v6825_v32  ;;  %v6856_v32 = vld [vmem:[%s7207_s19 + $0x3c8] sm:$0xff]  }
 0xe29   : > { %6350 = vmatpush3.bf16.msra.mxu1 %v6826_v16  ;;  %6329 = vmatprep.subr.bf16.mxu0 %v6827_v36  ;;  %v3939_v16 = vadd.f32 %v7986_v60, %v3450_v9  ;;  %v6858_v36 = vld [vmem:[%s7207_s19 + $0x388] sm:$0xff]   ;;  %v3998_v60 = vmax.f32 %v3935_v63, 0.0 }
 0xe2a   : > { %6351 = vmatprep.subr.bf16.mxu1 %v6828_v41  ;;  %v6860_v41 = vld [vmem:[%s7207_s19 + $0x3c0] sm:$0xff]  }
 0xe2b   : > { %v4014_v7 = vmax.f32 %v3939_v16, 0.0 }
 0xe2c   : > { %6330 = vmatpush3.bf16.msra.mxu0 %v6829_v1 }
 0xe2d   : > { %6352 = vmatpush3.bf16.msra.mxu1 %v6830_v24  ;;  %6359 = vmatprep.subr.bf16.mxu0 %v6831_v5  ;;  %v4030_v20 = vpack.c.bf16 %v4014_v7, %v3998_v60 }
 0xe2e   : > { %6381 = vmatprep.subr.bf16.mxu1 %v6832_v28 }
 0xe2f   : > { %5262 = vmatmul.mubr.bf16.vlgmr.msra.gmra.mxu0 %v4026_v48 }
 0xe30   : > { %5303 = vmatmul.mubr.bf16.vlgmr.msra.gmra.mxu1 %v4028_v54  ;;  %6360 = vmatpush3.bf16.msra.mxu0 %v6833_v45 }
 0xe31   : > { %5343 = vmatprep.mubr.bf16.mxu0 %v4031_v56  ;;  %6382 = vmatpush3.bf16.msra.mxu1 %v6834_v52 }
 0xe32   : > { %5384 = vmatprep.mubr.bf16.mxu1 %v4033_v55  ;;  %6361 = vmatprep.subr.bf16.mxu0 %v6835_v25 }
 0xe33   : > { %6383 = vmatprep.subr.bf16.mxu1 %v6836_v4 }
 0xe34   : > { %6362 = vmatpush3.bf16.msra.mxu0 %v6837_v57 }
 0xe35   : > { %6384 = vmatpush3.bf16.msra.mxu1 %v6838_v39  ;;  %6363 = vmatprep.subr.bf16.mxu0 %v6839_v11 }
 0xe36   : > { %6385 = vmatprep.subr.bf16.mxu1 %v6840_v12 }
 0xe38   : > { %6364 = vmatpush3.bf16.msra.mxu0 %v6841_v15 }
 0xe39   : > { %6386 = vmatpush3.bf16.msra.mxu1 %v6842_v22  ;;  %6365 = vmatprep.subr.bf16.mxu0 %v6843_v31 }
 0xe3a   : > { %6387 = vmatprep.subr.bf16.mxu1 %v6844_v26 }
 0xe3c   : > { %6366 = vmatpush3.bf16.msra.mxu0 %v6845_v62 }
 0xe3d   : > { %6388 = vmatpush3.bf16.msra.mxu1 %v6846_v61  ;;  %6367 = vmatprep.subr.bf16.mxu0 %v6847_v3 }
 0xe3e   : > { %6389 = vmatprep.subr.bf16.mxu1 %v6848_v49 }
 0xe40   : > { %6368 = vmatpush3.bf16.msra.mxu0 %v6849_v14 }
 0xe41   : > { %6390 = vmatpush3.bf16.msra.mxu1 %v6850_v37  ;;  %6369 = vmatprep.subr.bf16.mxu0 %v6851_v6 }
 0xe42   : > { %6391 = vmatprep.subr.bf16.mxu1 %v6852_v58 }
 0xe44   : > { %6370 = vmatpush3.bf16.msra.mxu0 %v6853_v13 }
 0xe45   : > { %6392 = vmatpush3.bf16.msra.mxu1 %v6854_v53  ;;  %6371 = vmatprep.subr.bf16.mxu0 %v6855_v10 }
 0xe46   : > { %6393 = vmatprep.subr.bf16.mxu1 %v6856_v32 }
 0xe48   : > { %6372 = vmatpush3.bf16.msra.mxu0 %v6857_v33 }
 0xe49   : > { %6394 = vmatpush3.bf16.msra.mxu1 %v6858_v36  ;;  %6373 = vmatprep.subr.bf16.mxu0 %v6859_v34 }
 0xe4a   : > { %6395 = vmatprep.subr.bf16.mxu1 %v6860_v41 }
 0xe4c   : > { %6374 = vmatpush3.bf16.msra.mxu0 %v6861_v21 }
 0xe4d   : > { %6396 = vmatpush3.bf16.msra.mxu1 %v6862_v59 }
 0xe4f   : > { %5344 = vmatmul.mubr.bf16.vlgmr.msra.gmra.mxu0 %v4030_v20 }
 0xe50   : > { %5385 = vmatmul.mubr.bf16.vlgmr.msra.gmra.mxu1 %v4032_v17 }
 0xeaf   : > { %v6243_v1 = vpop.f32.mrf.mxu0  ;;  %v6265_v42 = vpop.f32.mrf.mxu1 }
 0xeb1   : > { %v6244_v46 = vpop.f32.mrf.mxu0  ;;  %v6266_v43 = vpop.f32.mrf.mxu1 }
 0xeb2   : > { %v6245_v48 = vadd.f32 %v6244_v46, %v6243_v1  ;;  %v6267_v55 = vadd.f32 %v6266_v43, %v6265_v42 }
 0xeb3   : > { %v6246_v23 = vpop.f32.mrf.mxu0  ;;  %v6268_v24 = vpop.f32.mrf.mxu1 }
 0xeb4   : > { %v5100_v8 = vadd.f32 %v6245_v48, %v5970_v27 }
 0xeb5   : > { %v6247_v5 = vpop.f32.mrf.mxu0  ;;  %v6269_v18 = vpop.f32.mrf.mxu1 }
 0xeb6   : > { %v6248_v25 = vadd.f32 %v6247_v5, %v6246_v23  ;;  %v5141_v39 = vadd.f32 %v6267_v55, %v5100_v8  ;;  %v6270_v22 = vadd.f32 %v6269_v18, %v6268_v24 }
 0xeb8   : > { %v5103_v11 = vadd.f32 %v6248_v25, %v5970_v27 }
 0xeba   : > { %v5144_v62 = vadd.f32 %v6270_v22, %v5103_v11 }
 0xecf   : > { %v6287_v50 = vpop.f32.mrf.mxu0  ;;  %v6309_v28 = vpop.f32.mrf.mxu1 }
 0xed1   : > { %v6288_v19 = vpop.f32.mrf.mxu0  ;;  %v6310_v29 = vpop.f32.mrf.mxu1 }
 0xed2   : > { %v6289_v57 = vadd.f32 %v6288_v19, %v6287_v50  ;;  %v6311_v61 = vadd.f32 %v6310_v29, %v6309_v28 }
 0xed3   : > { %v6290_v51 = vpop.f32.mrf.mxu0  ;;  %v6312_v35 = vpop.f32.mrf.mxu1 }
 0xed4   : > { %v5182_v31 = vadd.f32 %v6289_v57, %v5141_v39  ;;  %v6100_v57 = vld [vmem:[%s946_s23] ss:$0 sm:$0xff] }
 0xed5   : > { %v6291_v45 = vpop.f32.mrf.mxu0  ;;  %v6313_v54 = vpop.f32.mrf.mxu1 }
 0xed6   : > { %v6292_v26 = vadd.f32 %v6291_v45, %v6290_v51  ;;  %v5223_v37 = vadd.f32 %v6311_v61, %v5182_v31  ;;  %v6314_v58 = vadd.f32 %v6313_v54, %v6312_v35 }
 0xed8   : > { %v5185_v6 = vadd.f32 %v6292_v26, %v5144_v62 }
 0xeda   : > { %v5226_v9 = vadd.f32 %v6314_v58, %v5185_v6 }
 0xeef   : > { %v6331_v52 = vpop.f32.mrf.mxu0 }
 0xef0   : > { %v6353_v56 = vpop.f32.mrf.mxu1 }
 0xef1   : > { %v6332_v4 = vpop.f32.mrf.mxu0 }
 0xef2   : > { %v6354_v12 = vpop.f32.mrf.mxu1  ;;  %v6333_v3 = vadd.f32 %v6332_v4, %v6331_v52  ;;  %v6099_v4 = vld [vmem:[%s943_s7] ss:$0 sm:$0xff] }
 0xef3   : > { %v6334_v15 = vpop.f32.mrf.mxu0  ;;  %v6355_v47 = vadd.f32 %v6354_v12, %v6353_v56 }
 0xef4   : > { %v6356_v49 = vpop.f32.mrf.mxu1  ;;  %v5264_v13 = vadd.f32 %v6333_v3, %v5223_v37 }
 0xef5   : > { %v6335_v14 = vpop.f32.mrf.mxu0 }
 0xef6   : > { %v6336_v53 = vadd.f32 %v6335_v14, %v6334_v15  ;;  %v6357_v10 = vpop.f32.mrf.mxu1  ;;  %v5305_v36 = vadd.f32 %v6355_v47, %v5264_v13 }
 0xef7   : > { %v6358_v44 = vadd.f32 %v6357_v10, %v6356_v49 }
 0xef8   : > { %v5267_v34 = vadd.f32 %v6336_v53, %v5226_v9 }
 0xefa   : > { %v5308_v60 = vadd.f32 %v6358_v44, %v5267_v34 }
 0xf0f   : > { %v6375_v32 = vpop.f32.mrf.mxu0 }
 0xf10   : > { %v6397_v33 = vpop.f32.mrf.mxu1 }
 0xf11   : > { %v6376_v16 = vpop.f32.mrf.mxu0 }
 0xf12   : > { %v6377_v38 = vadd.f32 %v6376_v16, %v6375_v32  ;;  %v6398_v41 = vpop.f32.mrf.mxu1 }
 0xf13   : > { %v6378_v63 = vpop.f32.mrf.mxu0  ;;  %v6399_v7 = vadd.f32 %v6398_v41, %v6397_v33 }
 0xf14   : > { %v5346_v21 = vadd.f32 %v6377_v38, %v5305_v36  ;;  %v6400_v59 = vpop.f32.mrf.mxu1 }
 0xf15   : > { %v6379_v0 = vpop.f32.mrf.mxu0 }
 0xf16   : > { %v5387_v40 = vadd.f32 %v6399_v7, %v5346_v21  ;;  %v6380_v20 = vadd.f32 %v6379_v0, %v6378_v63  ;;  %v6401_v17 = vpop.f32.mrf.mxu1 }
 0xf17   : > { %v6402_v42 = vadd.f32 %v6401_v17, %v6400_v59 }
 0xf18   : > { %v5349_v1 = vadd.f32 %v6380_v20, %v5308_v60  ;;  %v5393_v46 = vadd.f32 %v5387_v40, %v7786_v2 }
 0xf1a   : > { %v5390_v43 = vadd.f32 %v6402_v42, %v5349_v1  ;;  %v5397_v23 = vsel %vm1289_vm3, %v5393_v46, 0.0 }
 0xf1b   : > { %5398 = vadd.xlane.f32.xlu0 %v5397_v23 }
 0xf1c   : > { %v5394_v24 = vadd.f32 %v5390_v43, %v7788_v30 }
 0xf1e   : > { %v5400_v5 = vsel %vm1289_vm3, %v5394_v24, 0.0 }
 0xf1f   : > { %5401 = vadd.xlane.f32.xlu1 %v5400_v5 }
 0xfa4   : > { %v5399_v50 = vpop.xlane.xlu0 %5398 }
 0xfa5   : > { %v5403_v18 = vmul.f32 0.03125, %v5399_v50 }
 0xfa7   : > { %v5405_v28 = vsub.f32 %v5393_v46, %v5403_v18 }
 0xfa8   : > { %v5402_v19 = vpop.xlane.xlu1 %5401 }
 0xfa9   : > { %v5404_v29 = vmul.f32 0.03125, %v5402_v19  ;;  %v5407_v51 = vmul.f32 %v5405_v28, %v5405_v28 }
 0xfab   : > { %v5406_v35 = vsub.f32 %v5394_v24, %v5404_v29  ;;  %v5409_v45 = vsel %vm1289_vm3, %v5407_v51, 0.0 }
 0xfac   : > { %5410 = vadd.xlane.f32.xlu0 %v5409_v45 }
 0xfad   : > { %v5408_v2 = vmul.f32 %v5406_v35, %v5406_v35 }
 0xfaf   : > { %v5412_v48 = vsel %vm1289_vm3, %v5408_v2, 0.0 }
 0xfb0   : > { %5413 = vadd.xlane.f32.xlu1 %v5412_v48 }
0x1035   : > { %v5411_v30 = vpop.xlane.xlu0 %5410 }
0x1036   : > { %v5415_v27 = vmul.f32 0.03125, %v5411_v30 }
0x1038   : > { %v5417_v52 = vadd.f32 1e-05, %v5415_v27 }
0x1039   : > { %v5414_v54 = vpop.xlane.xlu1 %5413 }
0x103a   : > { %6931 = vrsqrt.f32 %v5417_v52  ;;  %v5416_v8 = vmul.f32 0.03125, %v5414_v54 }
0x103c   : > { %v5418_v25 = vadd.f32 1e-05, %v5416_v8 }
0x103e   : > { %6933 = vrsqrt.f32 %v5418_v25 }
0x1047   : > { %v6932_v56 = vpop.eup %6931 }
0x1048   : > { %v5421_v55 = vmul.f32 %v6932_v56, %v5405_v28 }
0x104a   : > { %v5429_v39 = vmul.f32 %v6099_v4, %v5421_v55 }
0x104b   : > { %v6934_v11 = vpop.eup %6933 }
0x104c   : > { %v5437_v12 = vadd.f32 %v6100_v57, %v5429_v39  ;;  %v5422_v15 = vmul.f32 %v6934_v11, %v5406_v35 }
0x104e   : > { %5439 = vst.msk [vmem:[#allocation2] sm:$0xff] %vm1289_vm3, %v5437_v12  ;;  %v5430_v22 = vmul.f32 %v6099_v4, %v5422_v15  ;;  %5444 = sbr.rel (%p6101_p6) target bundleno = 4389 (0x1125), region = 112 }
0x1050   : > { %v5438_v31 = vadd.f32 %v6100_v57, %v5430_v22 }
0x1052   : > { %5440 = vst.msk [vmem:[#allocation2 + $0x8] sm:$0xff] %vm1289_vm3, %v5438_v31 }
0x1053   : > { %v6937_v26 = vld [vmem:[%s8201_s27 + $0x1c] ss:$12 sps:$4 sm:$0xff]   ;;  %v7002_v62 = vmov 0.0   ;;  %v6939_v61 = vld [vmem:[%s8201_s27 + $0x20] ss:$12 sps:$4 sm:$0xff]   ;;  %vm7003_vm2 = vmmov 0   ;;  %v5445_v58 = vpack.c.bf16 %v5438_v31, %v5437_v12 }
0x1054   : > { %6650 = vmatprep.subr.bf16.mxu1 %v7002_v62  ;;  %6654 = vmatprep.mubr.msk.bf16.mxu1 %vm7003_vm2, %v7002_v62  ;;  %v6940_v3 = vld [vmem:[%s8201_s27 + $0x18] ss:$12 sps:$4 sm:$0xff]   ;;  %v7004_v14 = vmov 0   ;;  %v6943_v37 = vld [vmem:[%s8201_s27 + $0x8] ss:$12 sps:$4 sm:$0xff]  }
0x1055   : > { %5501 = vmatprep.subr.bf16.mxu0 %v6937_v26  ;;  %6651 = vmatpush3.bf16.msra.mxu1 %v6939_v61  ;;  %v6941_v49 = vld [vmem:[%s8201_s27 + $0x4] ss:$12 sps:$4 sm:$0xff]   ;;  %v6944_v6 = vld [vmem:[%s8201_s27] ss:$12 sps:$4 sm:$0xff]  }
0x1056   : > { %5521 = vmatprep.mubr.bf16.mxu0 %v7004_v14  ;;  %5502 = vmatpush1.bf16.msra.mxu0 %v6940_v3 }
0x1057   : > { %6652 = vmatprep.subr.bf16.mxu1 %v7002_v62  ;;  %5503 = vmatprep.subr.bf16.mxu0 %v6941_v49 }
0x1059   : > { %6653 = vmatpush3.bf16.msra.mxu1 %v6943_v37 }
0x105a   : > { %5504 = vmatpush1.bf16.msra.mxu0 %v6944_v6 }
0x105c   : > { %6655 = vmatmul.mubr.msk.bf16.vlgmr.msra.gmra.mxu1 %vm1289_vm3, %v5445_v58 }
0x105d   : > { %6108 = vmatmul.mubr.msk.bf16.vlgmr.msra.gmra.mxu0 %vm1289_vm3, %v5445_v58 }
0x111c   : > { %v5566_v13 = vpop.f32.mrf.mxu1 }
0x111d   : > { %5575 = vst [vmem:[#allocation3 + $0x10] sm:$0xff] %v5566_v13  ;;  %v5523_v53 = vpop.f32.mrf.mxu0 }
0x111e   : > { %5573 = vst [vmem:[#allocation3] sm:$0xff] %v5523_v53  ;;  %v6656_v10 = vpop.f32.mrf.mxu1 }
0x111f   : > { %v5525_v32 = vpop.f32.mrf.mxu0 }
0x1120   : > { %5574 = vst [vmem:[#allocation3 + $0x8] sm:$0xff] %v5525_v32  ;;  %v5569_v9 = vpop.f32.mrf.mxu1 }
0x1121   : > { %5578 = vst [vmem:[#allocation3 + $0x28] sm:$0xff] %v5569_v9  ;;  %v5527_v47 = vpop.f32.mrf.mxu0 }
0x1122   : > { %5576 = vst [vmem:[#allocation3 + $0x18] sm:$0xff] %v5527_v47  ;;  %v6657_v33 = vpop.f32.mrf.mxu1 }
0x1123   : > { %v5529_v16 = vpop.f32.mrf.mxu0 }
0x1124   : > { %5577 = vst [vmem:[#allocation3 + $0x20] sm:$0xff] %v5529_v16 }
0x1125 PF: > { %s8202_s10 = sld [smem:[#allocation8_spill]]  ;;  %s7005_s19 = smov [#allocation3]  }
0x1126   : > { %s5589_s26 = sshll.u32 %s7005_s19, 4  ;;  %s5590_s26 = int_to_ptr.vmem [resolvable:$true] %s5589_s26 }
0x1127   : > { %s6945_s15 = scalar_lea.vmem %s5590_s26, 768  ;;  %p6952_p11 = scmp.lt.s32.totalorder %s5590_s26, %s5590_s26 }
0x1128   : > { %p6946_p8 = scmp.ne.s32.totalorder %s5590_s26, %s6945_s15  ;;  %p6953_p12 = scmp.lt.s32.totalorder %s6945_s15, %s6945_s15 }
0x112a   : > { %p6954_p13 = por %p6953_p12, %p6952_p11 }
0x112b   : > { %s8203_s22 = sadd.s32 4294967295, %s8202_s10  }
0x112c   : > { %p8104_p7 = scmp.eq.s32.totalorder %s8203_s22, 2 }
0x112e   : > { %p6947_p9 = pnand %p6946_p8, %p8104_p7 }
0x1130   : > { %p6948_p10 = pneg %p6947_p9 }
0x1132   : > { %p6955_p0 = pnand %p6954_p13, %p6948_p10 }
0x1134   : > { %6958 = shalt.err (!%p6955_p0)
}
0x1135   : > { %s7006_s2 = smov 384   ;;  %s7007_s25 = smov 24  }
0x1136   : > { %s8205_s28 = sld [smem:[#allocation24_spill]] }
0x113c   : > { %6659 = dma.vmem_to_hbm [thread:$0]  (%p8104_p7), %s5590_s26, 768, %s8205_s28, [#allocation4], %s7006_s2, %s7006_s2, %s7007_s25  }
0x113d   : > { %6982 = dma.done.wait (%p8104_p7), [#allocation4], 768  }
0x113e   : > { %6984 = vsyncadd (%p8104_p7), [#allocation4], 4294966528 }
0x113f PF: > { %s8206_s23 = sld [smem:[#allocation8_spill]] }
0x1140   : > { %s8207_s2 = sld [smem:[#allocation7_spill]] }
0x1141   : > { %s8208_s25 = sld [smem:[#allocation9_spill]] }
0x1145   : > { %s32_s26 = sadd.s32 1, %s8206_s23  }
0x1146   : > { %p29_p1 = scmp.ge.s32.totalorder %s32_s26, 5  }
0x1148   :  { %31 = sbr.rel (!%p29_p1) target bundleno = 18 (0x12), region = 192 }
0x114d   :  { %5605 = vsyncpa [#allocation4], 1 }
0x114e   :  { %5607 = vsyncpa [#allocation4 + $0x1], 1 }

</bundles_post_ra>
